<compile_context>
chip_gen: v6e
topology: v6e:2x2x1
jax: 0.10.0
libtpu: 0.0.40
codegen_flags: <defaults>
</compile_context>

<pallas_src>
import jax
import jax.numpy as jnp
from jax.experimental import pallas as pl
from jax.experimental.pallas import tpu as pltpu

EPS = 1e-5    # nn.BatchNorm2d default eps
LANE = 128    # TPU lane width


def _round_up(x, m):
    return (x + m - 1) // m * m


def _pad_last(x, target):
    c = x.shape[-1]
    if c == target:
        return x
    pad = [(0, 0)] * (x.ndim - 1) + [(0, target - c)]
    return jnp.pad(x, pad)


def _vmem_budget():
    try:
        cap = pltpu.get_tpu_info().vmem_capacity_bytes
    except Exception:
        cap = 64 * 1024 * 1024            # conservative (v7x-sized) fallback
    limit = int(min(cap * 3 // 4, 96 * 1024 * 1024))
    return limit, int(limit * 2 // 3)


VMEM_LIMIT, TILE_BUDGET = _vmem_budget()


def _choose_rows(M, bytes_per_row, fixed_bytes, budget, cap_rows=4096):
    """Largest multiple-of-8 divisor of M under the VMEM-derived row cap."""
    cap = max(8, min(cap_rows, (budget - fixed_bytes) // max(bytes_per_row, 1)))
    cap = min(cap, M)
    best = 0
    d = 8
    while d <= cap:
        if M % d == 0:
            best = d
        d += 8
    if best == 0:
        # Awkward (prime-ish) M: one full block instead of a degenerate tile.
        # TODO(synk): cdiv grid + masked tail for huge awkward M.
        best = M
    return best


# ----------------------------------------------------------------------------
# Layer-1 (tiny Cin) conv as a single K=9*Cin matmul over im2col rows + stats
# ----------------------------------------------------------------------------
def _matmul_stats_kernel(x_ref, w_ref, y_ref, stats_ref):
    # x_ref: (TM, K) bf16; w_ref: (K, C) bf16; y_ref: (TM, C) bf16
    # stats_ref: (1, 8, C) f32  (row 0 = sum, row 1 = sum of squares)
    acc = jnp.dot(x_ref[...], w_ref[...], preferred_element_type=jnp.float32)
    y_ref[...] = acc.astype(y_ref.dtype)
    stats_ref[0, 0:1] = jnp.sum(acc, axis=0, keepdims=True)
    stats_ref[0, 1:2] = jnp.sum(acc * acc, axis=0, keepdims=True)


def _matmul_stats(x2d, w2d):
    M, K = x2d.shape
    C = w2d.shape[1]
    per_row = 2 * K * 2 + 2 * C * 2 + C * 4          # db inputs/outputs + f32 acc
    fixed = 2 * K * C * 2 + 2 * 8 * C * 4
    TM = _choose_rows(M, per_row, fixed, TILE_BUDGET)
    nt = M // TM
    y, stats = pl.pallas_call(
        _matmul_stats_kernel,
        out_shape=(jax.ShapeDtypeStruct((M, C), jnp.bfloat16),
                   jax.ShapeDtypeStruct((nt, 8, C), jnp.float32)),
        grid=(nt,),
        in_specs=[pl.BlockSpec((TM, K), lambda i: (i, 0)),
                  pl.BlockSpec((K, C), lambda i: (0, 0))],
        out_specs=(pl.BlockSpec((TM, C), lambda i: (i, 0)),
                   pl.BlockSpec((1, 8, C), lambda i: (i, 0, 0))),
        compiler_params=pltpu.CompilerParams(
            dimension_semantics=("parallel",),
            vmem_limit_bytes=VMEM_LIMIT),
        cost_estimate=pl.CostEstimate(
            flops=2 * M * K * C, transcendentals=0,
            bytes_accessed=M * K * 2 + M * C * 2 + K * C * 2 + nt * 8 * C * 4),
    )(x2d, w2d)
    return y, stats


# ----------------------------------------------------------------------------
# 3x3 conv over a whole-image block, optional fused (BN-apply + ReLU) prologue,
# SAME zero border built in VMEM, per-image BN partial statistics.
# ----------------------------------------------------------------------------
def _conv3x3_stats_kernel(*refs):
    fuse = len(refs) == 7
    if fuse:
        x_ref, scale_ref, shift_ref, w_ref, y_ref, stats_ref, pad_ref = refs
    else:
        x_ref, w_ref, y_ref, stats_ref, pad_ref = refs
    _, H, W, cin_p = x_ref.shape
    cout_p = y_ref.shape[3]

    x = x_ref[0]                                             # (H, W, Cin_p) bf16
    if fuse:
        scale = scale_ref[...].reshape(1, 1, cin_p)
        shift = shift_ref[...].reshape(1, 1, cin_p)
        a = jnp.maximum(x.astype(jnp.float32) * scale + shift, 0.0)
        a = a.astype(jnp.bfloat16)
    else:
        a = x

    # Zero-padded activation window in VMEM (post-activation padding, so the
    # border is genuinely zero — no XLA pad copy, no halo re-read).
    zrow = jnp.zeros((1, W + 2, cin_p), jnp.bfloat16)
    zcol = jnp.zeros((H, 1, cin_p), jnp.bfloat16)
    pad_ref[0:1, :, :] = zrow
    pad_ref[H + 1:H + 2, :, :] = zrow
    pad_ref[1:H + 1, 0:1, :] = zcol
    pad_ref[1:H + 1, W + 1:W + 2, :] = zcol
    pad_ref[1:H + 1, 1:W + 1, :] = a

    # 3 dots with K = 3*Cin_p: per dy, concatenate the 3 dx taps (lane-aligned,
    # Cin_p is a multiple of 128) into the contraction dim so the MXU accumulates.
    acc = None
    for dy in range(3):
        band = pad_ref[dy:dy + H, :, :]                      # (H, W+2, Cin_p)
        cat = jnp.concatenate([band[:, dx:dx + W, :] for dx in range(3)], axis=-1)
        cat = cat.reshape(H * W, 3 * cin_p)
        part = jnp.dot(cat, w_ref[dy], preferred_element_type=jnp.float32)
        acc = part if acc is None else acc + part

    y_ref[...] = acc.reshape(1, H, W, cout_p).astype(y_ref.dtype)
    stats_ref[0, 0:1] = jnp.sum(acc, axis=0, keepdims=True)
    stats_ref[0, 1:2] = jnp.sum(acc * acc, axis=0, keepdims=True)


def _conv3x3_stats(x_img, w3, scale=None, shift=None):
    """x_img: (N, H, W, Cin_p) bf16 (Cin_p % 128 == 0).  w3: (3, 3*Cin_p, Cout_p) bf16.
       If scale/shift are given, BN-apply + ReLU of the previous layer is fused
       into the load path.  Returns y (N, H, W, Cout_p) bf16 and (N, 8, Cout_p) stats."""
    N, H, W, cin_p = x_img.shape
    cout_p = w3.shape[2]
    assert cin_p % LANE == 0

    est = (2 * H * W * cin_p * 2              # double-buffered x blocks (bf16)
           + 2 * H * W * cout_p * 2           # double-buffered y blocks (bf16)
           + (H + 2) * (W + 2) * cin_p * 2    # zero-padded window scratch
           + H * W * cout_p * 4               # f32 accumulator
           + H * W * 3 * cin_p * 2            # concatenated 3-tap operand
           + H * W * cin_p * 4                # f32 temp for the fused affine
           + 2 * 9 * cin_p * cout_p * 2)      # resident weights
    if est > TILE_BUDGET:
        # TODO(synk): H-tiled halo windows (pl.Element offsets t*TH) for images
        # whose full (H, W) tile does not fit the VMEM budget.
        raise NotImplementedError("image tile exceeds the VMEM budget")

    fuse = scale is not None
    inputs = [x_img]
    in_specs = [pl.BlockSpec((1, H, W, cin_p), lambda n: (n, 0, 0, 0))]
    if fuse:
        inputs += [scale, shift]
        in_specs += [pl.BlockSpec((1, cin_p), lambda n: (0, 0)),
                     pl.BlockSpec((1, cin_p), lambda n: (0, 0))]
    inputs.append(w3)
    in_specs.append(pl.BlockSpec((3, 3 * cin_p, cout_p), lambda n: (0, 0, 0)))

    y, stats = pl.pallas_call(
        _conv3x3_stats_kernel,
        out_shape=(jax.ShapeDtypeStruct((N, H, W, cout_p), jnp.bfloat16),
                   jax.ShapeDtypeStruct((N, 8, cout_p), jnp.float32)),
        grid=(N,),
        in_specs=in_specs,
        out_specs=(pl.BlockSpec((1, H, W, cout_p), lambda n: (n, 0, 0, 0)),
                   pl.BlockSpec((1, 8, cout_p), lambda n: (n, 0, 0))),
        scratch_shapes=[pltpu.VMEM((H + 2, W + 2, cin_p), jnp.bfloat16)],
        compiler_params=pltpu.CompilerParams(
            dimension_semantics=("parallel",),
            vmem_limit_bytes=VMEM_LIMIT),
        cost_estimate=pl.CostEstimate(
            flops=2 * N * H * W * 9 * cin_p * cout_p, transcendentals=0,
            bytes_accessed=(N * H * W * (cin_p + cout_p) * 2
                            + 9 * cin_p * cout_p * 2 + N * 8 * cout_p * 4)),
    )(*inputs)
    return y, stats


# ----------------------------------------------------------------------------
# Final BN apply + ReLU (lane-dense f32 output)
# ----------------------------------------------------------------------------
def _bn_relu_kernel(y_ref, scale_ref, shift_ref, o_ref):
    y = y_ref[...].astype(jnp.float32)
    o_ref[...] = jnp.maximum(y * scale_ref[...] + shift_ref[...], 0.0).astype(o_ref.dtype)


def _bn_relu_apply(y2d, scale, shift):
    M, C = y2d.shape
    per_row = 2 * C * 2 + 2 * C * 4
    TM = _choose_rows(M, per_row, 4 * C * 4, TILE_BUDGET)
    nt = M // TM
    return pl.pallas_call(
        _bn_relu_kernel,
        out_shape=jax.ShapeDtypeStruct((M, C), jnp.float32),
        grid=(nt,),
        in_specs=[pl.BlockSpec((TM, C), lambda i: (i, 0)),
                  pl.BlockSpec((1, C), lambda i: (0, 0)),
                  pl.BlockSpec((1, C), lambda i: (0, 0))],
        out_specs=pl.BlockSpec((TM, C), lambda i: (i, 0)),
        compiler_params=pltpu.CompilerParams(
            dimension_semantics=("parallel",),
            vmem_limit_bytes=VMEM_LIMIT),
    )(y2d, scale, shift)


def _bn_scale_shift(stats, count, gamma, beta, c_p):
    """stats: (T, 8, c_p) with row 0 = per-tile sum, row 1 = per-tile sum of squares."""
    total = jnp.sum(stats[:, 0, :], axis=0)
    total_sq = jnp.sum(stats[:, 1, :], axis=0)
    mean = total / count
    var = jnp.maximum(total_sq / count - mean * mean, 0.0)
    # TODO(synk): switch to per-tile (count, mean, M2) Welford partials if the
    # E[x^2]-E[x]^2 form ever cancels badly at very large N*H*W.
    inv = jax.lax.rsqrt(var + EPS)
    g = jnp.zeros((c_p,), jnp.float32).at[:gamma.size].set(gamma.reshape(-1).astype(jnp.float32))
    b = jnp.zeros((c_p,), jnp.float32).at[:beta.size].set(beta.reshape(-1).astype(jnp.float32))
    scale = g * inv
    shift = b - mean * scale
    return scale.reshape(1, c_p), shift.reshape(1, c_p)


# ----------------------------------------------------------------------------
# DoubleConv forward
# ----------------------------------------------------------------------------
def double_conv(x_nchw, w1, g1, b1, w2, g2, b2):
    """(Conv3x3 pad=1 bias=False -> BatchNorm2d(train) -> ReLU) x 2.  wi are HWIO."""
    N, Cin, H, W = x_nchw.shape
    Cmid = w1.shape[3]
    Cout = w2.shape[3]
    Cmid_p = _round_up(Cmid, LANE)
    Cout_p = _round_up(Cout, LANE)
    M = N * H * W
    count = float(M)

    x = jnp.transpose(x_nchw, (0, 2, 3, 1))                       # NCHW -> NHWC

    # ---- layer 1: conv1 (+ batch-stat partials) -----------------------------
    if Cin < 32:
        # Tiny-Cin stem: build the 9-tap operand in XLA (blow-up of 9*Cin*2 B/px
        # is negligible next to the 128-channel intermediates) and do ONE
        # K = 9*Cin MXU dot per row tile — no halo handling needed here.
        K1 = 9 * Cin
        xb = x.astype(jnp.bfloat16)
        xp = jnp.pad(xb, ((0, 0), (1, 1), (1, 1), (0, 0)))
        taps = [xp[:, dy:dy + H, dx:dx + W, :] for dy in range(3) for dx in range(3)]
        x_im = jnp.concatenate(taps, axis=-1).reshape(M, K1)
        w1_p = (jnp.zeros((3, 3, Cin, Cmid_p), jnp.float32)
                .at[..., :Cmid].set(w1).astype(jnp.bfloat16).reshape(K1, Cmid_p))
        y1, stats1 = _matmul_stats(x_im, w1_p)                    # (M, Cmid_p) bf16
    else:
        # Wide-Cin first conv: same whole-image conv kernel, without the fused BN.
        Cin_p = _round_up(Cin, LANE)
        x_p = _pad_last(x, Cin_p).astype(jnp.bfloat16)
        w1_p = (jnp.zeros((3, 3, Cin_p, Cmid_p), jnp.float32)
                .at[:, :, :Cin, :Cmid].set(w1)
                .astype(jnp.bfloat16).reshape(3, 3 * Cin_p, Cmid_p))
        y1, stats1 = _conv3x3_stats(x_p, w1_p)
        y1 = y1.reshape(M, Cmid_p)
    scale1, shift1 = _bn_scale_shift(stats1, count, g1, b1, Cmid_p)

    # ---- layer 2: fused BN1-apply + ReLU -> conv2 (+ batch-stat partials) ----
    w2_p = (jnp.zeros((3, 3, Cmid_p, Cout_p), jnp.float32)
            .at[:, :, :Cmid, :Cout].set(w2)
            .astype(jnp.bfloat16).reshape(3, 3 * Cmid_p, Cout_p))
    y2, stats2 = _conv3x3_stats(y1.reshape(N, H, W, Cmid_p), w2_p, scale1, shift1)
    scale2, shift2 = _bn_scale_shift(stats2, count, g2, b2, Cout_p)

    # ---- finalize: BN2 apply + ReLU ------------------------------------------
    out = _bn_relu_apply(y2.reshape(M, Cout_p), scale2, shift2)
    out = out.reshape(N, H, W, Cout_p)[..., :Cout]
    return jnp.transpose(out, (0, 3, 1, 2))                       # NHWC -> NCHW


# Pure-JAX reference mirroring the kernel numerics (bf16 matmul operands,
# f32 accumulation and statistics, bf16 storage of the raw conv outputs).
def _reference(x_nchw, w1, g1, b1, w2, g2, b2):
    def layer(x_nhwc, w, g, b):
        xb = x_nhwc.astype(jnp.bfloat16).astype(jnp.float32)
        wb = w.astype(jnp.bfloat16).astype(jnp.float32)
        y = jax.lax.conv_general_dilated(
            xb, wb, window_strides=(1, 1), padding="SAME",
            dimension_numbers=("NHWC", "HWIO", "NHWC"),
            precision=jax.lax.Precision.HIGHEST)
        mean = jnp.mean(y, axis=(0, 1, 2))
        var = jnp.mean((y - mean) ** 2, axis=(0, 1, 2))
        scale = g.reshape(-1) * jax.lax.rsqrt(var + EPS)
        shift = b.reshape(-1) - mean * scale
        yq = y.astype(jnp.bfloat16).astype(jnp.float32)   # kernels store conv out in bf16
        return jnp.maximum(yq * scale + shift, 0.0)

    x = jnp.transpose(x_nchw, (0, 2, 3, 1))
    a1 = layer(x, w1, g1, b1)
    a2 = layer(a1, w2, g2, b2)
    return jnp.transpose(a2, (0, 3, 1, 2))


if __name__ == "__main__":
    # Small deterministic example consistent with DoubleConv(in=4, out=8).
    N, Cin, H, W = 2, 4, 16, 16
    Cmid = Cout = 8
    K = 3

    key = jax.random.PRNGKey(0)
    kx, kw1, kg1, kb1, kw2, kg2, kb2 = jax.random.split(key, 7)

    x = jax.random.normal(kx, (N, Cin, H, W), jnp.float32)
    w1 = 0.1 * jax.random.normal(kw1, (K, K, Cin, Cmid), jnp.float32)
    g1 = 1.0 + 0.1 * jax.random.normal(kg1, (Cmid,), jnp.float32)
    b1 = 0.1 * jax.random.normal(kb1, (Cmid,), jnp.float32)
    w2 = 0.1 * jax.random.normal(kw2, (K, K, Cmid, Cout), jnp.float32)
    g2 = 1.0 + 0.1 * jax.random.normal(kg2, (Cout,), jnp.float32)
    b2 = 0.1 * jax.random.normal(kb2, (Cout,), jnp.float32)

    fwd = jax.jit(double_conv)
    out = jax.block_until_ready(fwd(x, w1, g1, b1, w2, g2, b2))
    assert out.shape == (N, Cout, H, W), out.shape

    ref = jax.block_until_ready(_reference(x, w1, g1, b1, w2, g2, b2))
    max_err = float(jnp.max(jnp.abs(out - ref)))
    assert jnp.allclose(out, ref, rtol=2e-2, atol=2e-2), max_err

    print("KERNEL_OK")
</pallas_src>

<mosaic_0001>
module attributes {stable_mosaic.version = 11 : i64} {
  func.func @_matmul_stats_kernel(%arg0: i32, %arg1: memref<512x36xbf16, #tpu.memory_space<vmem>>, %arg2: memref<36x128xbf16, #tpu.memory_space<vmem>>, %arg3: memref<512x128xbf16, #tpu.memory_space<vmem>>, %arg4: memref<1x8x128xf32, #tpu.memory_space<vmem>>) attributes {dimension_semantics = [#tpu.dimension_semantics<parallel>], iteration_bounds = array<i64: 1>, scalar_prefetch = 0 : i64, scratch_operands = 0 : i64, tpu.core_type = #tpu.core_type<tc>, window_params = [{transform_indices = @transform_0, window_bounds = array<i64: 512, 36>}, {pipeline_mode = #tpu.pipeline_mode<synchronous>, transform_indices = @transform_1, window_bounds = array<i64: 36, 128>}, {transform_indices = @transform_2, window_bounds = array<i64: 512, 128>}, {transform_indices = @transform_3, window_bounds = array<i64: 1, 8, 128>}]} {
    %c0 = arith.constant 0 : index
    %c0_0 = arith.constant 0 : index
    %0 = vector.load %arg1[%c0, %c0_0] : memref<512x36xbf16, #tpu.memory_space<vmem>>, vector<512x36xbf16>
    %c0_1 = arith.constant 0 : index
    %c0_2 = arith.constant 0 : index
    %1 = vector.load %arg2[%c0_1, %c0_2] : memref<36x128xbf16, #tpu.memory_space<vmem>>, vector<36x128xbf16>
    %cst = arith.constant dense<0.000000e+00> : vector<512x128xf32>
    %2 = tpu.matmul %0, %1, %cst {dimension_numbers = #tpu.dot_dimension_numbers<[1], [0], [0], [1], [0, 0, 1, 1], [], []>} : vector<512x36xbf16>, vector<36x128xbf16>, vector<512x128xf32> -> vector<512x128xf32>
    %3 = arith.truncf %2 : vector<512x128xf32> to vector<512x128xbf16>
    %c0_3 = arith.constant 0 : index
    %c0_4 = arith.constant 0 : index
    %4 = vector.load %arg3[%c0_3, %c0_4] : memref<512x128xbf16, #tpu.memory_space<vmem>>, vector<512x128xbf16>
    tpu.vector_store %arg3[%c0_3, %c0_4], %3 {strides = array<i32>} : memref<512x128xbf16, #tpu.memory_space<vmem>>, vector<512x128xbf16>,
    %cst_5 = arith.constant dense<0.000000e+00> : vector<128xf32>
    %5 = vector.multi_reduction <add>, %2, %cst_5 [0] : vector<512x128xf32> to vector<128xf32>
    %6 = vector.shape_cast %5 : vector<128xf32> to vector<1x128xf32>
    %c0_6 = arith.constant 0 : index
    %c0_7 = arith.constant 0 : index
    %c0_8 = arith.constant 0 : index
    %7 = vector.load %arg4[%c0_6, %c0_7, %c0_8] : memref<1x8x128xf32, #tpu.memory_space<vmem>>, vector<1x1x128xf32>
    %8 = vector.shape_cast %7 : vector<1x1x128xf32> to vector<1x128xf32>
    %9 = vector.shape_cast %6 : vector<1x128xf32> to vector<1x1x128xf32>
    tpu.vector_store %arg4[%c0_6, %c0_7, %c0_8], %9 {strides = array<i32>} : memref<1x8x128xf32, #tpu.memory_space<vmem>>, vector<1x1x128xf32>,
    %10 = arith.mulf %2, %2 : vector<512x128xf32>
    %cst_9 = arith.constant dense<0.000000e+00> : vector<128xf32>
    %11 = vector.multi_reduction <add>, %10, %cst_9 [0] : vector<512x128xf32> to vector<128xf32>
    %12 = vector.shape_cast %11 : vector<128xf32> to vector<1x128xf32>
    %c0_10 = arith.constant 0 : index
    %c1 = arith.constant 1 : index
    %c0_11 = arith.constant 0 : index
    %13 = vector.load %arg4[%c0_10, %c1, %c0_11] : memref<1x8x128xf32, #tpu.memory_space<vmem>>, vector<1x1x128xf32>
    %14 = vector.shape_cast %13 : vector<1x1x128xf32> to vector<1x128xf32>
    %15 = vector.shape_cast %12 : vector<1x128xf32> to vector<1x1x128xf32>
    tpu.vector_store %arg4[%c0_10, %c1, %c0_11], %15 {strides = array<i32>} : memref<1x8x128xf32, #tpu.memory_space<vmem>>, vector<1x1x128xf32>,
    return
  }
  func.func @transform_0(%arg0: i32) -> (i32, i32) {
    %c0_i32 = arith.constant 0 : i32
    %c0_i32_0 = arith.constant 0 : i32
    return %arg0, %c0_i32 : i32, i32
  }
  func.func @transform_1(%arg0: i32) -> (i32, i32) {
    %c0_i32 = arith.constant 0 : i32
    %c0_i32_0 = arith.constant 0 : i32
    %c0_i32_1 = arith.constant 0 : i32
    return %c0_i32, %c0_i32_0 : i32, i32
  }
  func.func @transform_2(%arg0: i32) -> (i32, i32) {
    %c0_i32 = arith.constant 0 : i32
    %c0_i32_0 = arith.constant 0 : i32
    return %arg0, %c0_i32 : i32, i32
  }
  func.func @transform_3(%arg0: i32) -> (i32, i32, i32) {
    %c0_i32 = arith.constant 0 : i32
    %c0_i32_0 = arith.constant 0 : i32
    %c0_i32_1 = arith.constant 0 : i32
    return %arg0, %c0_i32, %c0_i32_0 : i32, i32, i32
  }
}

module attributes {stable_mosaic.version = 11 : i64} {
  func.func @_bn_relu_kernel(%arg0: i32, %arg1: memref<512x128xbf16, #tpu.memory_space<vmem>>, %arg2: memref<1x128xf32, #tpu.memory_space<vmem>>, %arg3: memref<1x128xf32, #tpu.memory_space<vmem>>, %arg4: memref<512x128xf32, #tpu.memory_space<vmem>>) attributes {dimension_semantics = [#tpu.dimension_semantics<parallel>], iteration_bounds = array<i64: 1>, scalar_prefetch = 0 : i64, scratch_operands = 0 : i64, tpu.core_type = #tpu.core_type<tc>, window_params = [{transform_indices = @transform_0, window_bounds = array<i64: 512, 128>}, {pipeline_mode = #tpu.pipeline_mode<synchronous>, transform_indices = @transform_1, window_bounds = array<i64: 1, 128>}, {pipeline_mode = #tpu.pipeline_mode<synchronous>, transform_indices = @transform_2, window_bounds = array<i64: 1, 128>}, {transform_indices = @transform_3, window_bounds = array<i64: 512, 128>}]} {
    %c0 = arith.constant 0 : index
    %c0_0 = arith.constant 0 : index
    %0 = vector.load %arg1[%c0, %c0_0] : memref<512x128xbf16, #tpu.memory_space<vmem>>, vector<512x128xbf16>
    %1 = arith.extf %0 : vector<512x128xbf16> to vector<512x128xf32>
    %c0_1 = arith.constant 0 : index
    %c0_2 = arith.constant 0 : index
    %2 = vector.load %arg2[%c0_1, %c0_2] : memref<1x128xf32, #tpu.memory_space<vmem>>, vector<1x128xf32>
    %3 = vector.broadcast %2 : vector<1x128xf32> to vector<512x128xf32>
    %4 = arith.mulf %1, %3 : vector<512x128xf32>
    %c0_3 = arith.constant 0 : index
    %c0_4 = arith.constant 0 : index
    %5 = vector.load %arg3[%c0_3, %c0_4] : memref<1x128xf32, #tpu.memory_space<vmem>>, vector<1x128xf32>
    %6 = vector.broadcast %5 : vector<1x128xf32> to vector<512x128xf32>
    %7 = arith.addf %4, %6 : vector<512x128xf32>
    %cst = arith.constant 0.000000e+00 : f32
    %8 = vector.broadcast %cst : f32 to vector<512x128xf32>
    %9 = arith.maximumf %7, %8 : vector<512x128xf32>
    %c0_5 = arith.constant 0 : index
    %c0_6 = arith.constant 0 : index
    %10 = vector.load %arg4[%c0_5, %c0_6] : memref<512x128xf32, #tpu.memory_space<vmem>>, vector<512x128xf32>
    tpu.vector_store %arg4[%c0_5, %c0_6], %9 {strides = array<i32>} : memref<512x128xf32, #tpu.memory_space<vmem>>, vector<512x128xf32>,
    return
  }
  func.func @transform_0(%arg0: i32) -> (i32, i32) {
    %c0_i32 = arith.constant 0 : i32
    %c0_i32_0 = arith.constant 0 : i32
    return %arg0, %c0_i32 : i32, i32
  }
  func.func @transform_1(%arg0: i32) -> (i32, i32) {
    %c0_i32 = arith.constant 0 : i32
    %c0_i32_0 = arith.constant 0 : i32
    %c0_i32_1 = arith.constant 0 : i32
    return %c0_i32, %c0_i32_0 : i32, i32
  }
  func.func @transform_2(%arg0: i32) -> (i32, i32) {
    %c0_i32 = arith.constant 0 : i32
    %c0_i32_0 = arith.constant 0 : i32
    %c0_i32_1 = arith.constant 0 : i32
    return %c0_i32, %c0_i32_0 : i32, i32
  }
  func.func @transform_3(%arg0: i32) -> (i32, i32) {
    %c0_i32 = arith.constant 0 : i32
    %c0_i32_0 = arith.constant 0 : i32
    return %arg0, %c0_i32 : i32, i32
  }
}

module attributes {stable_mosaic.version = 11 : i64} {
  func.func @_conv3x3_stats_kernel(%arg0: i32, %arg1: memref<1x16x16x128xbf16, #tpu.memory_space<vmem>>, %arg2: memref<1x128xf32, #tpu.memory_space<vmem>>, %arg3: memref<1x128xf32, #tpu.memory_space<vmem>>, %arg4: memref<3x384x128xbf16, #tpu.memory_space<vmem>>, %arg5: memref<1x16x16x128xbf16, #tpu.memory_space<vmem>>, %arg6: memref<1x8x128xf32, #tpu.memory_space<vmem>>, %arg7: memref<18x18x128xbf16, #tpu.memory_space<vmem>>) attributes {dimension_semantics = [#tpu.dimension_semantics<parallel>], iteration_bounds = array<i64: 2>, scalar_prefetch = 0 : i64, scratch_operands = 1 : i64, tpu.core_type = #tpu.core_type<tc>, window_params = [{transform_indices = @transform_0, window_bounds = array<i64: 1, 16, 16, 128>}, {pipeline_mode = #tpu.pipeline_mode<synchronous>, transform_indices = @transform_1, window_bounds = array<i64: 1, 128>}, {pipeline_mode = #tpu.pipeline_mode<synchronous>, transform_indices = @transform_2, window_bounds = array<i64: 1, 128>}, {pipeline_mode = #tpu.pipeline_mode<synchronous>, transform_indices = @transform_3, window_bounds = array<i64: 3, 384, 128>}, {transform_indices = @transform_4, window_bounds = array<i64: 1, 16, 16, 128>}, {transform_indices = @transform_5, window_bounds = array<i64: 1, 8, 128>}]} {
    %c0 = arith.constant 0 : index
    %c0_0 = arith.constant 0 : index
    %c0_1 = arith.constant 0 : index
    %c0_2 = arith.constant 0 : index
    %0 = vector.load %arg1[%c0, %c0_0, %c0_1, %c0_2] : memref<1x16x16x128xbf16, #tpu.memory_space<vmem>>, vector<1x16x16x128xbf16>
    %1 = vector.shape_cast %0 : vector<1x16x16x128xbf16> to vector<16x16x128xbf16>
    %c0_3 = arith.constant 0 : index
    %c0_4 = arith.constant 0 : index
    %2 = vector.load %arg2[%c0_3, %c0_4] : memref<1x128xf32, #tpu.memory_space<vmem>>, vector<1x128xf32>
    %3 = vector.shape_cast %2 : vector<1x128xf32> to vector<1x1x128xf32>
    %c0_5 = arith.constant 0 : index
    %c0_6 = arith.constant 0 : index
    %4 = vector.load %arg3[%c0_5, %c0_6] : memref<1x128xf32, #tpu.memory_space<vmem>>, vector<1x128xf32>
    %5 = vector.shape_cast %4 : vector<1x128xf32> to vector<1x1x128xf32>
    %6 = arith.extf %1 : vector<16x16x128xbf16> to vector<16x16x128xf32>
    %7 = vector.broadcast %3 : vector<1x1x128xf32> to vector<16x16x128xf32>
    %8 = arith.mulf %6, %7 : vector<16x16x128xf32>
    %9 = vector.broadcast %5 : vector<1x1x128xf32> to vector<16x16x128xf32>
    %10 = arith.addf %8, %9 : vector<16x16x128xf32>
    %cst = arith.constant 0.000000e+00 : f32
    %11 = vector.broadcast %cst : f32 to vector<16x16x128xf32>
    %12 = arith.maximumf %10, %11 : vector<16x16x128xf32>
    %13 = arith.truncf %12 : vector<16x16x128xf32> to vector<16x16x128xbf16>
    %cst_7 = arith.constant 0.000000e+00 : bf16
    %14 = vector.broadcast %cst_7 : bf16 to vector<1x18x128xbf16>
    %cst_8 = arith.constant 0.000000e+00 : bf16
    %15 = vector.broadcast %cst_8 : bf16 to vector<16x1x128xbf16>
    %c0_9 = arith.constant 0 : index
    %c0_10 = arith.constant 0 : index
    %c0_11 = arith.constant 0 : index
    %16 = vector.load %arg7[%c0_9, %c0_10, %c0_11] : memref<18x18x128xbf16, #tpu.memory_space<vmem>>, vector<1x18x128xbf16>
    tpu.vector_store %arg7[%c0_9, %c0_10, %c0_11], %14 {strides = array<i32>} : memref<18x18x128xbf16, #tpu.memory_space<vmem>>, vector<1x18x128xbf16>,
    %c17 = arith.constant 17 : index
    %c0_12 = arith.constant 0 : index
    %c0_13 = arith.constant 0 : index
    %17 = vector.load %arg7[%c17, %c0_12, %c0_13] : memref<18x18x128xbf16, #tpu.memory_space<vmem>>, vector<1x18x128xbf16>
    tpu.vector_store %arg7[%c17, %c0_12, %c0_13], %14 {strides = array<i32>} : memref<18x18x128xbf16, #tpu.memory_space<vmem>>, vector<1x18x128xbf16>,
    %c1 = arith.constant 1 : index
    %c0_14 = arith.constant 0 : index
    %c0_15 = arith.constant 0 : index
    %18 = vector.load %arg7[%c1, %c0_14, %c0_15] : memref<18x18x128xbf16, #tpu.memory_space<vmem>>, vector<16x1x128xbf16>
    tpu.vector_store %arg7[%c1, %c0_14, %c0_15], %15 {strides = array<i32>} : memref<18x18x128xbf16, #tpu.memory_space<vmem>>, vector<16x1x128xbf16>,
    %c1_16 = arith.constant 1 : index
    %c17_17 = arith.constant 17 : index
    %c0_18 = arith.constant 0 : index
    %19 = vector.load %arg7[%c1_16, %c17_17, %c0_18] : memref<18x18x128xbf16, #tpu.memory_space<vmem>>, vector<16x1x128xbf16>
    tpu.vector_store %arg7[%c1_16, %c17_17, %c0_18], %15 {strides = array<i32>} : memref<18x18x128xbf16, #tpu.memory_space<vmem>>, vector<16x1x128xbf16>,
    %c1_19 = arith.constant 1 : index
    %c1_20 = arith.constant 1 : index
    %c0_21 = arith.constant 0 : index
    %20 = vector.load %arg7[%c1_19, %c1_20, %c0_21] : memref<18x18x128xbf16, #tpu.memory_space<vmem>>, vector<16x16x128xbf16>
    tpu.vector_store %arg7[%c1_19, %c1_20, %c0_21], %13 {strides = array<i32>} : memref<18x18x128xbf16, #tpu.memory_space<vmem>>, vector<16x16x128xbf16>,
    %c0_22 = arith.constant 0 : index
    %c0_23 = arith.constant 0 : index
    %c0_24 = arith.constant 0 : index
    %21 = vector.load %arg7[%c0_22, %c0_23, %c0_24] : memref<18x18x128xbf16, #tpu.memory_space<vmem>>, vector<16x18x128xbf16>
    %22 = vector.extract_strided_slice %21 {offsets = [0, 0, 0], sizes = [16, 16, 128], strides = [1, 1, 1]} : vector<16x18x128xbf16> to vector<16x16x128xbf16>
    %23 = vector.extract_strided_slice %21 {offsets = [0, 1, 0], sizes = [16, 16, 128], strides = [1, 1, 1]} : vector<16x18x128xbf16> to vector<16x16x128xbf16>
    %24 = vector.extract_strided_slice %21 {offsets = [0, 2, 0], sizes = [16, 16, 128], strides = [1, 1, 1]} : vector<16x18x128xbf16> to vector<16x16x128xbf16>
    %25 = tpu.concatenate %22, %23, %24 in 2 : vector<16x16x128xbf16>, vector<16x16x128xbf16>, vector<16x16x128xbf16> -> vector<16x16x384xbf16>
    %26 = vector.shape_cast %25 : vector<16x16x384xbf16> to vector<256x384xbf16>
    %c0_25 = arith.constant 0 : index
    %c0_26 = arith.constant 0 : index
    %c0_27 = arith.constant 0 : index
    %27 = vector.load %arg4[%c0_25, %c0_26, %c0_27] : memref<3x384x128xbf16, #tpu.memory_space<vmem>>, vector<1x384x128xbf16>
    %28 = vector.shape_cast %27 : vector<1x384x128xbf16> to vector<384x128xbf16>
    %cst_28 = arith.constant dense<0.000000e+00> : vector<256x128xf32>
    %29 = tpu.matmul %26, %28, %cst_28 {dimension_numbers = #tpu.dot_dimension_numbers<[1], [0], [0], [1], [0, 0, 1, 1], [], []>} : vector<256x384xbf16>, vector<384x128xbf16>, vector<256x128xf32> -> vector<256x128xf32>
    %c1_29 = arith.constant 1 : index
    %c0_30 = arith.constant 0 : index
    %c0_31 = arith.constant 0 : index
    %30 = vector.load %arg7[%c1_29, %c0_30, %c0_31] : memref<18x18x128xbf16, #tpu.memory_space<vmem>>, vector<16x18x128xbf16>
    %31 = vector.extract_strided_slice %30 {offsets = [0, 0, 0], sizes = [16, 16, 128], strides = [1, 1, 1]} : vector<16x18x128xbf16> to vector<16x16x128xbf16>
    %32 = vector.extract_strided_slice %30 {offsets = [0, 1, 0], sizes = [16, 16, 128], strides = [1, 1, 1]} : vector<16x18x128xbf16> to vector<16x16x128xbf16>
    %33 = vector.extract_strided_slice %30 {offsets = [0, 2, 0], sizes = [16, 16, 128], strides = [1, 1, 1]} : vector<16x18x128xbf16> to vector<16x16x128xbf16>
    %34 = tpu.concatenate %31, %32, %33 in 2 : vector<16x16x128xbf16>, vector<16x16x128xbf16>, vector<16x16x128xbf16> -> vector<16x16x384xbf16>
    %35 = vector.shape_cast %34 : vector<16x16x384xbf16> to vector<256x384xbf16>
    %c1_32 = arith.constant 1 : index
    %c0_33 = arith.constant 0 : index
    %c0_34 = arith.constant 0 : index
    %36 = vector.load %arg4[%c1_32, %c0_33, %c0_34] : memref<3x384x128xbf16, #tpu.memory_space<vmem>>, vector<1x384x128xbf16>
    %37 = vector.shape_cast %36 : vector<1x384x128xbf16> to vector<384x128xbf16>
    %cst_35 = arith.constant dense<0.000000e+00> : vector<256x128xf32>
    %38 = tpu.matmul %35, %37, %cst_35 {dimension_numbers = #tpu.dot_dimension_numbers<[1], [0], [0], [1], [0, 0, 1, 1], [], []>} : vector<256x384xbf16>, vector<384x128xbf16>, vector<256x128xf32> -> vector<256x128xf32>
    %39 = arith.addf %29, %38 : vector<256x128xf32>
    %c2 = arith.constant 2 : index
    %c0_36 = arith.constant 0 : index
    %c0_37 = arith.constant 0 : index
    %40 = vector.load %arg7[%c2, %c0_36, %c0_37] : memref<18x18x128xbf16, #tpu.memory_space<vmem>>, vector<16x18x128xbf16>
    %41 = vector.extract_strided_slice %40 {offsets = [0, 0, 0], sizes = [16, 16, 128], strides = [1, 1, 1]} : vector<16x18x128xbf16> to vector<16x16x128xbf16>
    %42 = vector.extract_strided_slice %40 {offsets = [0, 1, 0], sizes = [16, 16, 128], strides = [1, 1, 1]} : vector<16x18x128xbf16> to vector<16x16x128xbf16>
    %43 = vector.extract_strided_slice %40 {offsets = [0, 2, 0], sizes = [16, 16, 128], strides = [1, 1, 1]} : vector<16x18x128xbf16> to vector<16x16x128xbf16>
    %44 = tpu.concatenate %41, %42, %43 in 2 : vector<16x16x128xbf16>, vector<16x16x128xbf16>, vector<16x16x128xbf16> -> vector<16x16x384xbf16>
    %45 = vector.shape_cast %44 : vector<16x16x384xbf16> to vector<256x384xbf16>
    %c2_38 = arith.constant 2 : index
    %c0_39 = arith.constant 0 : index
    %c0_40 = arith.constant 0 : index
    %46 = vector.load %arg4[%c2_38, %c0_39, %c0_40] : memref<3x384x128xbf16, #tpu.memory_space<vmem>>, vector<1x384x128xbf16>
    %47 = vector.shape_cast %46 : vector<1x384x128xbf16> to vector<384x128xbf16>
    %cst_41 = arith.constant dense<0.000000e+00> : vector<256x128xf32>
    %48 = tpu.matmul %45, %47, %cst_41 {dimension_numbers = #tpu.dot_dimension_numbers<[1], [0], [0], [1], [0, 0, 1, 1], [], []>} : vector<256x384xbf16>, vector<384x128xbf16>, vector<256x128xf32> -> vector<256x128xf32>
    %49 = arith.addf %39, %48 : vector<256x128xf32>
    %50 = vector.shape_cast %49 : vector<256x128xf32> to vector<1x16x16x128xf32>
    %51 = arith.truncf %50 : vector<1x16x16x128xf32> to vector<1x16x16x128xbf16>
    %c0_42 = arith.constant 0 : index
    %c0_43 = arith.constant 0 : index
    %c0_44 = arith.constant 0 : index
    %c0_45 = arith.constant 0 : index
    %52 = vector.load %arg5[%c0_42, %c0_43, %c0_44, %c0_45] : memref<1x16x16x128xbf16, #tpu.memory_space<vmem>>, vector<1x16x16x128xbf16>
    tpu.vector_store %arg5[%c0_42, %c0_43, %c0_44, %c0_45], %51 {strides = array<i32>} : memref<1x16x16x128xbf16, #tpu.memory_space<vmem>>, vector<1x16x16x128xbf16>,
    %cst_46 = arith.constant dense<0.000000e+00> : vector<128xf32>
    %53 = vector.multi_reduction <add>, %49, %cst_46 [0] : vector<256x128xf32> to vector<128xf32>
    %54 = vector.shape_cast %53 : vector<128xf32> to vector<1x128xf32>
    %c0_47 = arith.constant 0 : index
    %c0_48 = arith.constant 0 : index
    %c0_49 = arith.constant 0 : index
    %55 = vector.load %arg6[%c0_47, %c0_48, %c0_49] : memref<1x8x128xf32, #tpu.memory_space<vmem>>, vector<1x1x128xf32>
    %56 = vector.shape_cast %55 : vector<1x1x128xf32> to vector<1x128xf32>
    %57 = vector.shape_cast %54 : vector<1x128xf32> to vector<1x1x128xf32>
    tpu.vector_store %arg6[%c0_47, %c0_48, %c0_49], %57 {strides = array<i32>} : memref<1x8x128xf32, #tpu.memory_space<vmem>>, vector<1x1x128xf32>,
    %58 = arith.mulf %49, %49 : vector<256x128xf32>
    %cst_50 = arith.constant dense<0.000000e+00> : vector<128xf32>
    %59 = vector.multi_reduction <add>, %58, %cst_50 [0] : vector<256x128xf32> to vector<128xf32>
    %60 = vector.shape_cast %59 : vector<128xf32> to vector<1x128xf32>
    %c0_51 = arith.constant 0 : index
    %c1_52 = arith.constant 1 : index
    %c0_53 = arith.constant 0 : index
    %61 = vector.load %arg6[%c0_51, %c1_52, %c0_53] : memref<1x8x128xf32, #tpu.memory_space<vmem>>, vector<1x1x128xf32>
    %62 = vector.shape_cast %61 : vector<1x1x128xf32> to vector<1x128xf32>
    %63 = vector.shape_cast %60 : vector<1x128xf32> to vector<1x1x128xf32>
    tpu.vector_store %arg6[%c0_51, %c1_52, %c0_53], %63 {strides = array<i32>} : memref<1x8x128xf32, #tpu.memory_space<vmem>>, vector<1x1x128xf32>,
    return
  }
  func.func @transform_0(%arg0: i32) -> (i32, i32, i32, i32) {
    %c0_i32 = arith.constant 0 : i32
    %c0_i32_0 = arith.constant 0 : i32
    %c0_i32_1 = arith.constant 0 : i32
    %c0_i32_2 = arith.constant 0 : i32
    return %arg0, %c0_i32, %c0_i32_0, %c0_i32_1 : i32, i32, i32, i32
  }
  func.func @transform_1(%arg0: i32) -> (i32, i32) {
    %c0_i32 = arith.constant 0 : i32
    %c0_i32_0 = arith.constant 0 : i32
    %c0_i32_1 = arith.constant 0 : i32
    return %c0_i32, %c0_i32_0 : i32, i32
  }
  func.func @transform_2(%arg0: i32) -> (i32, i32) {
    %c0_i32 = arith.constant 0 : i32
    %c0_i32_0 = arith.constant 0 : i32
    %c0_i32_1 = arith.constant 0 : i32
    return %c0_i32, %c0_i32_0 : i32, i32
  }
  func.func @transform_3(%arg0: i32) -> (i32, i32, i32) {
    %c0_i32 = arith.constant 0 : i32
    %c0_i32_0 = arith.constant 0 : i32
    %c0_i32_1 = arith.constant 0 : i32
    %c0_i32_2 = arith.constant 0 : i32
    return %c0_i32, %c0_i32_0, %c0_i32_1 : i32, i32, i32
  }
  func.func @transform_4(%arg0: i32) -> (i32, i32, i32, i32) {
    %c0_i32 = arith.constant 0 : i32
    %c0_i32_0 = arith.constant 0 : i32
    %c0_i32_1 = arith.constant 0 : i32
    %c0_i32_2 = arith.constant 0 : i32
    return %arg0, %c0_i32, %c0_i32_0, %c0_i32_1 : i32, i32, i32, i32
  }
  func.func @transform_5(%arg0: i32) -> (i32, i32, i32) {
    %c0_i32 = arith.constant 0 : i32
    %c0_i32_0 = arith.constant 0 : i32
    %c0_i32_1 = arith.constant 0 : i32
    return %arg0, %c0_i32, %c0_i32_0 : i32, i32, i32
  }
}

</mosaic_0001>

<bundles_post_ra>
// kernel: double_conv.5
= control target key start
LH: loop header
LB: loop body
LE: loop exit
PB: predicated region body
PF: predicated region fallthrough
CT: control target
= control target key end

     0   :  { %s1023_s0 = inlined_call_operand.vmem [shape: bf16[512,128], index: 0, kind: input, shape index: {}]   ;;  %s1024_s1 = inlined_call_operand.vmem [shape: f32[1,128], index: 1, kind: input, shape index: {}]   ;;  %s1025_s2 = inlined_call_operand.vmem [shape: f32[1,128], index: 2, kind: input, shape index: {}]   ;;  %s1026_s3 = inlined_call_operand.vmem [shape: f32[512,128], index: 3, kind: output, shape index: {}]  }
   0x1   :  { %v419_v0 = vld [vmem:[%s1023_s0] sm:$0xff]   ;;  %v546_v4 = vld [vmem:[%s1023_s0 + $0x8] sm:$0xff]   ;;  %v547_v5 = vld [vmem:[%s1023_s0 + $0x10] sm:$0xff]  }
   0x2   :  { %v603_v1 = vld [vmem:[%s1024_s1] ss:$0 sm:$0xff]  ;;  %v420_v2 = vunpack.c.l.bf16 %v419_v0  ;;  %v421_v3 = vunpack.c.h.bf16 %v419_v0  ;;  %v548_v6 = vld [vmem:[%s1023_s0 + $0x18] sm:$0xff]   ;;  %v424_v8 = vunpack.c.l.bf16 %v546_v4  ;;  %v425_v9 = vunpack.c.h.bf16 %v546_v4  ;;  %v550_v33 = vld [vmem:[%s1023_s0 + $0x28] sm:$0xff]  }
   0x3   :  { %v617_v7 = vld [vmem:[%s1025_s2] ss:$0 sm:$0xff]  ;;  %v428_v10 = vunpack.c.l.bf16 %v547_v5  ;;  %v429_v11 = vunpack.c.h.bf16 %v547_v5  ;;  %v432_v14 = vunpack.c.l.bf16 %v548_v6  ;;  %v433_v15 = vunpack.c.h.bf16 %v548_v6  ;;  %v551_v34 = vld [vmem:[%s1023_s0 + $0x30] sm:$0xff]   ;;  %v552_v39 = vld [vmem:[%s1023_s0 + $0x38] sm:$0xff]  }
   0x4   :  { %v149_v12 = vmul.f32 %v420_v2, %v603_v1  ;;  %v150_v13 = vmul.f32 %v421_v3, %v603_v1  ;;  %v151_v16 = vmul.f32 %v424_v8, %v603_v1  ;;  %v152_v17 = vmul.f32 %v425_v9, %v603_v1  ;;  %v549_v28 = vld [vmem:[%s1023_s0 + $0x20] sm:$0xff]   ;;  %v554_v6 = vld [vmem:[%s1023_s0 + $0x48] sm:$0xff]   ;;  %v555_v8 = vld [vmem:[%s1023_s0 + $0x50] sm:$0xff]  }
   0x5   :  { %v153_v18 = vmul.f32 %v428_v10, %v603_v1  ;;  %v154_v19 = vmul.f32 %v429_v11, %v603_v1  ;;  %v155_v22 = vmul.f32 %v432_v14, %v603_v1  ;;  %v156_v23 = vmul.f32 %v433_v15, %v603_v1  ;;  %v553_v0 = vld [vmem:[%s1023_s0 + $0x40] sm:$0xff]  }
   0x6   :  { %v220_v20 = vadd.f32 %v617_v7, %v149_v12  ;;  %v221_v21 = vadd.f32 %v617_v7, %v150_v13  ;;  %v222_v24 = vadd.f32 %v617_v7, %v151_v16  ;;  %v223_v25 = vadd.f32 %v617_v7, %v152_v17  ;;  %v556_v13 = vld [vmem:[%s1023_s0 + $0x58] sm:$0xff]  }
   0x7   :  { %v224_v26 = vadd.f32 %v617_v7, %v153_v18  ;;  %v225_v27 = vadd.f32 %v617_v7, %v154_v19  ;;  %v226_v31 = vadd.f32 %v617_v7, %v155_v22  ;;  %v227_v32 = vadd.f32 %v617_v7, %v156_v23 }
   0x8   :  { %v284_v29 = vmax.f32 %v220_v20, 0.0  ;;  %v285_v30 = vmax.f32 %v221_v21, 0.0  ;;  %v286_v35 = vmax.f32 %v222_v24, 0.0  ;;  %v287_v36 = vmax.f32 %v223_v25, 0.0 }
   0x9   :  { %v288_v37 = vmax.f32 %v224_v26, 0.0  ;;  %v289_v38 = vmax.f32 %v225_v27, 0.0  ;;  %v290_v40 = vmax.f32 %v226_v31, 0.0  ;;  %v291_v41 = vmax.f32 %v227_v32, 0.0 }
   0xa   :  { %348 = vst [vmem:[%s1026_s3] sm:$0xff] %v284_v29  ;;  %349 = vst [vmem:[%s1026_s3 + $0x8] sm:$0xff] %v285_v30  ;;  %v436_v42 = vunpack.c.l.bf16 %v549_v28  ;;  %v437_v43 = vunpack.c.h.bf16 %v549_v28  ;;  %v440_v44 = vunpack.c.l.bf16 %v550_v33  ;;  %v441_v45 = vunpack.c.h.bf16 %v550_v33 }
   0xb   :  { %350 = vst [vmem:[%s1026_s3 + $0x10] sm:$0xff] %v286_v35  ;;  %351 = vst [vmem:[%s1026_s3 + $0x18] sm:$0xff] %v287_v36  ;;  %v444_v46 = vunpack.c.l.bf16 %v551_v34  ;;  %v445_v47 = vunpack.c.h.bf16 %v551_v34  ;;  %v448_v50 = vunpack.c.l.bf16 %v552_v39  ;;  %v449_v51 = vunpack.c.h.bf16 %v552_v39 }
   0xc   :  { %352 = vst [vmem:[%s1026_s3 + $0x20] sm:$0xff] %v288_v37  ;;  %353 = vst [vmem:[%s1026_s3 + $0x28] sm:$0xff] %v289_v38  ;;  %v157_v48 = vmul.f32 %v436_v42, %v603_v1  ;;  %v158_v49 = vmul.f32 %v437_v43, %v603_v1  ;;  %v159_v52 = vmul.f32 %v440_v44, %v603_v1  ;;  %v452_v16 = vunpack.c.l.bf16 %v553_v0  ;;  %v557_v38 = vld [vmem:[%s1023_s0 + $0x60] sm:$0xff]   ;;  %v558_v43 = vld [vmem:[%s1023_s0 + $0x68] sm:$0xff]  }
   0xd   :  { %354 = vst [vmem:[%s1026_s3 + $0x30] sm:$0xff] %v290_v40  ;;  %355 = vst [vmem:[%s1026_s3 + $0x38] sm:$0xff] %v291_v41  ;;  %v160_v53 = vmul.f32 %v441_v45, %v603_v1  ;;  %v161_v54 = vmul.f32 %v444_v46, %v603_v1  ;;  %v162_v55 = vmul.f32 %v445_v47, %v603_v1  ;;  %v453_v17 = vunpack.c.h.bf16 %v553_v0  ;;  %v559_v44 = vld [vmem:[%s1023_s0 + $0x70] sm:$0xff]  }
   0xe   :  { %v228_v56 = vadd.f32 %v617_v7, %v157_v48  ;;  %v229_v57 = vadd.f32 %v617_v7, %v158_v49  ;;  %v163_v58 = vmul.f32 %v448_v50, %v603_v1  ;;  %v164_v59 = vmul.f32 %v449_v51, %v603_v1  ;;  %v560_v49 = vld [vmem:[%s1023_s0 + $0x78] sm:$0xff]  }
   0xf   :  { %v230_v60 = vadd.f32 %v617_v7, %v159_v52  ;;  %v231_v61 = vadd.f32 %v617_v7, %v160_v53  ;;  %v232_v62 = vadd.f32 %v617_v7, %v161_v54  ;;  %v233_v63 = vadd.f32 %v617_v7, %v162_v55 }
  0x10   :  { %v292_v2 = vmax.f32 %v228_v56, 0.0  ;;  %v293_v3 = vmax.f32 %v229_v57, 0.0  ;;  %v234_v4 = vadd.f32 %v617_v7, %v163_v58  ;;  %v235_v5 = vadd.f32 %v617_v7, %v164_v59 }
  0x11   :  { %v294_v9 = vmax.f32 %v230_v60, 0.0  ;;  %v295_v10 = vmax.f32 %v231_v61, 0.0  ;;  %v296_v11 = vmax.f32 %v232_v62, 0.0  ;;  %v297_v12 = vmax.f32 %v233_v63, 0.0 }
  0x12   :  { %356 = vst [vmem:[%s1026_s3 + $0x40] sm:$0xff] %v292_v2  ;;  %357 = vst [vmem:[%s1026_s3 + $0x48] sm:$0xff] %v293_v3  ;;  %v298_v14 = vmax.f32 %v234_v4, 0.0  ;;  %v299_v15 = vmax.f32 %v235_v5, 0.0  ;;  %v456_v18 = vunpack.c.l.bf16 %v554_v6  ;;  %v457_v19 = vunpack.c.h.bf16 %v554_v6 }
  0x13   :  { %358 = vst [vmem:[%s1026_s3 + $0x50] sm:$0xff] %v294_v9  ;;  %359 = vst [vmem:[%s1026_s3 + $0x58] sm:$0xff] %v295_v10  ;;  %v460_v20 = vunpack.c.l.bf16 %v555_v8  ;;  %v461_v21 = vunpack.c.h.bf16 %v555_v8  ;;  %v165_v22 = vmul.f32 %v452_v16, %v603_v1  ;;  %v166_v23 = vmul.f32 %v453_v17, %v603_v1  ;;  %v562_v17 = vld [vmem:[%s1023_s0 + $0x88] sm:$0xff]  }
  0x14   :  { %360 = vst [vmem:[%s1026_s3 + $0x60] sm:$0xff] %v296_v11  ;;  %361 = vst [vmem:[%s1026_s3 + $0x68] sm:$0xff] %v297_v12  ;;  %v464_v24 = vunpack.c.l.bf16 %v556_v13  ;;  %v465_v25 = vunpack.c.h.bf16 %v556_v13  ;;  %v167_v26 = vmul.f32 %v456_v18, %v603_v1  ;;  %v168_v27 = vmul.f32 %v457_v19, %v603_v1  ;;  %v561_v12 = vld [vmem:[%s1023_s0 + $0x80] sm:$0xff]   ;;  %v563_v18 = vld [vmem:[%s1023_s0 + $0x90] sm:$0xff]  }
  0x15   :  { %362 = vst [vmem:[%s1026_s3 + $0x70] sm:$0xff] %v298_v14  ;;  %363 = vst [vmem:[%s1026_s3 + $0x78] sm:$0xff] %v299_v15  ;;  %v169_v28 = vmul.f32 %v460_v20, %v603_v1  ;;  %v170_v29 = vmul.f32 %v461_v21, %v603_v1  ;;  %v236_v30 = vadd.f32 %v617_v7, %v165_v22  ;;  %v468_v52 = vunpack.c.l.bf16 %v557_v38 }
  0x16   :  { %v237_v31 = vadd.f32 %v617_v7, %v166_v23  ;;  %v171_v32 = vmul.f32 %v464_v24, %v603_v1  ;;  %v172_v33 = vmul.f32 %v465_v25, %v603_v1  ;;  %v238_v34 = vadd.f32 %v617_v7, %v167_v26  ;;  %v564_v23 = vld [vmem:[%s1023_s0 + $0x98] sm:$0xff]  }
  0x17   :  { %v239_v35 = vadd.f32 %v617_v7, %v168_v27  ;;  %v240_v36 = vadd.f32 %v617_v7, %v169_v28  ;;  %v241_v37 = vadd.f32 %v617_v7, %v170_v29  ;;  %v300_v39 = vmax.f32 %v236_v30, 0.0 }
  0x18   :  { %v301_v40 = vmax.f32 %v237_v31, 0.0  ;;  %v242_v41 = vadd.f32 %v617_v7, %v171_v32  ;;  %v243_v42 = vadd.f32 %v617_v7, %v172_v33  ;;  %v302_v45 = vmax.f32 %v238_v34, 0.0 }
  0x19   :  { %v303_v46 = vmax.f32 %v239_v35, 0.0  ;;  %v304_v47 = vmax.f32 %v240_v36, 0.0  ;;  %v305_v48 = vmax.f32 %v241_v37, 0.0  ;;  %364 = vst [vmem:[%s1026_s3 + $0x80] sm:$0xff] %v300_v39  ;;  %v469_v53 = vunpack.c.h.bf16 %v557_v38 }
  0x1a   :  { %365 = vst [vmem:[%s1026_s3 + $0x88] sm:$0xff] %v301_v40  ;;  %v306_v50 = vmax.f32 %v242_v41, 0.0  ;;  %v307_v51 = vmax.f32 %v243_v42, 0.0  ;;  %366 = vst [vmem:[%s1026_s3 + $0x90] sm:$0xff] %v302_v45  ;;  %v472_v54 = vunpack.c.l.bf16 %v558_v43  ;;  %v473_v55 = vunpack.c.h.bf16 %v558_v43 }
  0x1b   :  { %367 = vst [vmem:[%s1026_s3 + $0x98] sm:$0xff] %v303_v46  ;;  %368 = vst [vmem:[%s1026_s3 + $0xa0] sm:$0xff] %v304_v47  ;;  %v476_v56 = vunpack.c.l.bf16 %v559_v44  ;;  %v477_v57 = vunpack.c.h.bf16 %v559_v44  ;;  %v173_v58 = vmul.f32 %v468_v52, %v603_v1  ;;  %v174_v59 = vmul.f32 %v469_v53, %v603_v1  ;;  %v566_v53 = vld [vmem:[%s1023_s0 + $0xa8] sm:$0xff]  }
  0x1c   :  { %369 = vst [vmem:[%s1026_s3 + $0xa8] sm:$0xff] %v305_v48  ;;  %370 = vst [vmem:[%s1026_s3 + $0xb0] sm:$0xff] %v306_v50  ;;  %v480_v60 = vunpack.c.l.bf16 %v560_v49  ;;  %v481_v61 = vunpack.c.h.bf16 %v560_v49  ;;  %v175_v62 = vmul.f32 %v472_v54, %v603_v1  ;;  %v176_v63 = vmul.f32 %v473_v55, %v603_v1  ;;  %v565_v48 = vld [vmem:[%s1023_s0 + $0xa0] sm:$0xff]   ;;  %v567_v54 = vld [vmem:[%s1023_s0 + $0xb0] sm:$0xff]  }
  0x1d   :  { %371 = vst [vmem:[%s1026_s3 + $0xb8] sm:$0xff] %v307_v51  ;;  %v177_v0 = vmul.f32 %v476_v56, %v603_v1  ;;  %v178_v2 = vmul.f32 %v477_v57, %v603_v1  ;;  %v244_v3 = vadd.f32 %v617_v7, %v173_v58  ;;  %v245_v4 = vadd.f32 %v617_v7, %v174_v59  ;;  %v568_v59 = vld [vmem:[%s1023_s0 + $0xb8] sm:$0xff]  }
  0x1e   :  { %v179_v5 = vmul.f32 %v480_v60, %v603_v1  ;;  %v180_v6 = vmul.f32 %v481_v61, %v603_v1  ;;  %v246_v8 = vadd.f32 %v617_v7, %v175_v62  ;;  %v247_v9 = vadd.f32 %v617_v7, %v176_v63 }
  0x1f   :  { %v248_v10 = vadd.f32 %v617_v7, %v177_v0  ;;  %v249_v11 = vadd.f32 %v617_v7, %v178_v2  ;;  %v308_v13 = vmax.f32 %v244_v3, 0.0  ;;  %v309_v14 = vmax.f32 %v245_v4, 0.0 }
  0x20   :  { %v250_v15 = vadd.f32 %v617_v7, %v179_v5  ;;  %v251_v16 = vadd.f32 %v617_v7, %v180_v6  ;;  %v310_v19 = vmax.f32 %v246_v8, 0.0  ;;  %v311_v20 = vmax.f32 %v247_v9, 0.0 }
  0x21   :  { %v312_v21 = vmax.f32 %v248_v10, 0.0  ;;  %v313_v22 = vmax.f32 %v249_v11, 0.0  ;;  %372 = vst [vmem:[%s1026_s3 + $0xc0] sm:$0xff] %v308_v13  ;;  %373 = vst [vmem:[%s1026_s3 + $0xc8] sm:$0xff] %v309_v14  ;;  %v484_v26 = vunpack.c.l.bf16 %v561_v12  ;;  %v485_v27 = vunpack.c.h.bf16 %v561_v12 }
  0x22   :  { %v314_v24 = vmax.f32 %v250_v15, 0.0  ;;  %v315_v25 = vmax.f32 %v251_v16, 0.0  ;;  %374 = vst [vmem:[%s1026_s3 + $0xd0] sm:$0xff] %v310_v19  ;;  %375 = vst [vmem:[%s1026_s3 + $0xd8] sm:$0xff] %v311_v20  ;;  %v488_v28 = vunpack.c.l.bf16 %v562_v17  ;;  %v489_v29 = vunpack.c.h.bf16 %v562_v17 }
  0x23   :  { %376 = vst [vmem:[%s1026_s3 + $0xe0] sm:$0xff] %v312_v21  ;;  %377 = vst [vmem:[%s1026_s3 + $0xe8] sm:$0xff] %v313_v22  ;;  %v492_v30 = vunpack.c.l.bf16 %v563_v18  ;;  %v493_v31 = vunpack.c.h.bf16 %v563_v18  ;;  %v181_v32 = vmul.f32 %v484_v26, %v603_v1  ;;  %v182_v33 = vmul.f32 %v485_v27, %v603_v1  ;;  %v569_v22 = vld [vmem:[%s1023_s0 + $0xc0] sm:$0xff]   ;;  %v570_v27 = vld [vmem:[%s1023_s0 + $0xc8] sm:$0xff]  }
  0x24   :  { %378 = vst [vmem:[%s1026_s3 + $0xf0] sm:$0xff] %v314_v24  ;;  %379 = vst [vmem:[%s1026_s3 + $0xf8] sm:$0xff] %v315_v25  ;;  %v496_v34 = vunpack.c.l.bf16 %v564_v23  ;;  %v497_v35 = vunpack.c.h.bf16 %v564_v23  ;;  %v183_v36 = vmul.f32 %v488_v28, %v603_v1  ;;  %v184_v37 = vmul.f32 %v489_v29, %v603_v1  ;;  %v571_v28 = vld [vmem:[%s1023_s0 + $0xd0] sm:$0xff]  }
  0x25   :  { %v185_v38 = vmul.f32 %v492_v30, %v603_v1  ;;  %v186_v39 = vmul.f32 %v493_v31, %v603_v1  ;;  %v252_v40 = vadd.f32 %v617_v7, %v181_v32  ;;  %v253_v41 = vadd.f32 %v617_v7, %v182_v33  ;;  %v572_v33 = vld [vmem:[%s1023_s0 + $0xd8] sm:$0xff]  }
  0x26   :  { %v187_v42 = vmul.f32 %v496_v34, %v603_v1  ;;  %v188_v43 = vmul.f32 %v497_v35, %v603_v1  ;;  %v254_v44 = vadd.f32 %v617_v7, %v183_v36  ;;  %v255_v45 = vadd.f32 %v617_v7, %v184_v37 }
  0x27   :  { %v256_v46 = vadd.f32 %v617_v7, %v185_v38  ;;  %v257_v47 = vadd.f32 %v617_v7, %v186_v39  ;;  %v316_v49 = vmax.f32 %v252_v40, 0.0  ;;  %v317_v50 = vmax.f32 %v253_v41, 0.0 }
  0x28   :  { %v258_v51 = vadd.f32 %v617_v7, %v187_v42  ;;  %v259_v52 = vadd.f32 %v617_v7, %v188_v43  ;;  %v318_v55 = vmax.f32 %v254_v44, 0.0  ;;  %v319_v56 = vmax.f32 %v255_v45, 0.0 }
  0x29   :  { %v320_v57 = vmax.f32 %v256_v46, 0.0  ;;  %v321_v58 = vmax.f32 %v257_v47, 0.0  ;;  %380 = vst [vmem:[%s1026_s3 + $0x100] sm:$0xff] %v316_v49  ;;  %381 = vst [vmem:[%s1026_s3 + $0x108] sm:$0xff] %v317_v50  ;;  %v500_v62 = vunpack.c.l.bf16 %v565_v48  ;;  %v501_v63 = vunpack.c.h.bf16 %v565_v48 }
  0x2a   :  { %v322_v60 = vmax.f32 %v258_v51, 0.0  ;;  %v323_v61 = vmax.f32 %v259_v52, 0.0  ;;  %382 = vst [vmem:[%s1026_s3 + $0x110] sm:$0xff] %v318_v55  ;;  %383 = vst [vmem:[%s1026_s3 + $0x118] sm:$0xff] %v319_v56  ;;  %v504_v0 = vunpack.c.l.bf16 %v566_v53  ;;  %v505_v2 = vunpack.c.h.bf16 %v566_v53 }
  0x2b   :  { %384 = vst [vmem:[%s1026_s3 + $0x120] sm:$0xff] %v320_v57  ;;  %385 = vst [vmem:[%s1026_s3 + $0x128] sm:$0xff] %v321_v58  ;;  %v508_v3 = vunpack.c.l.bf16 %v567_v54  ;;  %v509_v4 = vunpack.c.h.bf16 %v567_v54  ;;  %v189_v5 = vmul.f32 %v500_v62, %v603_v1  ;;  %v190_v6 = vmul.f32 %v501_v63, %v603_v1  ;;  %v573_v58 = vld [vmem:[%s1023_s0 + $0xe0] sm:$0xff]   ;;  %v574_v63 = vld [vmem:[%s1023_s0 + $0xe8] sm:$0xff]  }
  0x2c   :  { %386 = vst [vmem:[%s1026_s3 + $0x130] sm:$0xff] %v322_v60  ;;  %387 = vst [vmem:[%s1026_s3 + $0x138] sm:$0xff] %v323_v61  ;;  %v512_v8 = vunpack.c.l.bf16 %v568_v59  ;;  %v513_v9 = vunpack.c.h.bf16 %v568_v59  ;;  %v191_v10 = vmul.f32 %v504_v0, %v603_v1  ;;  %v192_v11 = vmul.f32 %v505_v2, %v603_v1  ;;  %v575_v0 = vld [vmem:[%s1023_s0 + $0xf0] sm:$0xff]  }
  0x2d   :  { %v193_v12 = vmul.f32 %v508_v3, %v603_v1  ;;  %v194_v13 = vmul.f32 %v509_v4, %v603_v1  ;;  %v260_v14 = vadd.f32 %v617_v7, %v189_v5  ;;  %v261_v15 = vadd.f32 %v617_v7, %v190_v6  ;;  %v576_v6 = vld [vmem:[%s1023_s0 + $0xf8] sm:$0xff]  }
  0x2e   :  { %v195_v16 = vmul.f32 %v512_v8, %v603_v1  ;;  %v196_v17 = vmul.f32 %v513_v9, %v603_v1  ;;  %v262_v18 = vadd.f32 %v617_v7, %v191_v10  ;;  %v263_v19 = vadd.f32 %v617_v7, %v192_v11 }
  0x2f   :  { %v264_v20 = vadd.f32 %v617_v7, %v193_v12  ;;  %v265_v21 = vadd.f32 %v617_v7, %v194_v13  ;;  %v324_v23 = vmax.f32 %v260_v14, 0.0  ;;  %v325_v24 = vmax.f32 %v261_v15, 0.0 }
  0x30   :  { %v266_v25 = vadd.f32 %v617_v7, %v195_v16  ;;  %v267_v26 = vadd.f32 %v617_v7, %v196_v17  ;;  %v326_v29 = vmax.f32 %v262_v18, 0.0  ;;  %v327_v30 = vmax.f32 %v263_v19, 0.0 }
  0x31   :  { %v328_v31 = vmax.f32 %v264_v20, 0.0  ;;  %v329_v32 = vmax.f32 %v265_v21, 0.0  ;;  %388 = vst [vmem:[%s1026_s3 + $0x140] sm:$0xff] %v324_v23  ;;  %389 = vst [vmem:[%s1026_s3 + $0x148] sm:$0xff] %v325_v24  ;;  %v516_v36 = vunpack.c.l.bf16 %v569_v22  ;;  %v517_v37 = vunpack.c.h.bf16 %v569_v22 }
  0x32   :  { %v330_v34 = vmax.f32 %v266_v25, 0.0  ;;  %v331_v35 = vmax.f32 %v267_v26, 0.0  ;;  %390 = vst [vmem:[%s1026_s3 + $0x150] sm:$0xff] %v326_v29  ;;  %391 = vst [vmem:[%s1026_s3 + $0x158] sm:$0xff] %v327_v30  ;;  %v520_v38 = vunpack.c.l.bf16 %v570_v27  ;;  %v521_v39 = vunpack.c.h.bf16 %v570_v27 }
  0x33   :  { %392 = vst [vmem:[%s1026_s3 + $0x160] sm:$0xff] %v328_v31  ;;  %393 = vst [vmem:[%s1026_s3 + $0x168] sm:$0xff] %v329_v32  ;;  %v524_v40 = vunpack.c.l.bf16 %v571_v28  ;;  %v525_v41 = vunpack.c.h.bf16 %v571_v28  ;;  %v197_v42 = vmul.f32 %v516_v36, %v603_v1  ;;  %v198_v43 = vmul.f32 %v517_v37, %v603_v1 }
  0x34   :  { %394 = vst [vmem:[%s1026_s3 + $0x170] sm:$0xff] %v330_v34  ;;  %395 = vst [vmem:[%s1026_s3 + $0x178] sm:$0xff] %v331_v35  ;;  %v528_v44 = vunpack.c.l.bf16 %v572_v33  ;;  %v529_v45 = vunpack.c.h.bf16 %v572_v33  ;;  %v199_v46 = vmul.f32 %v520_v38, %v603_v1  ;;  %v200_v47 = vmul.f32 %v521_v39, %v603_v1 }
  0x35   :  { %v201_v48 = vmul.f32 %v524_v40, %v603_v1  ;;  %v202_v49 = vmul.f32 %v525_v41, %v603_v1  ;;  %v268_v50 = vadd.f32 %v617_v7, %v197_v42  ;;  %v269_v51 = vadd.f32 %v617_v7, %v198_v43 }
  0x36   :  { %v203_v52 = vmul.f32 %v528_v44, %v603_v1  ;;  %v204_v53 = vmul.f32 %v529_v45, %v603_v1  ;;  %v270_v54 = vadd.f32 %v617_v7, %v199_v46  ;;  %v271_v55 = vadd.f32 %v617_v7, %v200_v47 }
  0x37   :  { %v272_v56 = vadd.f32 %v617_v7, %v201_v48  ;;  %v273_v57 = vadd.f32 %v617_v7, %v202_v49  ;;  %v332_v59 = vmax.f32 %v268_v50, 0.0  ;;  %v333_v60 = vmax.f32 %v269_v51, 0.0 }
  0x38   :  { %v274_v61 = vadd.f32 %v617_v7, %v203_v52  ;;  %v275_v62 = vadd.f32 %v617_v7, %v204_v53  ;;  %v334_v2 = vmax.f32 %v270_v54, 0.0  ;;  %v335_v3 = vmax.f32 %v271_v55, 0.0 }
  0x39   :  { %v336_v4 = vmax.f32 %v272_v56, 0.0  ;;  %v337_v5 = vmax.f32 %v273_v57, 0.0  ;;  %396 = vst [vmem:[%s1026_s3 + $0x180] sm:$0xff] %v332_v59  ;;  %397 = vst [vmem:[%s1026_s3 + $0x188] sm:$0xff] %v333_v60  ;;  %v532_v10 = vunpack.c.l.bf16 %v573_v58  ;;  %v533_v11 = vunpack.c.h.bf16 %v573_v58 }
  0x3a   :  { %v338_v8 = vmax.f32 %v274_v61, 0.0  ;;  %v339_v9 = vmax.f32 %v275_v62, 0.0  ;;  %398 = vst [vmem:[%s1026_s3 + $0x190] sm:$0xff] %v334_v2  ;;  %399 = vst [vmem:[%s1026_s3 + $0x198] sm:$0xff] %v335_v3  ;;  %v536_v12 = vunpack.c.l.bf16 %v574_v63  ;;  %v537_v13 = vunpack.c.h.bf16 %v574_v63 }
  0x3b   :  { %400 = vst [vmem:[%s1026_s3 + $0x1a0] sm:$0xff] %v336_v4  ;;  %401 = vst [vmem:[%s1026_s3 + $0x1a8] sm:$0xff] %v337_v5  ;;  %v540_v14 = vunpack.c.l.bf16 %v575_v0  ;;  %v541_v15 = vunpack.c.h.bf16 %v575_v0  ;;  %v205_v16 = vmul.f32 %v532_v10, %v603_v1  ;;  %v206_v17 = vmul.f32 %v533_v11, %v603_v1 }
  0x3c   :  { %402 = vst [vmem:[%s1026_s3 + $0x1b0] sm:$0xff] %v338_v8  ;;  %403 = vst [vmem:[%s1026_s3 + $0x1b8] sm:$0xff] %v339_v9  ;;  %v544_v18 = vunpack.c.l.bf16 %v576_v6  ;;  %v545_v19 = vunpack.c.h.bf16 %v576_v6  ;;  %v207_v20 = vmul.f32 %v536_v12, %v603_v1  ;;  %v208_v21 = vmul.f32 %v537_v13, %v603_v1 }
  0x3d   :  { %v209_v22 = vmul.f32 %v540_v14, %v603_v1  ;;  %v210_v23 = vmul.f32 %v541_v15, %v603_v1  ;;  %v276_v24 = vadd.f32 %v617_v7, %v205_v16  ;;  %v277_v25 = vadd.f32 %v617_v7, %v206_v17 }
  0x3e   :  { %v211_v26 = vmul.f32 %v544_v18, %v603_v1  ;;  %v212_v27 = vmul.f32 %v545_v19, %v603_v1  ;;  %v278_v28 = vadd.f32 %v617_v7, %v207_v20  ;;  %v279_v29 = vadd.f32 %v617_v7, %v208_v21 }
  0x3f   :  { %v280_v30 = vadd.f32 %v617_v7, %v209_v22  ;;  %v281_v31 = vadd.f32 %v617_v7, %v210_v23  ;;  %v340_v32 = vmax.f32 %v276_v24, 0.0  ;;  %v341_v33 = vmax.f32 %v277_v25, 0.0 }
  0x40   :  { %v282_v34 = vadd.f32 %v617_v7, %v211_v26  ;;  %v283_v35 = vadd.f32 %v617_v7, %v212_v27  ;;  %v342_v36 = vmax.f32 %v278_v28, 0.0  ;;  %v343_v37 = vmax.f32 %v279_v29, 0.0 }
  0x41   :  { %v344_v38 = vmax.f32 %v280_v30, 0.0  ;;  %v345_v39 = vmax.f32 %v281_v31, 0.0  ;;  %404 = vst [vmem:[%s1026_s3 + $0x1c0] sm:$0xff] %v340_v32  ;;  %405 = vst [vmem:[%s1026_s3 + $0x1c8] sm:$0xff] %v341_v33 }
  0x42   :  { %v346_v1 = vmax.f32 %v282_v34, 0.0  ;;  %v347_v40 = vmax.f32 %v283_v35, 0.0  ;;  %406 = vst [vmem:[%s1026_s3 + $0x1d0] sm:$0xff] %v342_v36  ;;  %407 = vst [vmem:[%s1026_s3 + $0x1d8] sm:$0xff] %v343_v37 }
  0x43   :  { %408 = vst [vmem:[%s1026_s3 + $0x1e0] sm:$0xff] %v344_v38  ;;  %409 = vst [vmem:[%s1026_s3 + $0x1e8] sm:$0xff] %v345_v39 }
  0x44   :  { %410 = vst [vmem:[%s1026_s3 + $0x1f0] sm:$0xff] %v346_v1  ;;  %411 = vst [vmem:[%s1026_s3 + $0x1f8] sm:$0xff] %v347_v40 }

// kernel: double_conv.3
= control target key start
LH: loop header
LB: loop body
LE: loop exit
PB: predicated region body
PF: predicated region fallthrough
CT: control target
= control target key end

     0   :  { %vm355_vm0 = vcmask 1041408   ;;  %vm258_vm1 = vcmask 293888   ;;  %s2165_s1 = inlined_call_operand.vmem [shape: bf16[36,128], index: 1, kind: input, shape index: {}]   ;;  %s2166_s0 = inlined_call_operand.vmem [shape: bf16[512,36], index: 0, kind: input, shape index: {}]   ;;  %s2167_s2 = inlined_call_operand.vmem [shape: bf16[512,128], index: 2, kind: output, shape index: {0}]   ;;  %s2168_s3 = inlined_call_operand.vmem [shape: f32[1,8,128], index: 3, kind: output, shape index: {1}]  }
   0x1   :  { %v1679_v0 = vld [vmem:[%s2165_s1 + $0x10] ss:$0 sps:$4 sm:$0x33]   ;;  %v1680_v1 = vld [vmem:[%s2165_s1 + $0x8] sm:$0xff]   ;;  %v1682_v3 = vld [vmem:[%s2166_s0] sm:$0xff]  }
   0x2   :  { %1677 = vmatprep.subr.msk.bf16.mxu0 %vm355_vm0, %v1679_v0  ;;  %v357_v2 = vsel %vm355_vm0, %v1679_v0, 0  ;;  %1678 = vmatprep.subr.msk.bf16.mxu1 %vm355_vm0, %v1679_v0  ;;  %v1681_v4 = vld [vmem:[%s2165_s1] sm:$0xff]   ;;  %v1683_v5 = vld [vmem:[%s2166_s0 + $0x8] sm:$0xff]   ;;  %v1684_v6 = vld [vmem:[%s2166_s0 + $0x10] sm:$0xff]  }
   0x3   :  { %1602 = vmatpush3.bf16.msra.mxu0 %v357_v2  ;;  %1674 = vmatpush3.bf16.msra.mxu1 %v357_v2  ;;  %v1685_v7 = vld [vmem:[%s2166_s0 + $0x18] sm:$0xff]   ;;  %v1686_v8 = vld [vmem:[%s2166_s0 + $0x20] sm:$0xff]   ;;  %v1699_v10 = vld [vmem:[%s2166_s0 + $0x88] sm:$0xff]  }
   0x4   :  { %1603 = vmatprep.subr.bf16.mxu0 %v1680_v1  ;;  %1672 = vmatprep.subr.bf16.mxu1 %v1680_v1  ;;  %v1698_v9 = vld [vmem:[%s2166_s0 + $0x80] sm:$0xff]   ;;  %v1700_v11 = vld [vmem:[%s2166_s0 + $0x90] sm:$0xff]   ;;  %v1687_v12 = vld [vmem:[%s2166_s0 + $0x28] sm:$0xff]  }
   0x5   :  { %1607 = vmatprep.mubr.msk.bf16.mxu0 %vm258_vm1, %v1682_v3  ;;  %1639 = vmatprep.mubr.msk.bf16.mxu1 %vm258_vm1, %v1698_v9  ;;  %v1688_v13 = vld [vmem:[%s2166_s0 + $0x30] sm:$0xff]   ;;  %v1701_v14 = vld [vmem:[%s2166_s0 + $0x98] sm:$0xff]   ;;  %v1702_v15 = vld [vmem:[%s2166_s0 + $0xa0] sm:$0xff]  }
   0x6   :  { %v1689_v16 = vld [vmem:[%s2166_s0 + $0x38] sm:$0xff]   ;;  %v1703_v17 = vld [vmem:[%s2166_s0 + $0xa8] sm:$0xff]   ;;  %v1690_v18 = vld [vmem:[%s2166_s0 + $0x40] sm:$0xff]  }
   0x7   :  { %1604 = vmatpush3.bf16.msra.mxu0 %v1680_v1  ;;  %1675 = vmatpush3.bf16.msra.mxu1 %v1680_v1  ;;  %v1704_v19 = vld [vmem:[%s2166_s0 + $0xb0] sm:$0xff]   ;;  %v1691_v20 = vld [vmem:[%s2166_s0 + $0x48] sm:$0xff]   ;;  %v1705_v21 = vld [vmem:[%s2166_s0 + $0xb8] sm:$0xff]  }
   0x8   :  { %1605 = vmatprep.subr.bf16.mxu0 %v1681_v4  ;;  %1673 = vmatprep.subr.bf16.mxu1 %v1681_v4  ;;  %v1692_v22 = vld [vmem:[%s2166_s0 + $0x50] sm:$0xff]   ;;  %v1706_v23 = vld [vmem:[%s2166_s0 + $0xc0] sm:$0xff]   ;;  %v1693_v24 = vld [vmem:[%s2166_s0 + $0x58] sm:$0xff]  }
   0x9   :  { %v1707_v25 = vld [vmem:[%s2166_s0 + $0xc8] sm:$0xff]   ;;  %v1694_v26 = vld [vmem:[%s2166_s0 + $0x60] sm:$0xff]   ;;  %v1708_v27 = vld [vmem:[%s2166_s0 + $0xd0] sm:$0xff]  }
   0xa   :  { %v1695_v28 = vld [vmem:[%s2166_s0 + $0x68] sm:$0xff]   ;;  %v1709_v29 = vld [vmem:[%s2166_s0 + $0xd8] sm:$0xff]   ;;  %v1696_v30 = vld [vmem:[%s2166_s0 + $0x70] sm:$0xff]  }
   0xb   :  { %1606 = vmatpush3.bf16.msra.mxu0 %v1681_v4  ;;  %1676 = vmatpush3.bf16.msra.mxu1 %v1681_v4  ;;  %v1710_v31 = vld [vmem:[%s2166_s0 + $0xe0] sm:$0xff]   ;;  %v1697_v32 = vld [vmem:[%s2166_s0 + $0x78] sm:$0xff]   ;;  %v1711_v33 = vld [vmem:[%s2166_s0 + $0xe8] sm:$0xff]  }
   0xc   :  { %v1712_v34 = vld [vmem:[%s2166_s0 + $0xf0] sm:$0xff]   ;;  %v1713_v35 = vld [vmem:[%s2166_s0 + $0xf8] sm:$0xff]  }
   0xe   :  { %1608 = vmatmul.mubr.msk.bf16.vlgmr.msra.gmra.mxu0 %vm258_vm1, %v1683_v5  ;;  %1640 = vmatmul.mubr.msk.bf16.vlgmr.msra.gmra.mxu1 %vm258_vm1, %v1699_v10 }
   0xf   :  { %1611 = vmatprep.mubr.msk.bf16.mxu0 %vm258_vm1, %v1684_v6  ;;  %1643 = vmatprep.mubr.msk.bf16.mxu1 %vm258_vm1, %v1700_v11 }
  0x16   :  { %1612 = vmatmul.mubr.msk.bf16.gmra.mxu0 %vm258_vm1, %v1685_v7  ;;  %1644 = vmatmul.mubr.msk.bf16.gmra.mxu1 %vm258_vm1, %v1701_v14 }
  0x17   :  { %1615 = vmatprep.mubr.msk.bf16.mxu0 %vm258_vm1, %v1686_v8  ;;  %1647 = vmatprep.mubr.msk.bf16.mxu1 %vm258_vm1, %v1702_v15 }
  0x1e   :  { %1616 = vmatmul.mubr.msk.bf16.gmra.mxu0 %vm258_vm1, %v1687_v12  ;;  %1648 = vmatmul.mubr.msk.bf16.gmra.mxu1 %vm258_vm1, %v1703_v17 }
  0x1f   :  { %1619 = vmatprep.mubr.msk.bf16.mxu0 %vm258_vm1, %v1688_v13  ;;  %1651 = vmatprep.mubr.msk.bf16.mxu1 %vm258_vm1, %v1704_v19 }
  0x26   :  { %1620 = vmatmul.mubr.msk.bf16.gmra.mxu0 %vm258_vm1, %v1689_v16  ;;  %1652 = vmatmul.mubr.msk.bf16.gmra.mxu1 %vm258_vm1, %v1705_v21 }
  0x27   :  { %1623 = vmatprep.mubr.msk.bf16.mxu0 %vm258_vm1, %v1690_v18  ;;  %1655 = vmatprep.mubr.msk.bf16.mxu1 %vm258_vm1, %v1706_v23 }
  0x2e   :  { %1624 = vmatmul.mubr.msk.bf16.gmra.mxu0 %vm258_vm1, %v1691_v20  ;;  %1656 = vmatmul.mubr.msk.bf16.gmra.mxu1 %vm258_vm1, %v1707_v25 }
  0x2f   :  { %1627 = vmatprep.mubr.msk.bf16.mxu0 %vm258_vm1, %v1692_v22  ;;  %1659 = vmatprep.mubr.msk.bf16.mxu1 %vm258_vm1, %v1708_v27 }
  0x36   :  { %1628 = vmatmul.mubr.msk.bf16.gmra.mxu0 %vm258_vm1, %v1693_v24  ;;  %1660 = vmatmul.mubr.msk.bf16.gmra.mxu1 %vm258_vm1, %v1709_v29 }
  0x37   :  { %1631 = vmatprep.mubr.msk.bf16.mxu0 %vm258_vm1, %v1694_v26  ;;  %1663 = vmatprep.mubr.msk.bf16.mxu1 %vm258_vm1, %v1710_v31 }
  0x3e   :  { %1632 = vmatmul.mubr.msk.bf16.gmra.mxu0 %vm258_vm1, %v1695_v28  ;;  %1664 = vmatmul.mubr.msk.bf16.gmra.mxu1 %vm258_vm1, %v1711_v33 }
  0x3f   :  { %1635 = vmatprep.mubr.msk.bf16.mxu0 %vm258_vm1, %v1696_v30  ;;  %1667 = vmatprep.mubr.msk.bf16.mxu1 %vm258_vm1, %v1712_v34 }
  0x46   :  { %1636 = vmatmul.mubr.msk.bf16.gmra.mxu0 %vm258_vm1, %v1697_v32  ;;  %1668 = vmatmul.mubr.msk.bf16.gmra.mxu1 %vm258_vm1, %v1713_v35 }
  0xce   :  { %v1609_v36 = vpop.f32.mrf.mxu0  ;;  %v1874_v46 = vpop.f32.mrf.mxu1 }
  0xcf   :  { %v1040_v47 = vmul.f32 %v1609_v36, %v1609_v36 }
  0xd0   :  { %v393_v37 = vpop.f32.mrf.mxu0  ;;  %v1879_v51 = vpop.f32.mrf.mxu1 }
  0xd1   :  { %v1038_v41 = vmul.f32 %v393_v37, %v393_v37 }
  0xd2   :  { %v1610_v38 = vpop.f32.mrf.mxu0  ;;  %v1881_v56 = vpop.f32.mrf.mxu1 }
  0xd3   :  { %v1383_v39 = vpack.c.bf16 %v1610_v38, %v1609_v36  ;;  %v1041_v52 = vmul.f32 %v1610_v38, %v1610_v38  ;;  %v1463_v62 = vpack.c.bf16 %v1881_v56, %v1874_v46 }
  0xd4   :  { %v396_v40 = vpop.f32.mrf.mxu0  ;;  %v1885_v63 = vpop.f32.mrf.mxu1 }
  0xd5   :  { %1535 = vst [vmem:[%s2167_s2 + $0x8] sm:$0xff] %v1383_v39   ;;  %v1378_v42 = vpack.c.bf16 %v396_v40, %v393_v37  ;;  %v968_v43 = vadd.f32 %v396_v40, %v393_v37  ;;  %v1039_v44 = vmul.f32 %v396_v40, %v396_v40  ;;  %1551 = vst [vmem:[%s2167_s2 + $0x88] sm:$0xff] %v1463_v62  }
  0xd6   :  { %v1613_v45 = vpop.f32.mrf.mxu0  ;;  %v1458_v5 = vpack.c.bf16 %v1885_v63, %v1879_v51  ;;  %v1895_v6 = vpop.f32.mrf.mxu1 }
  0xd7   :  { %1379 = vst [vmem:[%s2167_s2] sm:$0xff] %v1378_v42   ;;  %v969_v48 = vadd.f32 %v1609_v36, %v968_v43  ;;  %v1102_v49 = vadd.f32 %v1039_v44, %v1038_v41  ;;  %v1044_v7 = vmul.f32 %v1613_v45, %v1613_v45 }
  0xd8   :  { %v409_v50 = vpop.f32.mrf.mxu0  ;;  %1550 = vst [vmem:[%s2167_s2 + $0x80] sm:$0xff] %v1458_v5   ;;  %v1903_v11 = vpop.f32.mrf.mxu1 }
  0xd9   :  { %v1103_v53 = vadd.f32 %v1102_v49, %v1040_v47  ;;  %v970_v54 = vadd.f32 %v1610_v38, %v969_v48  ;;  %v1042_v58 = vmul.f32 %v409_v50, %v409_v50 }
  0xda   :  { %v1614_v55 = vpop.f32.mrf.mxu0  ;;  %v1905_v16 = vpop.f32.mrf.mxu1 }
  0xdb   :  { %v971_v57 = vadd.f32 %v970_v54, %v409_v50  ;;  %v1104_v59 = vadd.f32 %v1103_v53, %v1041_v52  ;;  %v1393_v60 = vpack.c.bf16 %v1614_v55, %v1613_v45  ;;  %v1045_v12 = vmul.f32 %v1614_v55, %v1614_v55 }
  0xdc   :  { %v412_v61 = vpop.f32.mrf.mxu0  ;;  %v1473_v22 = vpack.c.bf16 %v1905_v16, %v1895_v6  ;;  %v1909_v23 = vpop.f32.mrf.mxu1 }
  0xdd   :  { %v1105_v0 = vadd.f32 %v1104_v59, %v1042_v58  ;;  %1537 = vst [vmem:[%s2167_s2 + $0x18] sm:$0xff] %v1393_v60   ;;  %v1388_v1 = vpack.c.bf16 %v412_v61, %v409_v50  ;;  %v972_v2 = vadd.f32 %v971_v57, %v412_v61  ;;  %v1043_v3 = vmul.f32 %v412_v61, %v412_v61 }
  0xde   :  { %v1617_v4 = vpop.f32.mrf.mxu0  ;;  %1553 = vst [vmem:[%s2167_s2 + $0x98] sm:$0xff] %v1473_v22   ;;  %v1468_v29 = vpack.c.bf16 %v1909_v23, %v1903_v11  ;;  %v1919_v30 = vpop.f32.mrf.mxu1 }
  0xdf   :  { %1536 = vst [vmem:[%s2167_s2 + $0x10] sm:$0xff] %v1388_v1   ;;  %v973_v8 = vadd.f32 %v1613_v45, %v972_v2  ;;  %v1106_v9 = vadd.f32 %v1105_v0, %v1043_v3  ;;  %v1048_v31 = vmul.f32 %v1617_v4, %v1617_v4 }
  0xe0   :  { %v425_v10 = vpop.f32.mrf.mxu0  ;;  %1552 = vst [vmem:[%s2167_s2 + $0x90] sm:$0xff] %v1468_v29   ;;  %v1927_v35 = vpop.f32.mrf.mxu1 }
  0xe1   :  { %v1107_v13 = vadd.f32 %v1106_v9, %v1044_v7  ;;  %v974_v14 = vadd.f32 %v1614_v55, %v973_v8  ;;  %v1046_v18 = vmul.f32 %v425_v10, %v425_v10 }
  0xe2   :  { %v1618_v15 = vpop.f32.mrf.mxu0  ;;  %v1929_v40 = vpop.f32.mrf.mxu1 }
  0xe3   :  { %v975_v17 = vadd.f32 %v974_v14, %v425_v10  ;;  %v1108_v19 = vadd.f32 %v1107_v13, %v1045_v12  ;;  %v1403_v20 = vpack.c.bf16 %v1618_v15, %v1617_v4  ;;  %v1049_v36 = vmul.f32 %v1618_v15, %v1618_v15 }
  0xe4   :  { %v428_v21 = vpop.f32.mrf.mxu0  ;;  %v1483_v47 = vpack.c.bf16 %v1929_v40, %v1919_v30  ;;  %v1933_v48 = vpop.f32.mrf.mxu1 }
  0xe5   :  { %v1109_v24 = vadd.f32 %v1108_v19, %v1046_v18  ;;  %1539 = vst [vmem:[%s2167_s2 + $0x28] sm:$0xff] %v1403_v20   ;;  %v1398_v25 = vpack.c.bf16 %v428_v21, %v425_v10  ;;  %v976_v26 = vadd.f32 %v975_v17, %v428_v21  ;;  %v1047_v27 = vmul.f32 %v428_v21, %v428_v21 }
  0xe6   :  { %v1621_v28 = vpop.f32.mrf.mxu0  ;;  %1555 = vst [vmem:[%s2167_s2 + $0xa8] sm:$0xff] %v1483_v47   ;;  %v1478_v55 = vpack.c.bf16 %v1933_v48, %v1927_v35  ;;  %v1943_v57 = vpop.f32.mrf.mxu1 }
  0xe7   :  { %1538 = vst [vmem:[%s2167_s2 + $0x20] sm:$0xff] %v1398_v25   ;;  %v977_v32 = vadd.f32 %v1617_v4, %v976_v26  ;;  %v1110_v33 = vadd.f32 %v1109_v24, %v1047_v27  ;;  %v1052_v58 = vmul.f32 %v1621_v28, %v1621_v28 }
  0xe8   :  { %v441_v34 = vpop.f32.mrf.mxu0  ;;  %1554 = vst [vmem:[%s2167_s2 + $0xa0] sm:$0xff] %v1478_v55   ;;  %v1951_v62 = vpop.f32.mrf.mxu1 }
  0xe9   :  { %v1111_v37 = vadd.f32 %v1110_v33, %v1048_v31  ;;  %v978_v38 = vadd.f32 %v1618_v15, %v977_v32  ;;  %v1050_v42 = vmul.f32 %v441_v34, %v441_v34 }
  0xea   :  { %v1622_v39 = vpop.f32.mrf.mxu0  ;;  %v1953_v4 = vpop.f32.mrf.mxu1 }
  0xeb   :  { %v979_v41 = vadd.f32 %v978_v38, %v441_v34  ;;  %v1112_v43 = vadd.f32 %v1111_v37, %v1049_v36  ;;  %v1413_v44 = vpack.c.bf16 %v1622_v39, %v1621_v28  ;;  %v1053_v0 = vmul.f32 %v1622_v39, %v1622_v39 }
  0xec   :  { %v444_v45 = vpop.f32.mrf.mxu0  ;;  %v1493_v12 = vpack.c.bf16 %v1953_v4, %v1943_v57  ;;  %v1957_v13 = vpop.f32.mrf.mxu1 }
  0xed   :  { %v1113_v49 = vadd.f32 %v1112_v43, %v1050_v42  ;;  %1541 = vst [vmem:[%s2167_s2 + $0x38] sm:$0xff] %v1413_v44   ;;  %v1408_v50 = vpack.c.bf16 %v444_v45, %v441_v34  ;;  %v980_v52 = vadd.f32 %v979_v41, %v444_v45  ;;  %v1051_v53 = vmul.f32 %v444_v45, %v444_v45 }
  0xee   :  { %v1625_v54 = vpop.f32.mrf.mxu0  ;;  %1557 = vst [vmem:[%s2167_s2 + $0xb8] sm:$0xff] %v1493_v12   ;;  %v1488_v20 = vpack.c.bf16 %v1957_v13, %v1951_v62  ;;  %v1967_v21 = vpop.f32.mrf.mxu1 }
  0xef   :  { %1540 = vst [vmem:[%s2167_s2 + $0x30] sm:$0xff] %v1408_v50   ;;  %v981_v59 = vadd.f32 %v1621_v28, %v980_v52  ;;  %v1114_v60 = vadd.f32 %v1113_v49, %v1051_v53  ;;  %v1056_v22 = vmul.f32 %v1625_v54, %v1625_v54 }
  0xf0   :  { %v457_v61 = vpop.f32.mrf.mxu0  ;;  %1556 = vst [vmem:[%s2167_s2 + $0xb0] sm:$0xff] %v1488_v20   ;;  %v1975_v27 = vpop.f32.mrf.mxu1 }
  0xf1   :  { %v1115_v1 = vadd.f32 %v1114_v60, %v1052_v58  ;;  %v982_v2 = vadd.f32 %v1622_v39, %v981_v59  ;;  %v1054_v7 = vmul.f32 %v457_v61, %v457_v61 }
  0xf2   :  { %v1626_v3 = vpop.f32.mrf.mxu0  ;;  %v1977_v33 = vpop.f32.mrf.mxu1 }
  0xf3   :  { %v983_v5 = vadd.f32 %v982_v2, %v457_v61  ;;  %v1116_v8 = vadd.f32 %v1115_v1, %v1053_v0  ;;  %v1423_v9 = vpack.c.bf16 %v1626_v3, %v1625_v54  ;;  %v1057_v28 = vmul.f32 %v1626_v3, %v1626_v3 }
  0xf4   :  { %v460_v10 = vpop.f32.mrf.mxu0  ;;  %v1503_v41 = vpack.c.bf16 %v1977_v33, %v1967_v21  ;;  %v1981_v42 = vpop.f32.mrf.mxu1 }
  0xf5   :  { %v1117_v14 = vadd.f32 %v1116_v8, %v1054_v7  ;;  %1543 = vst [vmem:[%s2167_s2 + $0x48] sm:$0xff] %v1423_v9   ;;  %v1418_v15 = vpack.c.bf16 %v460_v10, %v457_v61  ;;  %v984_v17 = vadd.f32 %v983_v5, %v460_v10  ;;  %v1055_v18 = vmul.f32 %v460_v10, %v460_v10 }
  0xf6   :  { %v1629_v19 = vpop.f32.mrf.mxu0  ;;  %1559 = vst [vmem:[%s2167_s2 + $0xc8] sm:$0xff] %v1503_v41   ;;  %v1498_v50 = vpack.c.bf16 %v1981_v42, %v1975_v27  ;;  %v1991_v52 = vpop.f32.mrf.mxu1 }
  0xf7   :  { %1542 = vst [vmem:[%s2167_s2 + $0x40] sm:$0xff] %v1418_v15   ;;  %v985_v24 = vadd.f32 %v1625_v54, %v984_v17  ;;  %v1118_v25 = vadd.f32 %v1117_v14, %v1055_v18  ;;  %v1060_v53 = vmul.f32 %v1629_v19, %v1629_v19 }
  0xf8   :  { %v473_v26 = vpop.f32.mrf.mxu0  ;;  %1558 = vst [vmem:[%s2167_s2 + $0xc0] sm:$0xff] %v1498_v50   ;;  %v1999_v59 = vpop.f32.mrf.mxu1 }
  0xf9   :  { %v1119_v29 = vadd.f32 %v1118_v25, %v1056_v22  ;;  %v986_v31 = vadd.f32 %v1626_v3, %v985_v24  ;;  %v1058_v36 = vmul.f32 %v473_v26, %v473_v26 }
  0xfa   :  { %v1630_v32 = vpop.f32.mrf.mxu0  ;;  %v2001_v2 = vpop.f32.mrf.mxu1 }
  0xfb   :  { %v987_v34 = vadd.f32 %v986_v31, %v473_v26  ;;  %v1120_v37 = vadd.f32 %v1119_v29, %v1057_v28  ;;  %v1433_v38 = vpack.c.bf16 %v1630_v32, %v1629_v19  ;;  %v1061_v60 = vmul.f32 %v1630_v32, %v1630_v32 }
  0xfc   :  { %v476_v39 = vpop.f32.mrf.mxu0  ;;  %v1513_v10 = vpack.c.bf16 %v2001_v2, %v1991_v52  ;;  %v2005_v12 = vpop.f32.mrf.mxu1 }
  0xfd   :  { %v1121_v43 = vadd.f32 %v1120_v37, %v1058_v36  ;;  %1545 = vst [vmem:[%s2167_s2 + $0x58] sm:$0xff] %v1433_v38   ;;  %v1428_v44 = vpack.c.bf16 %v476_v39, %v473_v26  ;;  %v988_v45 = vadd.f32 %v987_v34, %v476_v39  ;;  %v1059_v47 = vmul.f32 %v476_v39, %v476_v39 }
  0xfe   :  { %v1633_v49 = vpop.f32.mrf.mxu0  ;;  %1561 = vst [vmem:[%s2167_s2 + $0xd8] sm:$0xff] %v1513_v10   ;;  %v1508_v20 = vpack.c.bf16 %v2005_v12, %v1999_v59  ;;  %v2015_v22 = vpop.f32.mrf.mxu1 }
  0xff   :  { %1544 = vst [vmem:[%s2167_s2 + $0x50] sm:$0xff] %v1428_v44   ;;  %v989_v54 = vadd.f32 %v1629_v19, %v988_v45  ;;  %v1122_v55 = vadd.f32 %v1121_v43, %v1059_v47  ;;  %v1064_v24 = vmul.f32 %v1633_v49, %v1633_v49 }
 0x100   :  { %v489_v58 = vpop.f32.mrf.mxu0  ;;  %1560 = vst [vmem:[%s2167_s2 + $0xd0] sm:$0xff] %v1508_v20   ;;  %v2023_v29 = vpop.f32.mrf.mxu1 }
 0x101   :  { %v1123_v61 = vadd.f32 %v1122_v55, %v1060_v53  ;;  %v990_v0 = vadd.f32 %v1630_v32, %v989_v54  ;;  %v1062_v5 = vmul.f32 %v489_v58, %v489_v58 }
 0x102   :  { %v1634_v1 = vpop.f32.mrf.mxu0  ;;  %v2025_v37 = vpop.f32.mrf.mxu1 }
 0x103   :  { %v991_v3 = vadd.f32 %v990_v0, %v489_v58  ;;  %v1124_v7 = vadd.f32 %v1123_v61, %v1061_v60  ;;  %v1443_v8 = vpack.c.bf16 %v1634_v1, %v1633_v49  ;;  %v1065_v31 = vmul.f32 %v1634_v1, %v1634_v1 }
 0x104   :  { %v492_v9 = vpop.f32.mrf.mxu0  ;;  %v1523_v45 = vpack.c.bf16 %v2025_v37, %v2015_v22  ;;  %v2029_v47 = vpop.f32.mrf.mxu1 }
 0x105   :  { %v1125_v14 = vadd.f32 %v1124_v7, %v1062_v5  ;;  %1547 = vst [vmem:[%s2167_s2 + $0x68] sm:$0xff] %v1443_v8   ;;  %v1438_v15 = vpack.c.bf16 %v492_v9, %v489_v58  ;;  %v992_v17 = vadd.f32 %v991_v3, %v492_v9  ;;  %v1063_v18 = vmul.f32 %v492_v9, %v492_v9 }
 0x106   :  { %v1637_v19 = vpop.f32.mrf.mxu0  ;;  %1563 = vst [vmem:[%s2167_s2 + $0xe8] sm:$0xff] %v1523_v45   ;;  %v1518_v55 = vpack.c.bf16 %v2029_v47, %v2023_v29  ;;  %v2039_v58 = vpop.f32.mrf.mxu1  ;;  %v1070_v9 = vmul.f32 %v1879_v51, %v1879_v51 }
 0x107   :  { %1546 = vst [vmem:[%s2167_s2 + $0x60] sm:$0xff] %v1438_v15   ;;  %v993_v25 = vadd.f32 %v1633_v49, %v992_v17  ;;  %v1126_v26 = vadd.f32 %v1125_v14, %v1063_v18  ;;  %v1068_v60 = vmul.f32 %v1637_v19, %v1637_v19 }
 0x108   :  { %v505_v28 = vpop.f32.mrf.mxu0  ;;  %1562 = vst [vmem:[%s2167_s2 + $0xe0] sm:$0xff] %v1518_v55   ;;  %v1079_v55 = vmul.f32 %v1933_v48, %v1933_v48 }
 0x109   :  { %v1127_v32 = vadd.f32 %v1126_v26, %v1064_v24  ;;  %v994_v34 = vadd.f32 %v1634_v1, %v993_v25  ;;  %v1066_v39 = vmul.f32 %v505_v28, %v505_v28  ;;  %v2047_v1 = vpop.f32.mrf.mxu1 }
 0x10a   :  { %v1638_v36 = vpop.f32.mrf.mxu0 }
 0x10b   :  { %v995_v38 = vadd.f32 %v994_v34, %v505_v28  ;;  %v1128_v41 = vadd.f32 %v1127_v32, %v1065_v31  ;;  %v1453_v43 = vpack.c.bf16 %v1638_v36, %v1637_v19  ;;  %v1069_v3 = vmul.f32 %v1638_v36, %v1638_v36  ;;  %v2049_v8 = vpop.f32.mrf.mxu1 }
 0x10c   :  { %v508_v44 = vpop.f32.mrf.mxu0  ;;  %v1533_v15 = vpack.c.bf16 %v2049_v8, %v2039_v58  ;;  %v1074_v34 = vmul.f32 %v1903_v11, %v1903_v11 }
 0x10d   :  { %v1129_v49 = vadd.f32 %v1128_v41, %v1066_v39  ;;  %1549 = vst [vmem:[%s2167_s2 + $0x78] sm:$0xff] %v1453_v43   ;;  %v1448_v50 = vpack.c.bf16 %v508_v44, %v505_v28  ;;  %v996_v53 = vadd.f32 %v995_v38, %v508_v44  ;;  %v1067_v54 = vmul.f32 %v508_v44, %v508_v44  ;;  %v2056_v17 = vpop.f32.mrf.mxu1 }
 0x10e   :  { %1565 = vst [vmem:[%s2167_s2 + $0xf8] sm:$0xff] %v1533_v15   ;;  %v1528_v24 = vpack.c.bf16 %v2056_v17, %v2047_v1  ;;  %v1075_v39 = vmul.f32 %v1909_v23, %v1909_v23  ;;  %v1076_v41 = vmul.f32 %v1895_v6, %v1895_v6 }
 0x10f   :  { %1548 = vst [vmem:[%s2167_s2 + $0x70] sm:$0xff] %v1448_v50   ;;  %v997_v61 = vadd.f32 %v1637_v19, %v996_v53  ;;  %v1130_v0 = vadd.f32 %v1129_v49, %v1067_v54  ;;  %v1071_v19 = vmul.f32 %v1885_v63, %v1885_v63  ;;  %v1078_v50 = vmul.f32 %v1927_v35, %v1927_v35 }
 0x110   :  { %1564 = vst [vmem:[%s2167_s2 + $0xf0] sm:$0xff] %v1528_v24  }
 0x111   :  { %v998_v5 = vadd.f32 %v1638_v36, %v997_v61  ;;  %v1131_v7 = vadd.f32 %v1130_v0, %v1068_v60 }
 0x113   :  { %v1132_v10 = vadd.f32 %v1131_v7, %v1069_v3  ;;  %v999_v14 = vadd.f32 %v998_v5, %v1879_v51  ;;  %v1072_v51 = vmul.f32 %v1874_v46, %v1874_v46  ;;  %v1082_v5 = vmul.f32 %v1951_v62, %v1951_v62 }
 0x115   :  { %v1000_v18 = vadd.f32 %v999_v14, %v1885_v63  ;;  %v1133_v20 = vadd.f32 %v1132_v10, %v1070_v9  ;;  %v1073_v63 = vmul.f32 %v1881_v56, %v1881_v56  ;;  %v1083_v10 = vmul.f32 %v1957_v13, %v1957_v13 }
 0x117   :  { %v1001_v25 = vadd.f32 %v1874_v46, %v1000_v18  ;;  %v1134_v26 = vadd.f32 %v1133_v20, %v1071_v19  ;;  %v1086_v20 = vmul.f32 %v1975_v27, %v1975_v27 }
 0x119   :  { %v1135_v28 = vadd.f32 %v1134_v26, %v1072_v51  ;;  %v1002_v31 = vadd.f32 %v1881_v56, %v1001_v25  ;;  %v1077_v56 = vmul.f32 %v1905_v16, %v1905_v16  ;;  %v1087_v25 = vmul.f32 %v1981_v42, %v1981_v42 }
 0x11b   :  { %v1003_v32 = vadd.f32 %v1002_v31, %v1903_v11  ;;  %v1136_v36 = vadd.f32 %v1135_v28, %v1073_v63 }
 0x11d   :  { %v1137_v38 = vadd.f32 %v1136_v36, %v1074_v34  ;;  %v1004_v46 = vadd.f32 %v1003_v32, %v1909_v23  ;;  %v1090_v32 = vmul.f32 %v1999_v59, %v1999_v59 }
 0x11f   :  { %v1005_v43 = vadd.f32 %v1895_v6, %v1004_v46  ;;  %v1138_v44 = vadd.f32 %v1137_v38, %v1075_v39  ;;  %v1080_v6 = vmul.f32 %v1919_v30, %v1919_v30  ;;  %v1091_v38 = vmul.f32 %v2005_v12, %v2005_v12 }
 0x121   :  { %v1139_v45 = vadd.f32 %v1138_v44, %v1076_v41  ;;  %v1006_v49 = vadd.f32 %v1905_v16, %v1005_v43  ;;  %v1081_v16 = vmul.f32 %v1929_v40, %v1929_v40  ;;  %v1094_v44 = vmul.f32 %v2023_v29, %v2023_v29 }
 0x123   :  { %v1007_v11 = vadd.f32 %v1006_v49, %v1927_v35  ;;  %v1140_v53 = vadd.f32 %v1139_v45, %v1077_v56  ;;  %v1095_v49 = vmul.f32 %v2029_v47, %v2029_v47 }
 0x125   :  { %v1141_v54 = vadd.f32 %v1140_v53, %v1078_v50  ;;  %v1008_v23 = vadd.f32 %v1007_v11, %v1933_v48 }
 0x127   :  { %v1009_v60 = vadd.f32 %v1919_v30, %v1008_v23  ;;  %v1142_v61 = vadd.f32 %v1141_v54, %v1079_v55  ;;  %v1084_v30 = vmul.f32 %v1943_v57, %v1943_v57  ;;  %v1098_v23 = vmul.f32 %v2047_v1, %v2047_v1 }
 0x129   :  { %v1143_v0 = vadd.f32 %v1142_v61, %v1080_v6  ;;  %v1010_v3 = vadd.f32 %v1929_v40, %v1009_v60  ;;  %v1085_v40 = vmul.f32 %v1953_v4, %v1953_v4  ;;  %v1099_v60 = vmul.f32 %v2056_v17, %v2056_v17 }
 0x12b   :  { %v1011_v35 = vadd.f32 %v1010_v3, %v1951_v62  ;;  %v1144_v7 = vadd.f32 %v1143_v0, %v1081_v16 }
 0x12d   :  { %v1145_v9 = vadd.f32 %v1144_v7, %v1082_v5  ;;  %v1012_v48 = vadd.f32 %v1011_v35, %v1957_v13 }
 0x12f   :  { %v1013_v14 = vadd.f32 %v1943_v57, %v1012_v48  ;;  %v1146_v15 = vadd.f32 %v1145_v9, %v1083_v10  ;;  %v1088_v57 = vmul.f32 %v1967_v21, %v1967_v21 }
 0x131   :  { %v1147_v18 = vadd.f32 %v1146_v15, %v1084_v30  ;;  %v1014_v19 = vadd.f32 %v1953_v4, %v1013_v14  ;;  %v1089_v4 = vmul.f32 %v1977_v33, %v1977_v33 }
 0x133   :  { %v1015_v62 = vadd.f32 %v1014_v19, %v1975_v27  ;;  %v1148_v24 = vadd.f32 %v1147_v18, %v1085_v40 }
 0x135   :  { %v1149_v51 = vadd.f32 %v1148_v24, %v1086_v20  ;;  %v1016_v13 = vadd.f32 %v1015_v62, %v1981_v42 }
 0x137   :  { %v1017_v26 = vadd.f32 %v1967_v21, %v1016_v13  ;;  %v1150_v63 = vadd.f32 %v1149_v51, %v1087_v25  ;;  %v1092_v21 = vmul.f32 %v1991_v52, %v1991_v52 }
 0x139   :  { %v1151_v28 = vadd.f32 %v1150_v63, %v1088_v57  ;;  %v1018_v31 = vadd.f32 %v1977_v33, %v1017_v26  ;;  %v1093_v33 = vmul.f32 %v2001_v2, %v2001_v2 }
 0x13b   :  { %v1019_v27 = vadd.f32 %v1018_v31, %v1999_v59  ;;  %v1152_v34 = vadd.f32 %v1151_v28, %v1089_v4 }
 0x13d   :  { %v1153_v36 = vadd.f32 %v1152_v34, %v1090_v32  ;;  %v1020_v42 = vadd.f32 %v1019_v27, %v2005_v12 }
 0x13f   :  { %v1021_v46 = vadd.f32 %v1991_v52, %v1020_v42  ;;  %v1154_v39 = vadd.f32 %v1153_v36, %v1091_v38  ;;  %v1096_v52 = vmul.f32 %v2015_v22, %v2015_v22 }
 0x141   :  { %v1155_v41 = vadd.f32 %v1154_v39, %v1092_v21  ;;  %v1022_v43 = vadd.f32 %v2001_v2, %v1021_v46  ;;  %v1097_v2 = vmul.f32 %v2025_v37, %v2025_v37 }
 0x143   :  { %v1023_v59 = vadd.f32 %v1022_v43, %v2023_v29  ;;  %v1156_v56 = vadd.f32 %v1155_v41, %v1093_v33 }
 0x145   :  { %v1157_v45 = vadd.f32 %v1156_v56, %v1094_v44  ;;  %v1024_v12 = vadd.f32 %v1023_v59, %v2029_v47 }
 0x147   :  { %v1025_v11 = vadd.f32 %v2015_v22, %v1024_v12  ;;  %v1158_v50 = vadd.f32 %v1157_v45, %v1095_v49  ;;  %v1100_v22 = vmul.f32 %v2039_v58, %v2039_v58 }
 0x149   :  { %v1159_v53 = vadd.f32 %v1158_v50, %v1096_v52  ;;  %v1026_v54 = vadd.f32 %v2025_v37, %v1025_v11  ;;  %v1101_v37 = vmul.f32 %v2049_v8, %v2049_v8 }
 0x14b   :  { %v1027_v29 = vadd.f32 %v1026_v54, %v2047_v1  ;;  %v1160_v55 = vadd.f32 %v1159_v53, %v1097_v2 }
 0x14d   :  { %v1161_v6 = vadd.f32 %v1160_v55, %v1098_v23  ;;  %v1028_v47 = vadd.f32 %v1027_v29, %v2056_v17 }
 0x14f   :  { %v1029_v61 = vadd.f32 %v2039_v58, %v1028_v47  ;;  %v1162_v16 = vadd.f32 %v1161_v6, %v1099_v60 }
 0x151   :  { %v1030_v0 = vadd.f32 %v2049_v8, %v1029_v61  ;;  %v1163_v3 = vadd.f32 %v1162_v16, %v1100_v22 }
 0x153   :  { %v1031_v1 = vrot.slane %v1030_v0, 4  ;;  %v1164_v35 = vadd.f32 %v1163_v3, %v1101_v37 }
 0x155   :  { %v1032_v5 = vadd.f32 %v1031_v1, %v1030_v0  ;;  %v1165_v7 = vrot.slane %v1164_v35, 4 }
 0x157   :  { %v1033_v9 = vrot.slane %v1032_v5, 2  ;;  %v1166_v48 = vadd.f32 %v1165_v7, %v1164_v35 }
 0x159   :  { %v1034_v10 = vadd.f32 %v1033_v9, %v1032_v5  ;;  %v1167_v17 = vrot.slane %v1166_v48, 2 }
 0x15b   :  { %v1035_v30 = vrot.slane %v1034_v10, 1  ;;  %v1168_v14 = vadd.f32 %v1167_v17, %v1166_v48 }
 0x15d   :  { %v1036_v15 = vadd.f32 %v1035_v30, %v1034_v10  ;;  %v1169_v40 = vrot.slane %v1168_v14, 1 }
 0x15f   :  { %1037 = vst [vmem:[%s2168_s3] sm:$0x1] %v1036_v15  ;;  %v1170_v58 = vadd.f32 %v1169_v40, %v1168_v14 }
 0x161   :  { %1171 = vst [vmem:[%s2168_s3 + $0x1] sm:$0x1] %v1170_v58 }

// kernel: double_conv.4
= control target key start
LH: loop header
LB: loop body
LE: loop exit
PB: predicated region body
PF: predicated region fallthrough
CT: control target
= control target key end

     0   :  { %s5751_s18 = smov 0   ;;  %s7352_s0 = inlined_call_operand.vmem [shape: bf16[2,16,16,128], index: 0, kind: input, shape index: {}]   ;;  %s7353_s1 = inlined_call_operand.vmem [shape: f32[1,128], index: 1, kind: input, shape index: {}]   ;;  %s7354_s2 = inlined_call_operand.vmem [shape: f32[1,128], index: 2, kind: input, shape index: {}]   ;;  %s7355_s3 = inlined_call_operand.vmem [shape: bf16[3,384,128], index: 3, kind: input, shape index: {}]   ;;  %s7356_s4 = inlined_call_operand.vmem [shape: bf16[2,16,16,128], index: 4, kind: output, shape index: {0}]   ;;  %s7357_s5 = inlined_call_operand.vmem [shape: f32[2,8,128], index: 5, kind: output, shape index: {1}]  }
   0x1 LB: > { %s4377_s19 = sadd.s32 4294967295, %s5718_s18   ;;  %p4381_p0 = scmp.ge.s32.totalorder %s5718_s18, 1  ;;  %s5718_s18 = sphi %s5751_s18, %s16_s18  }
   0x2   : > { %p190_p1 = scmp.lt.s32.totalorder %s5718_s18, 3 }
   0x4   : > { %p191_p2 = pnand %p4381_p0, %p190_p1 }
   0x6   : > { %194 = sbr.rel (%p191_p2) target bundleno = 602 (0x25a), region = 36 }
   0xb   : > { %v5536_v0 = vld [vmem:[%s7355_s3 + $0x138] sm:$0xff]   ;;  %v5538_v2 = vld [vmem:[%s7355_s3 + $0x130] sm:$0xff]   ;;  %p222_p3 = scmp.lt.s32.totalorder %s4377_s19, 1  ;;  %v5540_v4 = vld [vmem:[%s7355_s3 + $0x128] sm:$0xff]   ;;  %vm435_vm0 = vcmask 1040384   ;;  %vm938_vm5 = vcmask 1043456  }
   0xc   : > { %v5537_v1 = vld [vmem:[%s7355_s3 + $0xf8] sm:$0xff]   ;;  %5511 = vmatprep.subr.bf16.mxu1 %v5536_v0  ;;  %4959 = vmatprep.subr.bf16.mxu0 %v5536_v0  ;;  %v5539_v3 = vld [vmem:[%s7355_s3 + $0xf0] sm:$0xff]   ;;  %v5541_v5 = vld [vmem:[%s7355_s3 + $0xe8] sm:$0xff]   ;;  %vm436_vm1 = vsmask.f32 256  ;;  %vm1453_vm10 = vcmask 1046528  }
   0xd   : > { %5519 = vmatpush3.bf16.msra.mxu1 %v5537_v1  ;;  %4960 = vmatpush3.bf16.msra.mxu0 %v5537_v1  ;;  %s7421_s19 = smov (!%p222_p3, %s4377_s19), 1  ;;  %v5542_v6 = vld [vmem:[%s7355_s3 + $0x120] sm:$0xff]   ;;  %v5544_v8 = vld [vmem:[%s7355_s3 + $0x118] sm:$0xff]   ;;  %v5546_v10 = vld [vmem:[%s7355_s3 + $0x110] sm:$0xff]   ;;  %vm486_vm2 = vsmask.f32 7938 }
   0xe   : > { %5512 = vmatprep.subr.bf16.mxu1 %v5538_v2  ;;  %4961 = vmatprep.subr.bf16.mxu0 %v5538_v2  ;;  %s4719_s9 = sshll.u32 %s7421_s19, 7  ;;  %v5543_v7 = vld [vmem:[%s7355_s3 + $0xe0] sm:$0xff]   ;;  %v5545_v9 = vld [vmem:[%s7355_s3 + $0xd8] sm:$0xff]   ;;  %v5547_v13 = vld [vmem:[%s7355_s3 + $0xd0] sm:$0xff]   ;;  %vm616_vm6 = vsmask.f32 4368 }
   0xf   : > { %s5794_s16 = scalar_lea.vmem %s7352_s0, %s4719_s9  ;;  %v5806_v12 = vld [vmem:[%s7353_s1] ss:$0 sm:$0xff]  ;;  %v438_v16 = vld [vmem:[#allocation2 + $0xc] sm:$0x1]  ;;  %vm5821_vm3 = vmand %vm435_vm0, %vm436_vm1  ;;  %vm1244_vm9 = vsmask.f32 7424  ;;  %s7204_s26 = scalar_lea.vmem %s7356_s4, %s4719_s9 }
  0x10   : > { %v4786_v11 = vld [vmem:[%s5794_s16] sm:$0xff]   ;;  %v5548_v17 = vld [vmem:[%s7355_s3 + $0x108] sm:$0xff]   ;;  %v488_v20 = vld [vmem:[#allocation2 + $0x14] sm:$0x1]  ;;  %v439_v23 = vsel %vm5821_vm3, 0, %v438_v16  ;;  %s4386_s9 = sshll.u32 %s7421_s19, 3 }
  0x11   : > { %5520 = vmatpush3.bf16.msra.mxu1 %v5539_v3  ;;  %4962 = vmatpush3.bf16.msra.mxu0 %v5539_v3  ;;  %v4787_v14 = vunpack.c.l.bf16 %v4786_v11  ;;  %v4788_v15 = vunpack.c.h.bf16 %v4786_v11  ;;  %v5817_v18 = vld [vmem:[%s7354_s2] ss:$0 sm:$0xff]  ;;  %vm5831_vm4 = vmand %vm435_vm0, %vm486_vm2  ;;  %v474_v26 = vld [vmem:[#allocation2 + $0x9c] sm:$0x1]  ;;  %440 = vst [vmem:[#allocation2 + $0xc] sm:$0x1] %v439_v23  ;;  %s235_s29 = scalar_lea.vmem %s7357_s5, %s4386_s9 }
  0x12   : > { %5513 = vmatprep.subr.bf16.mxu1 %v5540_v4  ;;  %4963 = vmatprep.subr.bf16.mxu0 %v5540_v4  ;;  %v4940_v25 = vld [vmem:[%s5794_s16 + $0x60] sm:$0xff]   ;;  %v489_v27 = vsel %vm5831_vm4, 0, %v488_v20  ;;  %v475_v30 = vsel %vm5821_vm3, 0, %v474_v26  ;;  %v5549_v35 = vld [vmem:[%s7355_s3 + $0xc8] sm:$0xff]   ;;  %v441_v44 = vld [vmem:[#allocation2 + $0x18] sm:$0x1] }
  0x13   : > { %v309_v21 = vmul.f32 %v4787_v14, %v5806_v12  ;;  %v310_v22 = vmul.f32 %v4788_v15, %v5806_v12  ;;  %v4835_v28 = vunpack.c.l.bf16 %v4940_v25  ;;  %v4836_v29 = vunpack.c.h.bf16 %v4940_v25  ;;  %v524_v31 = vld [vmem:[#allocation2 + $0xa4] sm:$0x1]  ;;  %490 = vst [vmem:[#allocation2 + $0x14] sm:$0x1] %v489_v27  ;;  %476 = vst [vmem:[#allocation2 + $0x9c] sm:$0x1] %v475_v30 }
  0x14   : > { %v525_v34 = vsel %vm5831_vm4, 0, %v524_v31  ;;  %v5550_v40 = vld [vmem:[%s7355_s3 + $0x100] sm:$0xff]   ;;  %v4929_v43 = vld [vmem:[%s5794_s16 + $0x8] sm:$0xff]   ;;  %v442_v53 = vsel %vm5821_vm3, 0, %v441_v44  ;;  %v5868_v62 = vld [vmem:[%s7355_s3 + $0x178] sm:$0xff]  }
  0x15   : > { %5521 = vmatpush3.bf16.msra.mxu1 %v5541_v5  ;;  %4964 = vmatpush3.bf16.msra.mxu0 %v5541_v5  ;;  %v347_v32 = vadd.f32 %v5817_v18, %v309_v21  ;;  %v348_v33 = vadd.f32 %v5817_v18, %v310_v22  ;;  %v333_v36 = vmul.f32 %v4835_v28, %v5806_v12  ;;  %v4791_v47 = vunpack.c.l.bf16 %v4929_v43  ;;  %v491_v49 = vld [vmem:[#allocation2 + $0x20] sm:$0x1]  ;;  %v5856_v50 = vld [vmem:[%s5794_s16 + $0x68] sm:$0xff]   ;;  %v5873_v63 = vld [vmem:[%s7355_s3 + $0xb8] sm:$0xff]  }
  0x16   : > { %5514 = vmatprep.subr.bf16.mxu1 %v5542_v6  ;;  %4965 = vmatprep.subr.bf16.mxu0 %v5542_v6  ;;  %v334_v37 = vmul.f32 %v4836_v29, %v5806_v12  ;;  %526 = vst [vmem:[#allocation2 + $0xa4] sm:$0x1] %v525_v34  ;;  %v4792_v48 = vunpack.c.h.bf16 %v4929_v43  ;;  %v492_v54 = vsel %vm5831_vm4, 0, %v491_v49  ;;  %v5551_v55 = vld [vmem:[%s7355_s3 + $0xc0] sm:$0xff]   ;;  %443 = vst [vmem:[#allocation2 + $0x18] sm:$0x1] %v442_v53  ;;  %v4839_v1 = vunpack.c.l.bf16 %v5856_v50 }
  0x17   : > { %v379_v38 = vmax.f32 %v347_v32, 0.0  ;;  %v380_v39 = vmax.f32 %v348_v33, 0.0  ;;  %v371_v41 = vadd.f32 %v5817_v18, %v333_v36  ;;  %493 = vst [vmem:[#allocation2 + $0x20] sm:$0x1] %v492_v54  ;;  %v311_v0 = vmul.f32 %v4791_v47, %v5806_v12  ;;  %vm5879_vm7 = vmor %vm436_vm1, %vm616_vm6  ;;  %v477_v32 = vld [vmem:[#allocation2 + $0xa8] sm:$0x1] }
  0x18   : > { %v372_v42 = vadd.f32 %v5817_v18, %v334_v37  ;;  %v940_v5 = vld [vmem:[#allocation2 + $0xc] sm:$0xf]  ;;  %v312_v6 = vmul.f32 %v4792_v48, %v5806_v12  ;;  %vm5887_vm8 = vmand %vm938_vm5, %vm486_vm2  ;;  %v335_v31 = vmul.f32 %v4839_v1, %v5806_v12  ;;  %v527_v37 = vld [vmem:[#allocation2 + $0xb0] sm:$0x1]  ;;  %v478_v47 = vsel %vm5821_vm3, 0, %v477_v32 }
  0x19   : > { %5522 = vmatpush3.bf16.msra.mxu1 %v5543_v7  ;;  %4966 = vmatpush3.bf16.msra.mxu0 %v5543_v7  ;;  %v4721_v45 = vpack.c.bf16 %v379_v38, %v379_v38  ;;  %v4722_v46 = vpack.c.bf16 %v380_v39, %v380_v39  ;;  %v403_v51 = vmax.f32 %v371_v41, 0.0  ;;  %v4840_v7 = vunpack.c.h.bf16 %v5856_v50  ;;  %v444_v43 = vld [vmem:[#allocation2 + $0x24] sm:$0x1]  ;;  %v5914_v48 = vld [vmem:[%s5794_s16 + $0x70] sm:$0xff]   ;;  %479 = vst [vmem:[#allocation2 + $0xa8] sm:$0x1] %v478_v47 }
  0x1a   : > { %5515 = vmatprep.subr.bf16.mxu1 %v5544_v8  ;;  %4967 = vmatprep.subr.bf16.mxu0 %v5544_v8  ;;  %v404_v52 = vmax.f32 %v372_v42, 0.0  ;;  %v349_v23 = vadd.f32 %v5817_v18, %v311_v0  ;;  %v350_v25 = vadd.f32 %v5817_v18, %v312_v6  ;;  %v1024_v29 = vld [vmem:[#allocation2 + $0x9c] sm:$0xf]  ;;  %v373_v41 = vadd.f32 %v5817_v18, %v335_v31  ;;  %v4930_v42 = vld [vmem:[%s5794_s16 + $0x10] sm:$0xff]  }
  0x1b   : > { %v619_v56 = vshrl.u32 %v4721_v45, 16  ;;  %v622_v57 = vshll.u32 %v4721_v45, 16  ;;  %v627_v58 = vshrl.u32 %v4722_v46, 16  ;;  %v630_v59 = vshll.u32 %v4722_v46, 16  ;;  %v5918_v53 = vld [vmem:[%s5794_s16 + $0x18] sm:$0xff]  }
  0x1c   : > { %v4745_v60 = vpack.c.bf16 %v403_v51, %v403_v51  ;;  %v4746_v61 = vpack.c.bf16 %v404_v52, %v404_v52  ;;  %v381_v38 = vmax.f32 %v349_v23, 0.0  ;;  %v382_v39 = vmax.f32 %v350_v25, 0.0 }
  0x1d   : > { %5523 = vmatpush3.bf16.msra.mxu1 %v5545_v9  ;;  %4968 = vmatpush3.bf16.msra.mxu0 %v5545_v9  ;;  %v621_v3 = vrot.slane %v619_v56, 7  ;;  %v629_v4 = vrot.slane %v627_v58, 7  ;;  %v944_v9 = vld [vmem:[#allocation2 + $0x14] sm:$0x1]  ;;  %v1028_v30 = vld [vmem:[#allocation2 + $0xa4] sm:$0x1]  ;;  %v4796_v56 = vunpack.c.h.bf16 %v4930_v42 }
  0x1e   : > { %5516 = vmatprep.subr.bf16.mxu1 %v5546_v10  ;;  %4969 = vmatprep.subr.bf16.mxu0 %v5546_v10  ;;  %v823_v10 = vshrl.u32 %v4745_v60, 16  ;;  %v826_v11 = vshll.u32 %v4745_v60, 16  ;;  %v834_v14 = vshll.u32 %v4746_v61, 16  ;;  %v4723_v49 = vpack.c.bf16 %v381_v38, %v381_v38  ;;  %v947_v6 = vld [vmem:[#allocation2 + $0x18] sm:$0xf] }
  0x1f   : > { %v624_v15 = vor.u32 %v622_v57, %v621_v3  ;;  %v625_v16 = vrot.slane %v621_v3, 4  ;;  %v634_v20 = vrot.slane %v629_v4, 4  ;;  %v4724_v50 = vpack.c.bf16 %v382_v39, %v382_v39 }
  0x20   : > { %v825_v21 = vrot.slane %v823_v10, 7  ;;  %v405_v52 = vmax.f32 %v373_v41, 0.0  ;;  %v528_v54 = vsel %vm5831_vm4, 0, %v527_v37  ;;  %v445_v57 = vsel %vm5821_vm3, 0, %v444_v43 }
  0x21   : > { %5524 = vmatpush3.bf16.msra.mxu1 %v5547_v13  ;;  %4970 = vmatpush3.bf16.msra.mxu0 %v5547_v13  ;;  %v831_v13 = vshrl.u32 %v4746_v61, 16  ;;  %v941_v27 = vsel %vm5887_vm8, %v624_v15, %v940_v5  ;;  %v945_v28 = vsel %vm5821_vm3, %v634_v20, %v944_v9  ;;  %v636_v58 = vshrl.u32 %v4723_v49, 16  ;;  %529 = vst [vmem:[#allocation2 + $0xb0] sm:$0x1] %v528_v54  ;;  %v494_v5 = vld [vmem:[#allocation2 + $0x2c] sm:$0x1] }
  0x22   : > { %5517 = vmatprep.subr.bf16.mxu1 %v5548_v17  ;;  %4971 = vmatprep.subr.bf16.mxu0 %v5548_v17  ;;  %v632_v17 = vor.u32 %v630_v59, %v629_v4  ;;  %942 = vst [vmem:[#allocation2 + $0xc] sm:$0xf] %v941_v27  ;;  %946 = vst [vmem:[#allocation2 + $0x14] sm:$0x1] %v945_v28  ;;  %v828_v33 = vor.u32 %v826_v11, %v825_v21  ;;  %v829_v34 = vrot.slane %v825_v21, 4 }
  0x23   : > { %v833_v22 = vrot.slane %v831_v13, 7  ;;  %v639_v59 = vshll.u32 %v4723_v49, 16  ;;  %v644_v60 = vshrl.u32 %v4724_v50, 16  ;;  %v647_v61 = vshll.u32 %v4724_v50, 16  ;;  %446 = vst [vmem:[#allocation2 + $0x24] sm:$0x1] %v445_v57 }
  0x24   : > { %v633_v26 = vsel %vm5879_vm7, %v625_v16, %v632_v17  ;;  %v1025_v45 = vsel %vm5887_vm8, %v828_v33, %v1024_v29  ;;  %v4747_v1 = vpack.c.bf16 %v405_v52, %v405_v52  ;;  %v314_v4 = vmul.f32 %v4796_v56, %v5806_v12  ;;  %v951_v21 = vld [vmem:[#allocation2 + $0x20] sm:$0x1]  ;;  %v1031_v49 = vld [vmem:[#allocation2 + $0xa8] sm:$0xf] }
  0x25   : > { %5525 = vmatpush3.bf16.msra.mxu1 %v5549_v35  ;;  %4972 = vmatpush3.bf16.msra.mxu0 %v5549_v35  ;;  %943 = vst [vmem:[#allocation2 + $0x10] sm:$0xf] %v633_v26  ;;  %v836_v35 = vor.u32 %v834_v14, %v833_v22  ;;  %v838_v36 = vrot.slane %v833_v22, 4  ;;  %1026 = vst [vmem:[#allocation2 + $0x9c] sm:$0xf] %v1025_v45  ;;  %v4844_v9 = vunpack.c.h.bf16 %v5914_v48  ;;  %v4799_v10 = vunpack.c.l.bf16 %v5918_v53 }
  0x26   : > { %5518 = vmatprep.subr.bf16.mxu1 %v5550_v40  ;;  %4973 = vmatprep.subr.bf16.mxu0 %v5550_v40  ;;  %v336_v40 = vmul.f32 %v4840_v7, %v5806_v12  ;;  %v4843_v7 = vunpack.c.l.bf16 %v5914_v48  ;;  %v4800_v11 = vunpack.c.h.bf16 %v5918_v53  ;;  %v638_v15 = vrot.slane %v636_v58, 7  ;;  %v5565_v58 = vld [vmem:[%s7355_s3 + $0xb0] sm:$0xff]   ;;  %v5563_v53 = vld [vmem:[%s7355_s3 + $0x168] sm:$0xff]  }
  0x27   : > { %v837_v44 = vsel %vm5879_vm7, %v829_v34, %v836_v35  ;;  %v1029_v46 = vsel %vm5821_vm3, %v838_v36, %v1028_v30  ;;  %v646_v16 = vrot.slane %v644_v60, 7  ;;  %v840_v22 = vshrl.u32 %v4747_v1, 16 }
  0x28   : > { %1027 = vst [vmem:[#allocation2 + $0xa0] sm:$0xf] %v837_v44  ;;  %1030 = vst [vmem:[#allocation2 + $0xa4] sm:$0x1] %v1029_v46  ;;  %v374_v51 = vadd.f32 %v5817_v18, %v336_v40  ;;  %v843_v23 = vshll.u32 %v4747_v1, 16  ;;  %v352_v25 = vadd.f32 %v5817_v18, %v314_v4  ;;  %v495_v26 = vsel %vm5831_vm4, 0, %v494_v5 }
  0x29   : > { %5526 = vmatpush3.bf16.msra.mxu1 %v5551_v55  ;;  %4974 = vmatpush3.bf16.msra.mxu0 %v5551_v55  ;;  %v4795_v55 = vunpack.c.l.bf16 %v4930_v42  ;;  %v5932_v14 = vld [vmem:[#allocation2 + $0x14] ss:$0 sps:$4 sm:$0x11]   ;;  %v641_v31 = vor.u32 %v639_v59, %v638_v15  ;;  %496 = vst [vmem:[#allocation2 + $0x2c] sm:$0x1] %v495_v26  ;;  %v642_v32 = vrot.slane %v638_v15, 4  ;;  %v649_v33 = vor.u32 %v647_v61, %v646_v16 }
  0x2a   : > { %5367 = vmatprep.subr.bf16.mxu1 %v5868_v62  ;;  %5415 = vmatprep.subr.bf16.mxu0 %v5873_v63  ;;  %v406_v0 = vmax.f32 %v374_v51, 0.0  ;;  %v1766_v29 = vshll.u32 %v5932_v14, 16  ;;  %v651_v34 = vrot.slane %v646_v16, 4  ;;  %v337_v35 = vmul.f32 %v4843_v7, %v5806_v12  ;;  %v5958_v15 = vld [vmem:[%s5794_s16 + $0x78] sm:$0xff]  }
  0x2b   : > { %v313_v3 = vmul.f32 %v4795_v55, %v5806_v12  ;;  %v948_v40 = vsel %vm5887_vm8, %v641_v31, %v947_v6  ;;  %v650_v42 = vsel %vm5879_vm7, %v642_v32, %v649_v33  ;;  %v842_v44 = vrot.slane %v840_v22, 7  ;;  %v480_v22 = vld [vmem:[#allocation2 + $0xb4] sm:$0x1] }
  0x2c   : > { %v5930_v13 = vld [vmem:[#allocation2 + $0xc] sm:$0xff]   ;;  %v4748_v17 = vpack.c.bf16 %v406_v0, %v406_v0  ;;  %v1768_v37 = vrot.slane %v1766_v29, 1  ;;  %949 = vst [vmem:[#allocation2 + $0x18] sm:$0xf] %v948_v40  ;;  %v952_v43 = vsel %vm5821_vm3, %v651_v34, %v951_v21  ;;  %950 = vst [vmem:[#allocation2 + $0x1c] sm:$0xf] %v650_v42  ;;  %v375_v7 = vadd.f32 %v5817_v18, %v337_v35 }
  0x2d   : > { %v351_v20 = vadd.f32 %v5817_v18, %v313_v3  ;;  %v1759_v27 = vshrl.u32 %v5930_v13, 16  ;;  %v1761_v28 = vshll.u32 %v5930_v13, 16  ;;  %953 = vst [vmem:[#allocation2 + $0x20] sm:$0x1] %v952_v43  ;;  %v845_v51 = vor.u32 %v843_v23, %v842_v44  ;;  %v1035_v0 = vld [vmem:[#allocation2 + $0xb0] sm:$0x1] }
  0x2e   : > { %v848_v47 = vshrl.u32 %v4748_v17, 16  ;;  %v851_v48 = vshll.u32 %v4748_v17, 16  ;;  %v846_v52 = vrot.slane %v842_v44, 4  ;;  %v384_v59 = vmax.f32 %v352_v25, 0.0  ;;  %v5558_v17 = vld [vmem:[%s7355_s3 + $0x170] sm:$0xff]   ;;  %v5577_v23 = vld [vmem:[%s7355_s3 + $0xa8] sm:$0xff]  }
  0x2f   : > { %v5554_v30 = vld [vmem:[#allocation2 + $0x9c] sm:$0xff]   ;;  %v1763_v36 = vrot.slane %v1761_v28, 1  ;;  %v5555_v38 = vld [vmem:[#allocation2 + $0xa4] ss:$0 sps:$4 sm:$0x11]   ;;  %v383_v54 = vmax.f32 %v351_v20, 0.0  ;;  %v1032_v61 = vsel %vm5887_vm8, %v845_v51, %v1031_v49  ;;  %v338_v3 = vmul.f32 %v4844_v9, %v5806_v12 }
  0x30   : > { %v1903_v39 = vshrl.u32 %v5554_v30, 16  ;;  %v1905_v41 = vshll.u32 %v5554_v30, 16  ;;  %v1910_v46 = vshll.u32 %v5555_v38, 16  ;;  %v850_v57 = vrot.slane %v848_v47, 7  ;;  %1033 = vst [vmem:[#allocation2 + $0xa8] sm:$0xf] %v1032_v61 }
  0x31   : > { %v1764_v45 = vor.u32 %v1763_v36, %v1759_v27  ;;  %v4725_v1 = vpack.c.bf16 %v383_v54, %v383_v54  ;;  %v4726_v6 = vpack.c.bf16 %v384_v59, %v384_v59  ;;  %v376_v21 = vadd.f32 %v5817_v18, %v338_v3  ;;  %v954_v28 = vld [vmem:[#allocation2 + $0x24] sm:$0xf]  ;;  %v530_v29 = vld [vmem:[#allocation2 + $0xbc] sm:$0x1]  ;;  %v958_v33 = vld [vmem:[#allocation2 + $0x2c] sm:$0x1] }
  0x32   : > { %v1907_v50 = vrot.slane %v1905_v41, 1  ;;  %v1912_v56 = vrot.slane %v1910_v46, 1  ;;  %v853_v4 = vor.u32 %v851_v48, %v850_v57  ;;  %v855_v5 = vrot.slane %v850_v57, 4  ;;  %v5583_v46 = vld [vmem:[%s7355_s3 + $0xa0] sm:$0xff]   ;;  %v447_v61 = vld [vmem:[#allocation2 + $0x30] sm:$0x1] }
  0x33   : > { %v1769_v55 = vsel %vm1244_vm9, %v1764_v45, %v1768_v37  ;;  %v653_v20 = vshrl.u32 %v4725_v1, 16  ;;  %v656_v9 = vshll.u32 %v4725_v1, 16  ;;  %v661_v26 = vshrl.u32 %v4726_v6, 16  ;;  %v5973_v31 = vld [vmem:[#allocation2 + $0x18] sm:$0xff]  }
  0x34   : > { %2255 = vmatprep.mubr.bf16.mxu0 %v1769_v55  ;;  %v1908_v60 = vor.u32 %v1907_v50, %v1903_v39  ;;  %v854_v25 = vsel %vm5879_vm7, %v846_v52, %v853_v4  ;;  %v664_v27 = vshll.u32 %v4726_v6, 16  ;;  %v315_v34 = vmul.f32 %v4799_v10, %v5806_v12  ;;  %v5983_v37 = vld [vmem:[#allocation2 + $0x20] ss:$0 sps:$4 sm:$0x11]  }
  0x35   : > { %2256 = vmatmul.mubr.bf16.vlgmr.msra.gmra.mxu0 %v5930_v13  ;;  %1034 = vst [vmem:[#allocation2 + $0xac] sm:$0xf] %v854_v25  ;;  %v655_v32 = vrot.slane %v653_v20, 7  ;;  %v316_v35 = vmul.f32 %v4800_v11, %v5806_v12  ;;  %v4847_v36 = vunpack.c.l.bf16 %v5958_v15  ;;  %v407_v38 = vmax.f32 %v375_v7, 0.0  ;;  %v5564_v52 = vld [vmem:[%s7355_s3 + $0x160] sm:$0xff]  }
  0x36   : > { %v1913_v16 = vsel %vm1244_vm9, %v1908_v60, %v1912_v56  ;;  %5416 = vmatpush3.bf16.msra.mxu0 %v5873_v63  ;;  %v1036_v63 = vsel %vm5821_vm3, %v855_v5, %v1035_v0  ;;  %v408_v39 = vmax.f32 %v376_v21, 0.0  ;;  %v4848_v40 = vunpack.c.h.bf16 %v5958_v15  ;;  %v497_v0 = vld [vmem:[#allocation2 + $0x38] sm:$0x1]  ;;  %v5707_v19 = vld [vmem:[#allocation2 + $0xa4] ss:$0 sps:$4 sm:$0x11]  }
  0x37   : > { %2351 = vmatprep.mubr.bf16.mxu1 %v1913_v16  ;;  %5417 = vmatprep.subr.bf16.mxu0 %v5565_v58  ;;  %1037 = vst [vmem:[#allocation2 + $0xb0] sm:$0x1] %v1036_v63  ;;  %v1771_v41 = vshrl.u32 %v5973_v31, 16  ;;  %v1773_v10 = vshll.u32 %v5973_v31, 16  ;;  %v658_v11 = vor.u32 %v656_v9, %v655_v32  ;;  %v659_v42 = vrot.slane %v655_v32, 4 }
  0x38   : > { %2352 = vmatmul.mubr.bf16.vlgmr.msra.gmra.mxu1 %v5554_v30  ;;  %v663_v30 = vrot.slane %v661_v26, 7  ;;  %v481_v45 = vsel %vm5821_vm3, 0, %v480_v22  ;;  %v531_v49 = vsel %vm5831_vm4, 0, %v530_v29  ;;  %v4749_v50 = vpack.c.bf16 %v407_v38, %v407_v38 }
  0x39   : > { %5368 = vmatpush3.bf16.msra.mxu1 %v5868_v62  ;;  %v1778_v62 = vshll.u32 %v5983_v37, 16  ;;  %v1775_v47 = vrot.slane %v1773_v10, 1  ;;  %v955_v48 = vsel %vm5887_vm8, %v658_v11, %v954_v28  ;;  %482 = vst [vmem:[#allocation2 + $0xb4] sm:$0x1] %v481_v45  ;;  %532 = vst [vmem:[#allocation2 + $0xbc] sm:$0x1] %v531_v49  ;;  %v4750_v56 = vpack.c.bf16 %v408_v39, %v408_v39 }
  0x3a   : > { %5369 = vmatprep.subr.bf16.mxu1 %v5558_v17  ;;  %5418 = vmatpush3.bf16.msra.mxu0 %v5565_v58  ;;  %v666_v43 = vor.u32 %v664_v27, %v663_v30  ;;  %v668_v44 = vrot.slane %v663_v30, 4  ;;  %956 = vst [vmem:[#allocation2 + $0x24] sm:$0xf] %v955_v48  ;;  %v857_v58 = vshrl.u32 %v4749_v50, 16  ;;  %v860_v59 = vshll.u32 %v4749_v50, 16  ;;  %v5570_v27 = vld [vmem:[%s7355_s3 + $0x158] sm:$0xff]  }
  0x3b   : > { %5419 = vmatprep.subr.bf16.mxu0 %v5577_v23  ;;  %v1780_v51 = vrot.slane %v1778_v62, 1  ;;  %v1776_v57 = vor.u32 %v1775_v47, %v1771_v41  ;;  %v353_v60 = vadd.f32 %v5817_v18, %v315_v34  ;;  %v865_v3 = vshrl.u32 %v4750_v56, 16  ;;  %v483_v41 = vld [vmem:[#allocation2 + $0xc0] sm:$0x1]  ;;  %v533_v10 = vld [vmem:[#allocation2 + $0xc8] sm:$0x1] }
  0x3c   : > { %v667_v54 = vsel %vm5879_vm7, %v659_v42, %v666_v43  ;;  %v959_v55 = vsel %vm5821_vm3, %v668_v44, %v958_v33  ;;  %v6009_v1 = vld [vmem:[#allocation2 + $0xa8] sm:$0xff]   ;;  %v354_v4 = vadd.f32 %v5817_v18, %v316_v35  ;;  %v339_v5 = vmul.f32 %v4847_v36, %v5806_v12 }
  0x3d   : > { %5370 = vmatpush3.bf16.msra.mxu1 %v5558_v17  ;;  %957 = vst [vmem:[#allocation2 + $0x28] sm:$0xf] %v667_v54  ;;  %960 = vst [vmem:[#allocation2 + $0x2c] sm:$0x1] %v959_v55  ;;  %v340_v6 = vmul.f32 %v4848_v40, %v5806_v12  ;;  %v1781_v7 = vsel %vm1244_vm9, %v1776_v57, %v1780_v51  ;;  %v859_v16 = vrot.slane %v857_v58, 7  ;;  %v868_v17 = vshll.u32 %v4750_v56, 16 }
  0x3e   : > { %5371 = vmatprep.subr.bf16.mxu1 %v5563_v53  ;;  %5420 = vmatpush3.bf16.msra.mxu0 %v5577_v23  ;;  %v5562_v15 = vld [vmem:[#allocation2 + $0xb0] ss:$0 sps:$4 sm:$0x11]   ;;  %v385_v20 = vmax.f32 %v353_v60, 0.0  ;;  %v1915_v9 = vshrl.u32 %v6009_v1, 16  ;;  %v1917_v21 = vshll.u32 %v6009_v1, 16  ;;  %v377_v43 = vadd.f32 %v5817_v18, %v339_v5 }
  0x3f   : > { %5421 = vmatprep.subr.bf16.mxu0 %v5583_v46  ;;  %2263 = vmatprep.mubr.bf16.mxu0 %v1781_v7  ;;  %v867_v22 = vrot.slane %v865_v3, 7  ;;  %v386_v23 = vmax.f32 %v354_v4, 0.0  ;;  %v1922_v25 = vshll.u32 %v5562_v15, 16  ;;  %v862_v63 = vor.u32 %v860_v59, %v859_v16  ;;  %v4932_v3 = vld [vmem:[%s5794_s16 + $0x20] sm:$0xff]  }
  0x40   : > { %2264 = vmatmul.mubr.bf16.gmra.mxu0 %v5973_v31  ;;  %v863_v26 = vrot.slane %v859_v16, 4  ;;  %v448_v28 = vsel %vm5821_vm3, 0, %v447_v61  ;;  %v1919_v29 = vrot.slane %v1917_v21, 1  ;;  %v1038_v34 = vld [vmem:[#allocation2 + $0xb4] sm:$0xf]  ;;  %v498_v35 = vsel %vm5831_vm4, 0, %v497_v0 }
  0x41   : > { %5372 = vmatpush3.bf16.msra.mxu1 %v5563_v53  ;;  %v870_v32 = vor.u32 %v868_v17, %v867_v22  ;;  %v872_v33 = vrot.slane %v867_v22, 4  ;;  %449 = vst [vmem:[#allocation2 + $0x30] sm:$0x1] %v448_v28  ;;  %v1924_v36 = vrot.slane %v1922_v25, 1  ;;  %v1039_v30 = vsel %vm5887_vm8, %v862_v63, %v1038_v34  ;;  %v1042_v38 = vld [vmem:[#allocation2 + $0xbc] sm:$0x1] }
  0x42   : > { %5373 = vmatprep.subr.bf16.mxu1 %v5564_v52  ;;  %5422 = vmatpush3.bf16.msra.mxu0 %v5583_v46  ;;  %499 = vst [vmem:[#allocation2 + $0x38] sm:$0x1] %v498_v35  ;;  %v4727_v39 = vpack.c.bf16 %v385_v20, %v385_v20  ;;  %v4728_v40 = vpack.c.bf16 %v386_v23, %v386_v23  ;;  %1040 = vst [vmem:[#allocation2 + $0xb4] sm:$0xf] %v1039_v30  ;;  %v409_v58 = vmax.f32 %v377_v43, 0.0  ;;  %v6051_v16 = vld [vmem:[%s5794_s16 + $0x28] sm:$0xff]  }
  0x43   : > { %v1920_v53 = vor.u32 %v1919_v29, %v1915_v9  ;;  %v871_v42 = vsel %vm5879_vm7, %v863_v26, %v870_v32  ;;  %v1043_v62 = vsel %vm5821_vm3, %v872_v33, %v1042_v38  ;;  %v378_v48 = vadd.f32 %v5817_v18, %v340_v6  ;;  %v5576_v22 = vld [vmem:[%s7355_s3 + $0x148] sm:$0xff]   ;;  %v450_v23 = vld [vmem:[#allocation2 + $0x3c] sm:$0x1]  ;;  %v5578_v34 = vld [vmem:[%s7355_s3 + $0x140] sm:$0xff]  }
  0x44   : > { %v6027_v11 = vld [vmem:[#allocation2 + $0x24] sm:$0xff]   ;;  %v6034_v44 = vld [vmem:[#allocation2 + $0x2c] ss:$0 sps:$4 sm:$0x11]   ;;  %1041 = vst [vmem:[#allocation2 + $0xb8] sm:$0xf] %v871_v42  ;;  %v4751_v9 = vpack.c.bf16 %v409_v58, %v409_v58  ;;  %v4803_v26 = vunpack.c.l.bf16 %v4932_v3  ;;  %v4807_v35 = vunpack.c.l.bf16 %v6051_v16 }
  0x45   : > { %5374 = vmatpush3.bf16.msra.mxu1 %v5564_v52  ;;  %1044 = vst [vmem:[#allocation2 + $0xbc] sm:$0x1] %v1043_v62  ;;  %v670_v45 = vshrl.u32 %v4727_v39, 16  ;;  %v673_v46 = vshll.u32 %v4727_v39, 16  ;;  %v678_v47 = vshrl.u32 %v4728_v40, 16  ;;  %v1925_v49 = vsel %vm1244_vm9, %v1920_v53, %v1924_v36  ;;  %v5571_v52 = vld [vmem:[%s7355_s3 + $0x150] sm:$0xff]  }
  0x46   : > { %5375 = vmatprep.subr.bf16.mxu1 %v5570_v27  ;;  %v1783_v50 = vshrl.u32 %v6027_v11, 16  ;;  %v1785_v51 = vshll.u32 %v6027_v11, 16  ;;  %v681_v54 = vshll.u32 %v4728_v40, 16  ;;  %2359 = vmatprep.mubr.bf16.mxu1 %v1925_v49  ;;  %v1790_v55 = vshll.u32 %v6034_v44, 16  ;;  %v5592_v43 = vld [vmem:[%s7355_s3 + $0x98] sm:$0xff]  }
  0x47   : > { %v672_v56 = vrot.slane %v670_v45, 7  ;;  %v680_v57 = vrot.slane %v678_v47, 7  ;;  %2360 = vmatmul.mubr.bf16.gmra.mxu1 %v6009_v1  ;;  %v410_v60 = vmax.f32 %v378_v48, 0.0  ;;  %v484_v61 = vsel %vm5821_vm3, 0, %v483_v41  ;;  %v500_v41 = vld [vmem:[#allocation2 + $0x44] sm:$0x1]  ;;  %5423 = vmatprep.subr.bf16.mxu0 %v5592_v43 }
  0x48   : > { %v1787_v59 = vrot.slane %v1785_v51, 1  ;;  %v534_v0 = vsel %vm5831_vm4, 0, %v533_v10  ;;  %v1792_v4 = vrot.slane %v1790_v55, 1  ;;  %v961_v15 = vld [vmem:[#allocation2 + $0x30] sm:$0xf]  ;;  %v874_v33 = vshrl.u32 %v4751_v9, 16  ;;  %5424 = vmatpush3.bf16.msra.mxu0 %v5592_v43 }
  0x49   : > { %5376 = vmatpush3.bf16.msra.mxu1 %v5570_v27  ;;  %v675_v5 = vor.u32 %v673_v46, %v672_v56  ;;  %v676_v6 = vrot.slane %v672_v56, 4  ;;  %v683_v7 = vor.u32 %v681_v54, %v680_v57  ;;  %485 = vst [vmem:[#allocation2 + $0xc0] sm:$0x1] %v484_v61  ;;  %535 = vst [vmem:[#allocation2 + $0xc8] sm:$0x1] %v534_v0  ;;  %v685_v17 = vrot.slane %v680_v57, 4 }
  0x4a   : > { %v1788_v1 = vor.u32 %v1787_v59, %v1783_v50  ;;  %5377 = vmatprep.subr.bf16.mxu1 %v5571_v52  ;;  %v965_v20 = vld [vmem:[#allocation2 + $0x38] sm:$0x1]  ;;  %v4752_v21 = vpack.c.bf16 %v410_v60, %v410_v60  ;;  %v4804_v27 = vunpack.c.h.bf16 %v4932_v3  ;;  %v877_v30 = vshll.u32 %v4751_v9, 16 }
  0x4b   : > { %v684_v25 = vsel %vm5879_vm7, %v676_v6, %v683_v7  ;;  %v962_v63 = vsel %vm5887_vm8, %v675_v5, %v961_v15  ;;  %v6061_v29 = vld [vmem:[#allocation2 + $0xb4] sm:$0xff]   ;;  %v966_v32 = vsel %vm5821_vm3, %v685_v17, %v965_v20  ;;  %v317_v40 = vmul.f32 %v4803_v26, %v5806_v12 }
  0x4c   : > { %v1793_v28 = vsel %vm1244_vm9, %v1788_v1, %v1792_v4  ;;  %963 = vst [vmem:[#allocation2 + $0x30] sm:$0xf] %v962_v63  ;;  %964 = vst [vmem:[#allocation2 + $0x34] sm:$0xf] %v684_v25  ;;  %v882_v38 = vshrl.u32 %v4752_v21, 16  ;;  %v885_v39 = vshll.u32 %v4752_v21, 16  ;;  %v318_v62 = vmul.f32 %v4804_v27, %v5806_v12 }
  0x4d   : > { %2271 = vmatprep.mubr.bf16.mxu0 %v1793_v28  ;;  %v5569_v36 = vld [vmem:[#allocation2 + $0xbc] ss:$0 sps:$4 sm:$0x11]   ;;  %5378 = vmatpush3.bf16.msra.mxu1 %v5571_v52  ;;  %967 = vst [vmem:[#allocation2 + $0x38] sm:$0x1] %v966_v32  ;;  %v1927_v10 = vshrl.u32 %v6061_v29, 16  ;;  %v355_v47 = vadd.f32 %v5817_v18, %v317_v40  ;;  %v4808_v9 = vunpack.c.h.bf16 %v6051_v16 }
  0x4e   : > { %v1929_v53 = vshll.u32 %v6061_v29, 16  ;;  %2272 = vmatmul.mubr.bf16.gmra.mxu0 %v6027_v11  ;;  %v876_v42 = vrot.slane %v874_v33, 7  ;;  %5379 = vmatprep.subr.bf16.mxu1 %v5576_v22  ;;  %v1934_v45 = vshll.u32 %v5569_v36, 16  ;;  %v884_v46 = vrot.slane %v882_v38, 7  ;;  %v6108_v28 = vld [vmem:[%s5794_s16 + $0x30] sm:$0xff]  }
  0x4f   : > { %v451_v48 = vsel %vm5821_vm3, 0, %v450_v23  ;;  %v356_v55 = vadd.f32 %v5817_v18, %v318_v62  ;;  %v387_v58 = vmax.f32 %v355_v47, 0.0  ;;  %v501_v0 = vsel %vm5831_vm4, 0, %v500_v41  ;;  %v5581_v18 = vld [vmem:[%s7355_s3 + $0x78] sm:$0xff]   ;;  %v6130_v16 = vld [vmem:[%s7354_s2] ss:$0 sm:$0xff] }
  0x50   : > { %v1931_v49 = vrot.slane %v1929_v53, 1  ;;  %v879_v50 = vor.u32 %v877_v30, %v876_v42  ;;  %v880_v51 = vrot.slane %v876_v42, 4  ;;  %v1045_v52 = vld [vmem:[#allocation2 + $0xc0] sm:$0xf]  ;;  %v1049_v54 = vld [vmem:[#allocation2 + $0xc8] sm:$0x1]  ;;  %v887_v56 = vor.u32 %v885_v39, %v884_v46 }
  0x51   : > { %452 = vst [vmem:[#allocation2 + $0x3c] sm:$0x1] %v451_v48  ;;  %v1936_v12 = vrot.slane %v1934_v45, 1  ;;  %v889_v57 = vrot.slane %v884_v46, 4  ;;  %5380 = vmatpush3.bf16.msra.mxu1 %v5576_v22  ;;  %v388_v61 = vmax.f32 %v356_v55, 0.0  ;;  %v4729_v6 = vpack.c.bf16 %v387_v58, %v387_v58 }
  0x52   : > { %v1932_v59 = vor.u32 %v1931_v49, %v1927_v10  ;;  %v1046_v60 = vsel %vm5887_vm8, %v879_v50, %v1045_v52  ;;  %5381 = vmatprep.subr.bf16.mxu1 %v5578_v34  ;;  %v888_v4 = vsel %vm5879_vm7, %v880_v51, %v887_v56  ;;  %502 = vst [vmem:[#allocation2 + $0x44] sm:$0x1] %v501_v0  ;;  %v1966_v7 = vrot.slane %v5930_v13, 1  ;;  %v6115_v39 = vld [vmem:[%s7353_s1] ss:$0 sm:$0xff] }
  0x53   : > { %v6088_v3 = vld [vmem:[#allocation2 + $0x30] sm:$0xff]   ;;  %1047 = vst [vmem:[#allocation2 + $0xc0] sm:$0xf] %v1046_v60  ;;  %v1050_v5 = vsel %vm5821_vm3, %v889_v57, %v1049_v54  ;;  %1048 = vst [vmem:[#allocation2 + $0xc4] sm:$0xf] %v888_v4  ;;  %v4730_v17 = vpack.c.bf16 %v388_v61, %v388_v61  ;;  %v1967_v20 = vrot.slane %v5932_v14, 1  ;;  %v319_v40 = vmul.f32 %v6115_v39, %v4807_v35 }
  0x54   : > { %v1937_v15 = vsel %vm1244_vm9, %v1932_v59, %v1936_v12  ;;  %v6096_v1 = vld [vmem:[#allocation2 + $0x38] ss:$0 sps:$4 sm:$0x11]   ;;  %1051 = vst [vmem:[#allocation2 + $0xc8] sm:$0x1] %v1050_v5  ;;  %v1795_v21 = vshrl.u32 %v6088_v3, 16  ;;  %v320_v41 = vmul.f32 %v6115_v39, %v4808_v9  ;;  %v4811_v52 = vunpack.c.l.bf16 %v6108_v28 }
  0x55   : > { %2367 = vmatprep.mubr.bf16.mxu1 %v1937_v15  ;;  %v1797_v22 = vshll.u32 %v6088_v3, 16  ;;  %5382 = vmatpush3.bf16.msra.mxu1 %v5578_v34  ;;  %v687_v23 = vshrl.u32 %v4729_v6, 16  ;;  %v690_v13 = vshll.u32 %v4729_v6, 16  ;;  %v1802_v25 = vshll.u32 %v6096_v1, 16  ;;  %v453_v14 = vld [vmem:[#allocation2 + $0x48] sm:$0x1] }
  0x56   : > { %2368 = vmatmul.mubr.bf16.gmra.mxu1 %v6061_v29  ;;  %v695_v63 = vshrl.u32 %v4730_v17, 16  ;;  %v698_v26 = vshll.u32 %v4730_v17, 16  ;;  %v6105_v27 = vsel %vm1453_vm10, %v1966_v7, %v1967_v20  ;;  %5095 = vmatprep.subr.bf16.mxu1 %v5581_v18  ;;  %v1969_v34 = vrot.slane %v5973_v31, 1  ;;  %v503_v10 = vld [vmem:[#allocation2 + $0x50] sm:$0x1] }
  0x57   : > { %v1799_v32 = vrot.slane %v1797_v22, 1  ;;  %v689_v33 = vrot.slane %v687_v23, 7  ;;  %v1970_v30 = vrot.slane %v5983_v37, 1  ;;  %v1804_v38 = vrot.slane %v1802_v25, 1  ;;  %v5597_v37 = vld [vmem:[%s7355_s3 + $0x90] sm:$0xff]  }
  0x58   : > { %v968_v36 = vld [vmem:[#allocation2 + $0x3c] sm:$0xf]  ;;  %v697_v29 = vrot.slane %v695_v63, 7  ;;  %v357_v35 = vadd.f32 %v6130_v16, %v319_v40  ;;  %v358_v47 = vadd.f32 %v6130_v16, %v320_v41  ;;  %v454_v51 = vsel %vm5821_vm3, 0, %v453_v14  ;;  %5425 = vmatprep.subr.bf16.mxu0 %v5597_v37  ;;  %v456_v6 = vld [vmem:[#allocation2 + $0x54] sm:$0x1] }
  0x59   : > { %v1800_v53 = vor.u32 %v1799_v32, %v1795_v21  ;;  %v692_v42 = vor.u32 %v690_v13, %v689_v33  ;;  %v693_v62 = vrot.slane %v689_v33, 4  ;;  %v6122_v31 = vsel %vm1453_vm10, %v1969_v34, %v1970_v30  ;;  %v972_v46 = vld [vmem:[#allocation2 + $0x44] sm:$0x1]  ;;  %455 = vst [vmem:[#allocation2 + $0x48] sm:$0x1] %v454_v51  ;;  %5426 = vmatpush3.bf16.msra.mxu0 %v5597_v37  ;;  %v4935_v13 = vld [vmem:[%s5794_s16 + $0x38] sm:$0xff]  }
  0x5a   : > { %v700_v43 = vor.u32 %v698_v26, %v697_v29  ;;  %v702_v45 = vrot.slane %v697_v29, 4  ;;  %v6135_v49 = vld [vmem:[#allocation2 + $0xc0] sm:$0xff]   ;;  %v389_v56 = vmax.f32 %v357_v35, 0.0  ;;  %v390_v57 = vmax.f32 %v358_v47, 0.0  ;;  %v506_v7 = vld [vmem:[#allocation2 + $0x5c] sm:$0x1] }
  0x5b   : > { %v1805_v48 = vsel %vm1244_vm9, %v1800_v53, %v1804_v38  ;;  %v969_v50 = vsel %vm5887_vm8, %v692_v42, %v968_v36  ;;  %v6142_v54 = vld [vmem:[#allocation2 + $0xc8] ss:$0 sps:$4 sm:$0x11]   ;;  %v1939_v58 = vshrl.u32 %v6135_v49, 16  ;;  %v1941_v59 = vshll.u32 %v6135_v49, 16 }
  0x5c   : > { %2279 = vmatprep.mubr.bf16.mxu0 %v1805_v48  ;;  %v701_v55 = vsel %vm5879_vm7, %v693_v62, %v700_v43  ;;  %970 = vst [vmem:[#allocation2 + $0x3c] sm:$0xf] %v969_v50  ;;  %v973_v12 = vsel %vm5821_vm3, %v702_v45, %v972_v46  ;;  %v504_v60 = vsel %vm5831_vm4, 0, %v503_v10  ;;  %v1972_v61 = vrot.slane %v6027_v11, 1  ;;  %v459_v50 = vld [vmem:[#allocation2 + $0x60] sm:$0x1] }
  0x5d   : > { %2280 = vmatmul.mubr.bf16.gmra.mxu0 %v6088_v3  ;;  %971 = vst [vmem:[#allocation2 + $0x40] sm:$0xf] %v701_v55  ;;  %974 = vst [vmem:[#allocation2 + $0x44] sm:$0x1] %v973_v12  ;;  %v1946_v0 = vshll.u32 %v6142_v54, 16  ;;  %v4731_v18 = vpack.c.bf16 %v389_v56, %v389_v56  ;;  %v4732_v4 = vpack.c.bf16 %v390_v57, %v390_v57  ;;  %v1973_v5 = vrot.slane %v6034_v44, 1 }
  0x5e   : > { %505 = vst [vmem:[#allocation2 + $0x50] sm:$0x1] %v504_v60  ;;  %v1943_v15 = vrot.slane %v1941_v59, 1  ;;  %v1975_v17 = vrot.slane %v6088_v3, 1  ;;  %v1976_v20 = vrot.slane %v6096_v1, 1  ;;  %v4812_v9 = vunpack.c.h.bf16 %v6108_v28 }
  0x5f   : > { %v1948_v21 = vrot.slane %v1946_v0, 1  ;;  %v704_v22 = vshrl.u32 %v4731_v18, 16  ;;  %v707_v11 = vshll.u32 %v4731_v18, 16  ;;  %v712_v23 = vshrl.u32 %v4732_v4, 16 }
  0x60   : > { %v1944_v25 = vor.u32 %v1943_v15, %v1939_v58  ;;  %v715_v63 = vshll.u32 %v4732_v4, 16  ;;  %v6161_v26 = vsel %vm1453_vm10, %v1972_v61, %v1973_v5  ;;  %v6164_v44 = vsel %vm1453_vm10, %v1975_v17, %v1976_v20  ;;  %v975_v33 = vld [vmem:[#allocation2 + $0x48] sm:$0xf]  ;;  %v462_v5 = vld [vmem:[#allocation2 + $0x6c] sm:$0x1] }
  0x61   : > { %v706_v14 = vrot.slane %v704_v22, 7  ;;  %v714_v32 = vrot.slane %v712_v23, 7  ;;  %v321_v3 = vmul.f32 %v6115_v39, %v4811_v52  ;;  %v322_v1 = vmul.f32 %v6115_v39, %v4812_v9  ;;  %v509_v4 = vld [vmem:[#allocation2 + $0x68] sm:$0x1]  ;;  %v6204_v9 = vld [vmem:[%s5794_s16 + $0x40] sm:$0xff]  }
  0x62   : > { %v1949_v28 = vsel %vm1244_vm9, %v1944_v25, %v1948_v21  ;;  %v457_v36 = vsel %vm5821_vm3, 0, %v456_v6  ;;  %v507_v34 = vsel %vm5831_vm4, 0, %v506_v7  ;;  %v4815_v30 = vunpack.c.l.bf16 %v4935_v13  ;;  %v5610_v6 = vld [vmem:[%s7355_s3 + $0x88] sm:$0xff]   ;;  %v5586_v21 = vld [vmem:[%s7355_s3 + $0x70] sm:$0xff]  }
  0x63   : > { %2375 = vmatprep.mubr.bf16.mxu1 %v1949_v28  ;;  %v709_v29 = vor.u32 %v707_v11, %v706_v14  ;;  %v710_v40 = vrot.slane %v706_v14, 4  ;;  %v717_v41 = vor.u32 %v715_v63, %v714_v32  ;;  %v359_v10 = vadd.f32 %v6130_v16, %v321_v3  ;;  %458 = vst [vmem:[#allocation2 + $0x54] sm:$0x1] %v457_v36  ;;  %v6210_v25 = vld [vmem:[%s5794_s16 + $0x48] sm:$0xff]   ;;  %v5587_v14 = vld [vmem:[%s7355_s3 + $0x30] sm:$0xff]  }
  0x64   : > { %v6173_v38 = vld [vmem:[#allocation2 + $0x3c] sm:$0xff]   ;;  %508 = vst [vmem:[#allocation2 + $0x5c] sm:$0x1] %v507_v34  ;;  %2376 = vmatmul.mubr.bf16.gmra.mxu1 %v6135_v49  ;;  %v5580_v53 = vld [vmem:[#allocation2 + $0x44] ss:$0 sps:$4 sm:$0x11]   ;;  %v360_v37 = vadd.f32 %v6130_v16, %v322_v1  ;;  %v4816_v43 = vunpack.c.h.bf16 %v4935_v13  ;;  %v323_v45 = vmul.f32 %v6115_v39, %v4815_v30  ;;  %5427 = vmatprep.subr.bf16.mxu0 %v5610_v6 }
  0x65   : > { %v719_v42 = vrot.slane %v714_v32, 4  ;;  %v979_v62 = vld [vmem:[#allocation2 + $0x50] sm:$0x1]  ;;  %v1807_v46 = vshrl.u32 %v6173_v38, 16  ;;  %v1809_v35 = vshll.u32 %v6173_v38, 16  ;;  %5383 = vmatprep.mubr.bf16.mxu1 %v6105_v27  ;;  %v718_v47 = vsel %vm5879_vm7, %v710_v40, %v717_v41  ;;  %v5582_v27 = vld [vmem:[%s7355_s3 + $0x38] sm:$0xff]   ;;  %5428 = vmatpush3.bf16.msra.mxu0 %v5610_v6 }
  0x66   : > { %v976_v48 = vsel %vm5887_vm8, %v709_v29, %v975_v33  ;;  %v1814_v51 = vshll.u32 %v5580_v53, 16  ;;  %978 = vst [vmem:[#allocation2 + $0x4c] sm:$0xf] %v718_v47  ;;  %v391_v55 = vmax.f32 %v359_v10, 0.0  ;;  %v392_v12 = vmax.f32 %v360_v37, 0.0  ;;  %v5590_v30 = vld [vmem:[%s7355_s3 + $0x68] sm:$0xff]  }
  0x67   : > { %977 = vst [vmem:[#allocation2 + $0x48] sm:$0xf] %v976_v48  ;;  %v980_v52 = vsel %vm5821_vm3, %v719_v42, %v979_v62  ;;  %v1811_v56 = vrot.slane %v1809_v35, 1  ;;  %v1978_v57 = vrot.slane %v6173_v38, 1  ;;  %v1979_v58 = vrot.slane %v5580_v53, 1 }
  0x68   : > { %981 = vst [vmem:[#allocation2 + $0x50] sm:$0x1] %v980_v52  ;;  %v324_v59 = vmul.f32 %v6115_v39, %v4816_v43  ;;  %v1816_v60 = vrot.slane %v1814_v51, 1  ;;  %v4733_v61 = vpack.c.bf16 %v391_v55, %v391_v55  ;;  %v4734_v0 = vpack.c.bf16 %v392_v12, %v392_v12 }
  0x69   : > { %v361_v18 = vadd.f32 %v6130_v16, %v323_v45  ;;  %v1812_v7 = vor.u32 %v1811_v56, %v1807_v46  ;;  %v6198_v15 = vsel %vm1453_vm10, %v1978_v57, %v1979_v58  ;;  %v460_v20 = vsel %vm5821_vm3, 0, %v459_v50  ;;  %v5591_v50 = vld [vmem:[%s7355_s3 + $0x28] sm:$0xff]   ;;  %v512_v58 = vld [vmem:[#allocation2 + $0x74] sm:$0x1] }
  0x6a   : > { %v362_v17 = vadd.f32 %v6130_v16, %v324_v59  ;;  %v721_v22 = vshrl.u32 %v4733_v61, 16  ;;  %v724_v11 = vshll.u32 %v4733_v61, 16  ;;  %v729_v23 = vshrl.u32 %v4734_v0, 16  ;;  %461 = vst [vmem:[#allocation2 + $0x60] sm:$0x1] %v460_v20  ;;  %v5613_v59 = vld [vmem:[%s7355_s3 + $0x80] sm:$0xff]  }
  0x6b   : > { %v732_v13 = vshll.u32 %v4734_v0, 16  ;;  %v1817_v63 = vsel %vm1244_vm9, %v1812_v7, %v1816_v60  ;;  %v982_v32 = vld [vmem:[#allocation2 + $0x54] sm:$0xf]  ;;  %v393_v3 = vmax.f32 %v361_v18, 0.0  ;;  %v510_v28 = vsel %vm5831_vm4, 0, %v509_v4  ;;  %v5595_v4 = vld [vmem:[%s7355_s3 + $0x60] sm:$0xff]   ;;  %5429 = vmatprep.subr.bf16.mxu0 %v5613_v59 }
  0x6c   : > { %v394_v1 = vmax.f32 %v362_v17, 0.0  ;;  %2287 = vmatprep.mubr.bf16.mxu0 %v1817_v63  ;;  %5384 = vmatmul.mubr.bf16.vlgmr.msra.gmra.mxu1 %v6122_v31  ;;  %v723_v33 = vrot.slane %v721_v22, 7  ;;  %v731_v36 = vrot.slane %v729_v23, 7  ;;  %v986_v34 = vld [vmem:[#allocation2 + $0x5c] sm:$0x1]  ;;  %v4819_v29 = vunpack.c.l.bf16 %v6204_v9  ;;  %v5596_v20 = vld [vmem:[%s7355_s3 + $0x20] sm:$0xff]  }
  0x6d   : > { %511 = vst [vmem:[#allocation2 + $0x68] sm:$0x1] %v510_v28  ;;  %v4820_v40 = vunpack.c.h.bf16 %v6204_v9  ;;  %2288 = vmatmul.mubr.bf16.gmra.mxu0 %v6173_v38  ;;  %5096 = vmatpush3.bf16.msra.mxu1 %v5582_v27  ;;  %v4735_v10 = vpack.c.bf16 %v393_v3, %v393_v3  ;;  %v463_v31 = vsel %vm5821_vm3, 0, %v462_v5  ;;  %v4823_v42 = vunpack.c.l.bf16 %v6210_v25  ;;  %v465_v5 = vld [vmem:[#allocation2 + $0x78] sm:$0x1]  ;;  %v6270_v28 = vld [vmem:[%s5794_s16 + $0x50] sm:$0xff]  }
  0x6e   : > { %v6225_v41 = vld [vmem:[#allocation2 + $0x48] sm:$0xff]   ;;  %v4736_v53 = vpack.c.bf16 %v394_v1, %v394_v1  ;;  %5387 = vmatprep.mubr.bf16.mxu1 %v6161_v26  ;;  %5097 = vmatprep.subr.bf16.mxu1 %v5586_v21  ;;  %v726_v37 = vor.u32 %v724_v11, %v723_v33  ;;  %v727_v43 = vrot.slane %v723_v33, 4  ;;  %v734_v45 = vor.u32 %v732_v13, %v731_v36  ;;  %v5600_v23 = vld [vmem:[%s7355_s3 + $0x58] sm:$0xff]  }
  0x6f   : > { %v5585_v62 = vld [vmem:[#allocation2 + $0x50] ss:$0 sps:$4 sm:$0x11]   ;;  %v325_v46 = vmul.f32 %v6115_v39, %v4819_v29  ;;  %464 = vst [vmem:[#allocation2 + $0x6c] sm:$0x1] %v463_v31  ;;  %v1819_v38 = vshrl.u32 %v6225_v41, 16  ;;  %v326_v9 = vmul.f32 %v6115_v39, %v4820_v40  ;;  %v4824_v13 = vunpack.c.h.bf16 %v6210_v25  ;;  %5430 = vmatpush3.bf16.msra.mxu0 %v5613_v59 }
  0x70   : > { %v1821_v35 = vshll.u32 %v6225_v41, 16  ;;  %v736_v47 = vrot.slane %v731_v36, 4  ;;  %v1981_v48 = vrot.slane %v6225_v41, 1  ;;  %v1826_v51 = vshll.u32 %v5585_v62, 16 }
  0x71   : > { %v735_v26 = vsel %vm5879_vm7, %v727_v43, %v734_v45  ;;  %v983_v52 = vsel %vm5887_vm8, %v726_v37, %v982_v32  ;;  %v1982_v55 = vrot.slane %v5585_v62, 1  ;;  %5098 = vmatpush3.bf16.msra.mxu1 %v5587_v14  ;;  %v738_v27 = vshrl.u32 %v4735_v10, 16  ;;  %v989_v17 = vld [vmem:[#allocation2 + $0x60] sm:$0xf]  ;;  %v5606_v43 = vld [vmem:[%s7355_s3 + $0x50] sm:$0xff]  }
  0x72   : > { %v1823_v12 = vrot.slane %v1821_v35, 1  ;;  %984 = vst [vmem:[#allocation2 + $0x54] sm:$0xf] %v983_v52  ;;  %985 = vst [vmem:[#allocation2 + $0x58] sm:$0xf] %v735_v26  ;;  %v987_v56 = vsel %vm5821_vm3, %v736_v47, %v986_v34  ;;  %v741_v57 = vshll.u32 %v4735_v10, 16  ;;  %5099 = vmatprep.subr.bf16.mxu1 %v5590_v30  ;;  %v363_v21 = vadd.f32 %v6130_v16, %v325_v46 }
  0x73   : > { %v1828_v60 = vrot.slane %v1826_v51, 1  ;;  %988 = vst [vmem:[#allocation2 + $0x5c] sm:$0x1] %v987_v56  ;;  %v6248_v61 = vsel %vm1453_vm10, %v1981_v48, %v1982_v55  ;;  %v746_v0 = vshrl.u32 %v4736_v53, 16  ;;  %v749_v18 = vshll.u32 %v4736_v53, 16  ;;  %v5603_v10 = vld [vmem:[%s7355_s3 + $0x18] sm:$0xff]  }
  0x74   : > { %v1824_v6 = vor.u32 %v1823_v12, %v1819_v38  ;;  %v740_v7 = vrot.slane %v738_v27, 7  ;;  %5388 = vmatmul.mubr.bf16.gmra.mxu1 %v6164_v44  ;;  %v513_v11 = vsel %vm5831_vm4, 0, %v512_v58  ;;  %v327_v63 = vmul.f32 %v6115_v39, %v4823_v42  ;;  %v993_v3 = vld [vmem:[#allocation2 + $0x68] sm:$0x1]  ;;  %v515_v37 = vld [vmem:[#allocation2 + $0x80] sm:$0x1] }
  0x75   : > { %v748_v22 = vrot.slane %v746_v0, 7  ;;  %5391 = vmatprep.mubr.bf16.mxu1 %v6198_v15  ;;  %5100 = vmatpush3.bf16.msra.mxu1 %v5591_v50  ;;  %v364_v1 = vadd.f32 %v6130_v16, %v326_v9  ;;  %514 = vst [vmem:[#allocation2 + $0x74] sm:$0x1] %v513_v11  ;;  %v395_v25 = vmax.f32 %v363_v21, 0.0  ;;  %v328_v34 = vmul.f32 %v6115_v39, %v4824_v13  ;;  %v5611_v21 = vld [vmem:[%s7355_s3 + $0x48] sm:$0xff]  }
  0x76   : > { %v1829_v14 = vsel %vm1244_vm9, %v1824_v6, %v1828_v60  ;;  %v743_v32 = vor.u32 %v741_v57, %v740_v7  ;;  %v744_v44 = vrot.slane %v740_v7, 4  ;;  %5101 = vmatprep.subr.bf16.mxu1 %v5595_v4  ;;  %v365_v29 = vadd.f32 %v6130_v16, %v327_v63  ;;  %v996_v59 = vld [vmem:[#allocation2 + $0x6c] sm:$0xf]  ;;  %v5609_v6 = vld [vmem:[%s7355_s3 + $0x10] sm:$0xff]  }
  0x77   : > { %2295 = vmatprep.mubr.bf16.mxu0 %v1829_v14  ;;  %v751_v33 = vor.u32 %v749_v18, %v748_v22  ;;  %v753_v36 = vrot.slane %v748_v22, 4  ;;  %v396_v30 = vmax.f32 %v364_v1, 0.0  ;;  %v466_v40 = vsel %vm5821_vm3, 0, %v465_v5  ;;  %v5612_v63 = vld [vmem:[%s7355_s3 + $0x8] sm:$0xff]   ;;  %v5621_v14 = vld [vmem:[%s7355_s3 + $0x1f8] sm:$0xff]  }
  0x78   : > { %2296 = vmatmul.mubr.bf16.gmra.mxu0 %v6225_v41  ;;  %v990_v15 = vsel %vm5887_vm8, %v743_v32, %v989_v17  ;;  %v4737_v42 = vpack.c.bf16 %v395_v25, %v395_v25  ;;  %v366_v62 = vadd.f32 %v6130_v16, %v328_v34  ;;  %467 = vst [vmem:[#allocation2 + $0x78] sm:$0x1] %v466_v40  ;;  %v397_v38 = vmax.f32 %v365_v29, 0.0  ;;  %v5614_v29 = vld [vmem:[%s7355_s3 + $0x40] sm:$0xff]  }
  0x79   : > { %v6282_v53 = vld [vmem:[#allocation2 + $0x54] sm:$0xff]   ;;  %v752_v31 = vsel %vm5879_vm7, %v744_v44, %v751_v33  ;;  %991 = vst [vmem:[#allocation2 + $0x60] sm:$0xf] %v990_v15  ;;  %v994_v41 = vsel %vm5821_vm3, %v753_v36, %v993_v3  ;;  %5102 = vmatpush3.bf16.msra.mxu1 %v5596_v20  ;;  %v4738_v46 = vpack.c.bf16 %v396_v30, %v396_v30  ;;  %v4827_v35 = vunpack.c.l.bf16 %v6270_v28 }
  0x7a   : > { %v5589_v45 = vld [vmem:[#allocation2 + $0x5c] ss:$0 sps:$4 sm:$0x11]   ;;  %992 = vst [vmem:[#allocation2 + $0x64] sm:$0xf] %v752_v31  ;;  %v4828_v47 = vunpack.c.h.bf16 %v6270_v28  ;;  %v1831_v48 = vshrl.u32 %v6282_v53, 16  ;;  %5103 = vmatprep.subr.bf16.mxu1 %v5600_v23  ;;  %v4739_v9 = vpack.c.bf16 %v397_v38, %v397_v38  ;;  %5231 = vmatprep.subr.bf16.mxu0 %v5621_v14 }
  0x7b   : > { %995 = vst [vmem:[#allocation2 + $0x68] sm:$0x1] %v994_v41  ;;  %v1833_v50 = vshll.u32 %v6282_v53, 16  ;;  %v1984_v51 = vrot.slane %v6282_v53, 1  ;;  %v755_v26 = vshrl.u32 %v4737_v42, 16  ;;  %v1838_v52 = vshll.u32 %v5589_v45, 16 }
  0x7c   : > { %v1985_v55 = vrot.slane %v5589_v45, 1  ;;  %v758_v12 = vshll.u32 %v4737_v42, 16  ;;  %v763_v56 = vshrl.u32 %v4738_v46, 16  ;;  %5392 = vmatmul.mubr.bf16.gmra.mxu1 %v6248_v61  ;;  %v766_v58 = vshll.u32 %v4738_v46, 16  ;;  %v1000_v20 = vld [vmem:[#allocation2 + $0x74] sm:$0x1] }
  0x7d   : > { %v1835_v27 = vrot.slane %v1833_v50, 1  ;;  %v757_v57 = vrot.slane %v755_v26, 7  ;;  %v398_v60 = vmax.f32 %v366_v62, 0.0  ;;  %v1840_v0 = vrot.slane %v1838_v52, 1  ;;  %5104 = vmatpush3.bf16.msra.mxu1 %v5603_v10  ;;  %v468_v42 = vld [vmem:[#allocation2 + $0x84] sm:$0x1] }
  0x7e   : > { %v1986_v18 = vsel %vm1453_vm10, %v1984_v51, %v1985_v55  ;;  %v765_v4 = vrot.slane %v763_v56, 7  ;;  %v516_v5 = vsel %vm5831_vm4, 0, %v515_v37  ;;  %5105 = vmatprep.subr.bf16.mxu1 %v5606_v43  ;;  %v329_v13 = vmul.f32 %v6115_v39, %v4827_v35  ;;  %v518_v62 = vld [vmem:[#allocation2 + $0x8c] sm:$0x1]  ;;  %v4939_v38 = vld [vmem:[%s5794_s16 + $0x58] sm:$0xff]  }
  0x7f   : > { %v1836_v7 = vor.u32 %v1835_v27, %v1831_v48  ;;  %5395 = vmatprep.mubr.bf16.mxu1 %v1986_v18  ;;  %v760_v17 = vor.u32 %v758_v12, %v757_v57  ;;  %v761_v61 = vrot.slane %v757_v57, 4  ;;  %517 = vst [vmem:[#allocation2 + $0x80] sm:$0x1] %v516_v5  ;;  %v4740_v23 = vpack.c.bf16 %v398_v60, %v398_v60  ;;  %v1003_v30 = vld [vmem:[#allocation2 + $0x78] sm:$0xf] }
  0x80   : > { %v768_v22 = vor.u32 %v766_v58, %v765_v4  ;;  %v770_v11 = vrot.slane %v765_v4, 4  ;;  %v772_v1 = vshrl.u32 %v4739_v9, 16  ;;  %v330_v28 = vmul.f32 %v6115_v39, %v4828_v47  ;;  %v471_v51 = vld [vmem:[#allocation2 + $0x90] sm:$0x1]  ;;  %v6343_v60 = vld [vmem:[%s7355_s3 + $0x238] sm:$0xff]  }
  0x81   : > { %v1841_v32 = vsel %vm1244_vm9, %v1836_v7, %v1840_v0  ;;  %v6315_v44 = vld [vmem:[#allocation2 + $0x60] sm:$0xff]   ;;  %v997_v3 = vsel %vm5887_vm8, %v760_v17, %v996_v59  ;;  %v775_v34 = vshll.u32 %v4739_v9, 16  ;;  %v780_v15 = vshrl.u32 %v4740_v23, 16  ;;  %5106 = vmatpush3.bf16.msra.mxu1 %v5609_v6 }
  0x82   : > { %2303 = vmatprep.mubr.bf16.mxu0 %v1841_v32  ;;  %v5594_v33 = vld [vmem:[#allocation2 + $0x68] ss:$0 sps:$4 sm:$0x11]   ;;  %v769_v36 = vsel %vm5879_vm7, %v761_v61, %v768_v22  ;;  %998 = vst [vmem:[#allocation2 + $0x6c] sm:$0xf] %v997_v3  ;;  %v1001_v25 = vsel %vm5821_vm3, %v770_v11, %v1000_v20  ;;  %v1843_v40 = vshrl.u32 %v6315_v44, 16  ;;  %5107 = vmatprep.subr.bf16.mxu1 %v5611_v21  ;;  %v4831_v61 = vunpack.c.l.bf16 %v4939_v38 }
  0x83   : > { %2304 = vmatmul.mubr.bf16.gmra.mxu0 %v6282_v53  ;;  %v1845_v10 = vshll.u32 %v6315_v44, 16  ;;  %v1987_v31 = vrot.slane %v6315_v44, 1  ;;  %999 = vst [vmem:[#allocation2 + $0x70] sm:$0xf] %v769_v36  ;;  %1002 = vst [vmem:[#allocation2 + $0x74] sm:$0x1] %v1001_v25  ;;  %v367_v50 = vadd.f32 %v6130_v16, %v329_v13  ;;  %v368_v58 = vadd.f32 %v6130_v16, %v330_v28 }
  0x84   : > { %v774_v41 = vrot.slane %v772_v1, 7  ;;  %v1850_v37 = vshll.u32 %v5594_v33, 16  ;;  %v1988_v43 = vrot.slane %v5594_v33, 1  ;;  %v782_v45 = vrot.slane %v780_v15, 7  ;;  %v5615_v53 = vld [vmem:[%s7355_s3] sm:$0xff]  }
  0x85   : > { %v783_v46 = vshll.u32 %v4740_v23, 16  ;;  %v1847_v35 = vrot.slane %v1845_v10, 1  ;;  %5108 = vmatpush3.bf16.msra.mxu1 %v5612_v63  ;;  %v399_v59 = vmax.f32 %v367_v50, 0.0  ;;  %v469_v4 = vsel %vm5821_vm3, 0, %v468_v42  ;;  %v521_v10 = vld [vmem:[#allocation2 + $0x98] sm:$0x1] }
  0x86   : > { %v777_v47 = vor.u32 %v775_v34, %v774_v41  ;;  %v778_v48 = vrot.slane %v774_v41, 4  ;;  %v1852_v26 = vrot.slane %v1850_v37, 1  ;;  %v1989_v52 = vsel %vm1453_vm10, %v1987_v31, %v1988_v43  ;;  %v1007_v56 = vld [vmem:[#allocation2 + $0x80] sm:$0x1]  ;;  %5109 = vmatprep.subr.bf16.mxu1 %v5614_v29  ;;  %470 = vst [vmem:[#allocation2 + $0x84] sm:$0x1] %v469_v4 }
  0x87   : > { %v785_v55 = vor.u32 %v783_v46, %v782_v45  ;;  %v787_v12 = vrot.slane %v782_v45, 4  ;;  %v1848_v27 = vor.u32 %v1847_v35, %v1843_v40  ;;  %5396 = vmatmul.mubr.bf16.gmra.mxu1 %v1989_v52  ;;  %v519_v5 = vsel %vm5831_vm4, 0, %v518_v62 }
  0x88   : > { %v1004_v57 = vsel %vm5887_vm8, %v777_v47, %v1003_v30  ;;  %v400_v7 = vmax.f32 %v368_v58, 0.0  ;;  %520 = vst [vmem:[#allocation2 + $0x8c] sm:$0x1] %v519_v5  ;;  %v4741_v17 = vpack.c.bf16 %v399_v59, %v399_v59  ;;  %v4832_v9 = vunpack.c.h.bf16 %v4939_v38 }
  0x89   : > { %v786_v0 = vsel %vm5879_vm7, %v778_v48, %v785_v55  ;;  %1005 = vst [vmem:[#allocation2 + $0x78] sm:$0xf] %v1004_v57  ;;  %v1008_v18 = vsel %vm5821_vm3, %v787_v12, %v1007_v56  ;;  %v1853_v6 = vsel %vm1244_vm9, %v1848_v27, %v1852_v26  ;;  %v472_v21 = vsel %vm5821_vm3, 0, %v471_v51  ;;  %5110 = vmatpush3.bf16.msra.mxu1 %v5615_v53 }
  0x8a   : > { %1006 = vst [vmem:[#allocation2 + $0x7c] sm:$0xf] %v786_v0  ;;  %1009 = vst [vmem:[#allocation2 + $0x80] sm:$0x1] %v1008_v18  ;;  %2311 = vmatprep.mubr.bf16.mxu0 %v1853_v6  ;;  %v5598_v20 = vld [vmem:[#allocation2 + $0x6c] sm:$0xff]   ;;  %v4742_v11 = vpack.c.bf16 %v400_v7, %v400_v7  ;;  %v789_v23 = vshrl.u32 %v4741_v17, 16  ;;  %v331_v63 = vmul.f32 %v6115_v39, %v4831_v61  ;;  %5463 = vmatprep.subr.bf16.mxu1 %v6343_v60 }
  0x8b   : > { %2312 = vmatmul.mubr.bf16.gmra.mxu0 %v6315_v44  ;;  %v5599_v22 = vld [vmem:[#allocation2 + $0x74] ss:$0 sps:$4 sm:$0x11]   ;;  %v792_v13 = vshll.u32 %v4741_v17, 16  ;;  %473 = vst [vmem:[#allocation2 + $0x90] sm:$0x1] %v472_v21  ;;  %v332_v1 = vmul.f32 %v6115_v39, %v4832_v9 }
  0x8c   : > { %v1855_v14 = vshrl.u32 %v5598_v20, 16  ;;  %v1857_v32 = vshll.u32 %v5598_v20, 16  ;;  %v1990_v3 = vrot.slane %v5598_v20, 1  ;;  %v1862_v28 = vshll.u32 %v5599_v22, 16 }
  0x8d   : > { %v1991_v33 = vrot.slane %v5599_v22, 1  ;;  %v791_v36 = vrot.slane %v789_v23, 7  ;;  %v797_v25 = vshrl.u32 %v4742_v11, 16  ;;  %v800_v44 = vshll.u32 %v4742_v11, 16  ;;  %v1010_v43 = vld [vmem:[#allocation2 + $0x84] sm:$0xf] }
  0x8e   : > { %v1859_v34 = vrot.slane %v1857_v32, 1  ;;  %v369_v15 = vadd.f32 %v6130_v16, %v331_v63  ;;  %v1864_v30 = vrot.slane %v1862_v28, 1  ;;  %v370_v39 = vadd.f32 %v6130_v16, %v332_v1 }
  0x8f   : > { %v1992_v29 = vsel %vm1453_vm10, %v1990_v3, %v1991_v33  ;;  %v795_v40 = vrot.slane %v791_v36, 4  ;;  %v794_v42 = vor.u32 %v792_v13, %v791_v36  ;;  %v799_v62 = vrot.slane %v797_v25, 7  ;;  %v1014_v47 = vld [vmem:[#allocation2 + $0x8c] sm:$0x1] }
  0x90   : > { %v1860_v31 = vor.u32 %v1859_v34, %v1855_v14  ;;  %5399 = vmatprep.mubr.bf16.mxu1 %v1992_v29  ;;  %v401_v45 = vmax.f32 %v369_v15, 0.0  ;;  %v402_v16 = vmax.f32 %v370_v39, 0.0  ;;  %v522_v12 = vsel %vm5831_vm4, 0, %v521_v10 }
  0x91   : > { %v5601_v41 = vld [vmem:[#allocation2 + $0x78] sm:$0xff]   ;;  %v5602_v37 = vld [vmem:[#allocation2 + $0x80] ss:$0 sps:$4 sm:$0x11]   ;;  %v802_v51 = vor.u32 %v800_v44, %v799_v62  ;;  %v804_v26 = vrot.slane %v799_v62, 4  ;;  %v1011_v55 = vsel %vm5887_vm8, %v794_v42, %v1010_v43  ;;  %v2012_v9 = vrot.slane %v6142_v54, 1 }
  0x92   : > { %v1865_v46 = vsel %vm1244_vm9, %v1860_v31, %v1864_v30  ;;  %v1993_v38 = vrot.slane %v5601_v41, 1  ;;  %v1867_v53 = vshrl.u32 %v5601_v41, 16  ;;  %v1869_v35 = vshll.u32 %v5601_v41, 16  ;;  %1012 = vst [vmem:[#allocation2 + $0x84] sm:$0xf] %v1011_v55 }
  0x93   : > { %2319 = vmatprep.mubr.bf16.mxu0 %v1865_v46  ;;  %v1994_v48 = vrot.slane %v5602_v37, 1  ;;  %v1874_v50 = vshll.u32 %v5602_v37, 16  ;;  %v803_v57 = vsel %vm5879_vm7, %v795_v40, %v802_v51  ;;  %v1015_v58 = vsel %vm5821_vm3, %v804_v26, %v1014_v47  ;;  %523 = vst [vmem:[#allocation2 + $0x98] sm:$0x1] %v522_v12  ;;  %v1017_v21 = vld [vmem:[#allocation2 + $0x90] sm:$0xf] }
  0x94   : > { %2320 = vmatmul.mubr.bf16.gmra.mxu0 %v5598_v20  ;;  %v1871_v52 = vrot.slane %v1869_v35, 1  ;;  %1013 = vst [vmem:[#allocation2 + $0x88] sm:$0xf] %v803_v57  ;;  %1016 = vst [vmem:[#allocation2 + $0x8c] sm:$0x1] %v1015_v58  ;;  %v4743_v0 = vpack.c.bf16 %v401_v45, %v401_v45  ;;  %v4744_v18 = vpack.c.bf16 %v402_v16, %v402_v16  ;;  %v2011_v20 = vrot.slane %v6135_v49, 1 }
  0x95   : > { %v1995_v56 = vsel %vm1453_vm10, %v1993_v38, %v1994_v48  ;;  %v1876_v27 = vrot.slane %v1874_v50, 1  ;;  %v5720_v14 = vmov 0   ;;  %v5706_v40 = vld [vmem:[#allocation2 + $0x9c] sm:$0xff]   ;;  %v2003_v31 = vrot.slane %v5707_v19, 1  ;;  %v5708_v51 = vld [vmem:[#allocation2 + $0xa8] sm:$0xff]  }
  0x96   : > { %5400 = vmatmul.mubr.bf16.gmra.mxu1 %v1995_v56  ;;  %v1872_v59 = vor.u32 %v1871_v52, %v1867_v53  ;;  %v806_v4 = vshrl.u32 %v4743_v0, 16  ;;  %v809_v5 = vshll.u32 %v4743_v0, 16  ;;  %v814_v6 = vshrl.u32 %v4744_v18, 16  ;;  %427 = vst [vmem:[#allocation2] sm:$0xf] %v5720_v14  ;;  %v5710_v56 = vld [vmem:[#allocation2 + $0xb4] sm:$0xff]  }
  0x97   : > { %v817_v7 = vshll.u32 %v4744_v18, 16  ;;  %428 = vst [vmem:[#allocation2 + $0x4] sm:$0xf] %v5720_v14  ;;  %429 = vst [vmem:[#allocation2 + $0x8] sm:$0x1] %v5720_v14  ;;  %v6377_v3 = vsel %vm1453_vm10, %v2011_v20, %v2012_v9  ;;  %v2002_v10 = vrot.slane %v5706_v40, 1 }
  0x98   : > { %v1877_v24 = vsel %vm1244_vm9, %v1872_v59, %v1876_v27  ;;  %v808_v17 = vrot.slane %v806_v4, 7  ;;  %v816_v61 = vrot.slane %v814_v6, 7  ;;  %431 = vst [vmem:[#allocation2 + $0xcc] sm:$0xf] %v5720_v14  ;;  %432 = vst [vmem:[#allocation2 + $0xd0] sm:$0xf] %v5720_v14 }
  0x99   : > { %2327 = vmatprep.mubr.bf16.mxu0 %v1877_v24  ;;  %433 = vst [vmem:[#allocation2 + $0xd4] sm:$0x1] %v5720_v14  ;;  %v2004_v38 = vsel %vm1453_vm10, %v2002_v10, %v2003_v31  ;;  %v2005_v26 = vrot.slane %v5708_v51, 1  ;;  %v5709_v55 = vld [vmem:[#allocation2 + $0xb0] ss:$0 sps:$4 sm:$0x11]  }
  0x9a   : > { %v811_v22 = vor.u32 %v809_v5, %v808_v17  ;;  %v812_v11 = vrot.slane %v808_v17, 4  ;;  %v819_v23 = vor.u32 %v817_v7, %v816_v61  ;;  %v821_v13 = vrot.slane %v816_v61, 4  ;;  %v1021_v63 = vld [vmem:[#allocation2 + $0x98] sm:$0x1]  ;;  %v6393_v18 = vld [vmem:[#allocation2 + $0xc] sm:$0xff]   ;;  %v6412_v14 = vld [vmem:[#allocation2 + $0x24] sm:$0xff]  }
  0x9b   : > { %v5604_v32 = vld [vmem:[#allocation2 + $0x84] sm:$0xff]   ;;  %v5605_v49 = vld [vmem:[#allocation2 + $0x8c] ss:$0 sps:$4 sm:$0x11]   ;;  %v2006_v16 = vrot.slane %v5709_v55, 1  ;;  %v2008_v27 = vrot.slane %v5710_v56, 1 }
  0x9c   : > { %2328 = vmatmul.mubr.bf16.gmra.mxu0 %v5601_v41  ;;  %v820_v54 = vsel %vm5879_vm7, %v812_v11, %v819_v23  ;;  %v1018_v1 = vsel %vm5887_vm8, %v811_v22, %v1017_v21  ;;  %v1022_v28 = vsel %vm5821_vm3, %v821_v13, %v1021_v63  ;;  %v1996_v33 = vrot.slane %v5604_v32, 1  ;;  %v5711_v57 = vld [vmem:[#allocation2 + $0xbc] ss:$0 sps:$4 sm:$0x11]   ;;  %v5634_v31 = vld [vmem:[%s7355_s3 + $0x1e8] sm:$0xff]   ;;  %v5641_v51 = vld [vmem:[%s7355_s3 + $0x1a0] sm:$0xff]  }
  0x9d   : > { %1019 = vst [vmem:[#allocation2 + $0x90] sm:$0xf] %v1018_v1  ;;  %1020 = vst [vmem:[#allocation2 + $0x94] sm:$0xf] %v820_v54  ;;  %v1879_v36 = vshrl.u32 %v5604_v32, 16  ;;  %v1881_v25 = vshll.u32 %v5604_v32, 16  ;;  %v2007_v7 = vsel %vm1453_vm10, %v2005_v26, %v2006_v16 }
  0x9e   : > { %1023 = vst [vmem:[#allocation2 + $0x98] sm:$0x1] %v1022_v28  ;;  %v1997_v34 = vrot.slane %v5605_v49, 1  ;;  %v1886_v44 = vshll.u32 %v5605_v49, 16  ;;  %v6387_v62 = vld [vmem:[#allocation2] sm:$0xff]   ;;  %v2009_v58 = vrot.slane %v5711_v57, 1 }
  0x9f   : > { %v1883_v15 = vrot.slane %v1881_v25, 1  ;;  %v5617_v39 = vld [vmem:[#allocation2 + $0x8] ss:$0 sps:$4 sm:$0x11]   ;;  %v1454_v35 = vrot.slane %v6387_v62, 1  ;;  %v1248_v0 = vshll.u32 %v6387_v62, 16 }
  0xa0   : > { %v1998_v30 = vsel %vm1453_vm10, %v1996_v33, %v1997_v34  ;;  %v1888_v29 = vrot.slane %v1886_v44, 1  ;;  %v1455_v50 = vrot.slane %v5617_v39, 1  ;;  %v5620_v59 = vld [vmem:[#allocation2 + $0x14] ss:$0 sps:$4 sm:$0x11]   ;;  %v6397_v5 = vld [vmem:[#allocation2 + $0x18] sm:$0xff]   ;;  %v2010_v17 = vsel %vm1453_vm10, %v2008_v27, %v2009_v58 }
  0xa1   : > { %5403 = vmatprep.mubr.bf16.mxu1 %v1998_v30  ;;  %v1884_v2 = vor.u32 %v1883_v15, %v1879_v36  ;;  %v6399_v6 = vld [vmem:[#allocation2 + $0x20] ss:$0 sps:$4 sm:$0x11]   ;;  %v1253_v61 = vshll.u32 %v5617_v39, 16  ;;  %v1246_v20 = vshrl.u32 %v6387_v62, 16  ;;  %v1250_v9 = vrot.slane %v1248_v0, 1 }
  0xa2   : > { %v1456_v4 = vsel %vm1453_vm10, %v1454_v35, %v1455_v50  ;;  %v1457_v21 = vrot.slane %v6393_v18, 1  ;;  %v1458_v22 = vrot.slane %v5620_v59, 1  ;;  %v1460_v11 = vrot.slane %v6397_v5, 1  ;;  %v6407_v13 = vld [vmem:[#allocation2 + $0x2c] ss:$0 sps:$4 sm:$0x11]  }
  0xa3   : > { %v1889_v8 = vsel %vm1244_vm9, %v1884_v2, %v1888_v29  ;;  %v1461_v23 = vrot.slane %v6399_v6, 1  ;;  %v5622_v63 = vld [vmem:[%s7355_s3 + $0x1b8] sm:$0xff]   ;;  %v1260_v49 = vshll.u32 %v6393_v18, 16  ;;  %v5627_v54 = vld [vmem:[%s7355_s3 + $0x1f0] sm:$0xff]   ;;  %v1251_v28 = vor.u32 %v1250_v9, %v1246_v20  ;;  %v6473_v57 = vld [vmem:[#allocation2 + $0x60] sm:$0xff]  }
  0xa4   : > { %2335 = vmatprep.mubr.bf16.mxu0 %v1889_v8  ;;  %v5607_v41 = vld [vmem:[#allocation2 + $0x90] sm:$0xff]   ;;  %v1459_v33 = vsel %vm1453_vm10, %v1457_v21, %v1458_v22  ;;  %v1258_v36 = vshrl.u32 %v6393_v18, 16  ;;  %v6423_v34 = vld [vmem:[#allocation2 + $0x38] ss:$0 sps:$4 sm:$0x11]   ;;  %v1265_v15 = vshll.u32 %v5620_v59, 16 }
  0xa5   : > { %v5608_v42 = vld [vmem:[#allocation2 + $0x98] ss:$0 sps:$4 sm:$0x11]   ;;  %2336 = vmatmul.mubr.bf16.gmra.mxu0 %v5604_v32  ;;  %v1999_v37 = vrot.slane %v5607_v41, 1  ;;  %v1891_v45 = vshrl.u32 %v5607_v41, 16  ;;  %v1893_v46 = vshll.u32 %v5607_v41, 16  ;;  %v1462_v25 = vsel %vm1453_vm10, %v1460_v11, %v1461_v23 }
  0xa6   : > { %v2000_v43 = vrot.slane %v5608_v42, 1  ;;  %v1898_v53 = vshll.u32 %v5608_v42, 16  ;;  %v1255_v32 = vrot.slane %v1253_v61, 1  ;;  %v6418_v1 = vld [vmem:[#allocation2 + $0x30] sm:$0xff]   ;;  %v1262_v44 = vrot.slane %v1260_v49, 1  ;;  %v5635_v42 = vld [vmem:[%s7355_s3 + $0x1a8] sm:$0xff]  }
  0xa7   : > { %v1895_v48 = vrot.slane %v1893_v46, 1  ;;  %v1463_v30 = vrot.slane %v6412_v14, 1  ;;  %v1464_v29 = vrot.slane %v6407_v13, 1  ;;  %v5628_v2 = vld [vmem:[%s7355_s3 + $0x1b0] sm:$0xff]   ;;  %v1272_v40 = vshll.u32 %v6397_v5, 16  ;;  %v5647_v27 = vld [vmem:[%s7355_s3 + $0x1d8] sm:$0xff]  }
  0xa8   : > { %v2001_v47 = vsel %vm1453_vm10, %v1999_v37, %v2000_v43  ;;  %v1900_v52 = vrot.slane %v1898_v53, 1  ;;  %v1256_v8 = vsel %vm1244_vm9, %v1251_v28, %v1255_v32  ;;  %v1466_v10 = vrot.slane %v6418_v1, 1  ;;  %v6443_v39 = vld [vmem:[#allocation2 + $0x44] ss:$0 sps:$4 sm:$0x11]   ;;  %v6445_v37 = vld [vmem:[#allocation2 + $0x48] sm:$0xff]  }
  0xa9   : > { %5404 = vmatmul.mubr.bf16.gmra.mxu1 %v2001_v47  ;;  %v1896_v12 = vor.u32 %v1895_v48, %v1891_v45  ;;  %v1467_v19 = vrot.slane %v6423_v34, 1  ;;  %v1263_v43 = vor.u32 %v1262_v44, %v1258_v36  ;;  %v1267_v45 = vrot.slane %v1265_v15, 1  ;;  %v5640_v53 = vld [vmem:[%s7355_s3 + $0x1e0] sm:$0xff]   ;;  %v5631_v50 = vld [vmem:[%s7355_s3 + $0x230] sm:$0xff]   ;;  %v6515_v15 = vld [vmem:[#allocation2 + $0x78] sm:$0xff]  }
  0xaa   : > { %5407 = vmatprep.mubr.bf16.mxu1 %v2004_v38  ;;  %v1465_v46 = vsel %vm1453_vm10, %v1463_v30, %v1464_v29  ;;  %v6448_v38 = vld [vmem:[#allocation2 + $0x50] ss:$0 sps:$4 sm:$0x11]   ;;  %v1270_v35 = vshrl.u32 %v6397_v5, 16  ;;  %v1274_v47 = vrot.slane %v1272_v40, 1  ;;  %v1277_v48 = vshll.u32 %v6399_v6, 16 }
  0xab   : > { %v1901_v24 = vsel %vm1244_vm9, %v1896_v12, %v1900_v52  ;;  %v1268_v26 = vsel %vm1244_vm9, %v1263_v43, %v1267_v45  ;;  %v1470_v55 = vrot.slane %v6443_v39, 1  ;;  %v1472_v16 = vrot.slane %v6445_v37, 1  ;;  %v6467_v56 = vld [vmem:[#allocation2 + $0x54] sm:$0xff]   ;;  %v6477_v59 = vld [vmem:[#allocation2 + $0x5c] ss:$0 sps:$4 sm:$0x11]  }
  0xac   : > { %2343 = vmatprep.mubr.bf16.mxu0 %v1901_v24  ;;  %v1473_v12 = vrot.slane %v6448_v38, 1  ;;  %v1284_v58 = vshll.u32 %v6412_v14, 16  ;;  %v1275_v0 = vor.u32 %v1274_v47, %v1270_v35  ;;  %v1279_v24 = vrot.slane %v1277_v48, 1  ;;  %v5644_v6 = vld [vmem:[%s7355_s3 + $0x228] sm:$0xff]   ;;  %v5653_v61 = vld [vmem:[%s7355_s3 + $0x1d0] sm:$0xff]  }
  0xad   : > { %2344 = vmatmul.mubr.bf16.gmra.mxu0 %v5607_v41  ;;  %v6438_v41 = vld [vmem:[#allocation2 + $0x3c] sm:$0xff]   ;;  %v1289_v9 = vshll.u32 %v6407_v13, 16  ;;  %v1475_v21 = vrot.slane %v6467_v56, 1  ;;  %v1476_v22 = vrot.slane %v6477_v59, 1  ;;  %v1478_v23 = vrot.slane %v6473_v57, 1  ;;  %v5654_v13 = vld [vmem:[%s7355_s3 + $0x190] sm:$0xff]  }
  0xae   : > { %5431 = vmatprep.mubr.bf16.mxu0 %v1456_v4  ;;  %v1469_v52 = vrot.slane %v6438_v41, 1  ;;  %v1286_v20 = vrot.slane %v1284_v58, 1  ;;  %v1280_v11 = vsel %vm1244_vm9, %v1275_v0, %v1279_v24  ;;  %v6506_v49 = vld [vmem:[#allocation2 + $0x6c] sm:$0xff]   ;;  %v1296_v28 = vshll.u32 %v6418_v1, 16 }
  0xaf   : > { %v1477_v44 = vsel %vm1453_vm10, %v1475_v21, %v1476_v22  ;;  %v6521_v29 = vld [vmem:[#allocation2 + $0x80] ss:$0 sps:$4 sm:$0x11]   ;;  %v1294_v40 = vshrl.u32 %v6418_v1, 16  ;;  %v1484_v45 = vrot.slane %v6515_v15, 1 }
  0xb0   : > { %v1471_v4 = vsel %vm1453_vm10, %v1469_v52, %v1470_v55  ;;  %v6543_v35 = vld [vmem:[#allocation2 + $0x8c] ss:$0 sps:$4 sm:$0x11]   ;;  %v6552_v52 = vld [vmem:[#allocation2 + $0x98] ss:$0 sps:$4 sm:$0x11]  }
  0xb1   : > { %5408 = vmatmul.mubr.bf16.gmra.mxu1 %v2007_v7  ;;  %v6484_v7 = vld [vmem:[#allocation2 + $0x68] ss:$0 sps:$4 sm:$0x11]   ;;  %v1313_v55 = vshll.u32 %v6443_v39, 16  ;;  %v1488_v0 = vrot.slane %v6543_v35, 1 }
  0xb2   : > { %5411 = vmatprep.mubr.bf16.mxu1 %v2010_v17  ;;  %v1282_v17 = vshrl.u32 %v6412_v14, 16  ;;  %v1479_v32 = vrot.slane %v6484_v7, 1  ;;  %v5680_v39 = vld [vmem:[%s7355_s3 + $0x208] sm:$0xff]   ;;  %v6573_v21 = vld [vmem:[#allocation2 + $0xb0] ss:$0 sps:$4 sm:$0x11]  }
  0xb4   : > { %v1287_v36 = vor.u32 %v1286_v20, %v1282_v17  ;;  %v1480_v30 = vsel %vm1453_vm10, %v1478_v23, %v1479_v32  ;;  %v6568_v17 = vld [vmem:[#allocation2 + $0xa4] ss:$0 sps:$4 sm:$0x11]   ;;  %v1318_v23 = vshrl.u32 %v6445_v37, 16  ;;  %v1325_v32 = vshll.u32 %v6448_v38, 16 }
  0xb5   : > { %5432 = vmatmul.mubr.bf16.vlgmr.msra.gmra.mxu0 %v1459_v33  ;;  %v6512_v33 = vld [vmem:[#allocation2 + $0x74] ss:$0 sps:$4 sm:$0x11]   ;;  %v1332_v38 = vshll.u32 %v6467_v56, 16 }
  0xb6   : > { %5232 = vmatpush3.bf16.msra.mxu0 %v5622_v63  ;;  %5435 = vmatprep.mubr.bf16.mxu0 %v1462_v25  ;;  %v5657_v63 = vld [vmem:[%s7355_s3 + $0x220] sm:$0xff]   ;;  %v1291_v25 = vrot.slane %v1289_v9, 1  ;;  %v1482_v43 = vrot.slane %v6512_v33, 1  ;;  %v6571_v9 = vld [vmem:[#allocation2 + $0xa8] sm:$0xff]  }
  0xb7   : > { %5233 = vmatprep.subr.bf16.mxu0 %v5627_v54  ;;  %v5660_v54 = vld [vmem:[%s7355_s3 + $0x1c8] sm:$0xff]  }
  0xb9   : > { %5412 = vmatmul.mubr.bf16.gmra.mxu1 %v6377_v3  ;;  %v1468_v3 = vsel %vm1453_vm10, %v1466_v10, %v1467_v19  ;;  %v1298_v10 = vrot.slane %v1296_v28, 1  ;;  %v1301_v19 = vshll.u32 %v6423_v34, 16  ;;  %v5675_v34 = vld [vmem:[%s7355_s3 + $0x210] sm:$0xff]  }
  0xba   : > { %2721 = vmatprep.mubr.bf16.mxu1 %v1256_v8  ;;  %5234 = vmatpush3.bf16.msra.mxu0 %v5628_v2  ;;  %v5661_v2 = vld [vmem:[%s7355_s3 + $0x188] sm:$0xff]   ;;  %v5666_v8 = vld [vmem:[%s7355_s3 + $0x1c0] sm:$0xff]  }
  0xbb   : > { %5235 = vmatprep.subr.bf16.mxu0 %v5634_v31  ;;  %v1292_v31 = vsel %vm1244_vm9, %v1287_v36, %v1291_v25  ;;  %v1299_v47 = vor.u32 %v1298_v10, %v1294_v40  ;;  %v1496_v36 = vrot.slane %v6571_v9, 1  ;;  %v5669_v25 = vld [vmem:[#allocation2 + $0x20] ss:$0 sps:$4 sm:$0x11]   ;;  %v1327_v40 = vrot.slane %v1325_v32, 1 }
  0xbd   : > { %5436 = vmatmul.mubr.bf16.gmra.mxu0 %v1465_v46  ;;  %v1485_v46 = vrot.slane %v6521_v29, 1 }
  0xbe   : > { %5439 = vmatprep.mubr.bf16.mxu0 %v1468_v3  ;;  %5236 = vmatpush3.bf16.msra.mxu0 %v5635_v42  ;;  %v1481_v42 = vrot.slane %v6506_v49, 1  ;;  %v5667_v3 = vld [vmem:[%s7355_s3 + $0x180] sm:$0xff]  }
  0xbf   : > { %5237 = vmatprep.subr.bf16.mxu0 %v5640_v53  ;;  %v1303_v53 = vrot.slane %v1301_v19, 1  ;;  %v6596_v19 = vld [vmem:[#allocation2 + $0x24] sm:$0xff]  }
  0xc0   : > { %v1483_v48 = vsel %vm1453_vm10, %v1481_v42, %v1482_v43 }
  0xc1   : > { %2722 = vmatmul.mubr.bf16.vlgmr.msra.gmra.mxu1 %v6387_v62  ;;  %v1474_v62 = vsel %vm1453_vm10, %v1472_v16, %v1473_v12  ;;  %v1306_v16 = vshrl.u32 %v6438_v41, 16  ;;  %v1304_v12 = vsel %vm1244_vm9, %v1299_v47, %v1303_v53 }
  0xc2   : > { %5464 = vmatpush3.bf16.msra.mxu1 %v6343_v60  ;;  %2729 = vmatprep.mubr.bf16.mxu1 %v1268_v26  ;;  %v5648_v60 = vld [vmem:[%s7355_s3 + $0x198] sm:$0xff]   ;;  %v6550_v26 = vld [vmem:[#allocation2 + $0x90] sm:$0xff]  }
  0xc3   : > { %5465 = vmatprep.subr.bf16.mxu1 %v5631_v50  ;;  %5238 = vmatpush3.bf16.msra.mxu0 %v5641_v51  ;;  %v6547_v51 = vld [vmem:[#allocation2 + $0x84] sm:$0xff]   ;;  %v1490_v24 = vrot.slane %v6550_v26, 1 }
  0xc4   : > { %5239 = vmatprep.subr.bf16.mxu0 %v5647_v27  ;;  %v1487_v58 = vrot.slane %v6547_v51, 1 }
  0xc5   : > { %5440 = vmatmul.mubr.bf16.gmra.mxu0 %v1471_v4  ;;  %v1491_v4 = vrot.slane %v6552_v52, 1 }
  0xc6   : > { %5466 = vmatpush3.bf16.msra.mxu1 %v5631_v50  ;;  %5443 = vmatprep.mubr.bf16.mxu0 %v1474_v62  ;;  %v1308_v50 = vshll.u32 %v6438_v41, 16  ;;  %v1320_v62 = vshll.u32 %v6445_v37, 16  ;;  %v1489_v20 = vsel %vm1453_vm10, %v1487_v58, %v1488_v0  ;;  %v3413_v58 = vrot.slane %v5669_v25, 1 }
  0xc7   : > { %5467 = vmatprep.subr.bf16.mxu1 %v5644_v6  ;;  %5240 = vmatpush3.bf16.msra.mxu0 %v5648_v60  ;;  %v6566_v60 = vld [vmem:[#allocation2 + $0x9c] sm:$0xff]   ;;  %v1492_v22 = vsel %vm1453_vm10, %v1490_v24, %v1491_v4  ;;  %v3415_v0 = vrot.slane %v6596_v19, 1 }
  0xc8   : > { %5241 = vmatprep.subr.bf16.mxu0 %v5653_v61  ;;  %v1310_v27 = vrot.slane %v1308_v50, 1  ;;  %v3219_v50 = vshll.u32 %v6596_v19, 16 }
  0xc9   : > { %2730 = vmatmul.mubr.bf16.gmra.mxu1 %v6393_v18  ;;  %v5670_v18 = vld [vmem:[%s7355_s3 + $0x218] sm:$0xff]  }
  0xca   : > { %2737 = vmatprep.mubr.bf16.mxu1 %v1280_v11  ;;  %5468 = vmatpush3.bf16.msra.mxu1 %v5644_v6  ;;  %v1315_v6 = vrot.slane %v1313_v55, 1  ;;  %v1311_v61 = vor.u32 %v1310_v27, %v1306_v16  ;;  %v5685_v11 = vld [vmem:[%s7355_s3 + $0x200] sm:$0xff]  }
  0xcb   : > { %5469 = vmatprep.subr.bf16.mxu1 %v5657_v63  ;;  %5242 = vmatpush3.bf16.msra.mxu0 %v5654_v13  ;;  %v1493_v13 = vrot.slane %v6566_v60, 1 }
  0xcc   : > { %5243 = vmatprep.subr.bf16.mxu0 %v5660_v54  ;;  %v1494_v54 = vrot.slane %v6568_v17, 1  ;;  %v1316_v28 = vsel %vm1244_vm9, %v1311_v61, %v1315_v6  ;;  %v6611_v6 = vld [vmem:[#allocation2 + $0x30] sm:$0xff]   ;;  %v3221_v61 = vrot.slane %v3219_v50, 1 }
  0xcd   : > { %5444 = vmatmul.mubr.bf16.gmra.mxu0 %v1477_v44  ;;  %v1497_v44 = vrot.slane %v6573_v21, 1  ;;  %v3418_v32 = vrot.slane %v6611_v6, 1 }
  0xce   : > { %5470 = vmatpush3.bf16.msra.mxu1 %v5657_v63  ;;  %5447 = vmatprep.mubr.bf16.mxu0 %v1480_v30  ;;  %v1322_v63 = vrot.slane %v1320_v62, 1  ;;  %v6591_v30 = vld [vmem:[#allocation2 + $0xb4] sm:$0xff]   ;;  %v1495_v10 = vsel %vm1453_vm10, %v1493_v13, %v1494_v54  ;;  %v3217_v62 = vshrl.u32 %v6596_v19, 16 }
  0xcf   : > { %5471 = vmatprep.subr.bf16.mxu1 %v5670_v18  ;;  %5244 = vmatpush3.bf16.msra.mxu0 %v5661_v2  ;;  %v6593_v2 = vld [vmem:[#allocation2 + $0xbc] ss:$0 sps:$4 sm:$0x11]   ;;  %v1499_v53 = vrot.slane %v6591_v30, 1 }
  0xd0   : > { %5245 = vmatprep.subr.bf16.mxu0 %v5666_v8  ;;  %v1323_v8 = vor.u32 %v1322_v63, %v1318_v23  ;;  %v1500_v47 = vrot.slane %v6593_v2, 1 }
  0xd1   : > { %2738 = vmatmul.mubr.bf16.gmra.mxu1 %v6397_v5  ;;  %v1486_v5 = vsel %vm1453_vm10, %v1484_v45, %v1485_v46  ;;  %v3212_v45 = vshll.u32 %v5669_v25, 16  ;;  %v5672_v46 = vld [vmem:[#allocation2 + $0x2c] ss:$0 sps:$4 sm:$0x11]  }
  0xd2   : > { %2745 = vmatprep.mubr.bf16.mxu1 %v1292_v31  ;;  %5472 = vmatpush3.bf16.msra.mxu1 %v5670_v18  ;;  %v1498_v31 = vsel %vm1453_vm10, %v1496_v36, %v1497_v44  ;;  %v1501_v4 = vsel %vm1453_vm10, %v1499_v53, %v1500_v47  ;;  %v3224_v63 = vshll.u32 %v5672_v46, 16 }
  0xd3   : > { %5473 = vmatprep.subr.bf16.mxu1 %v5675_v34  ;;  %5246 = vmatpush3.bf16.msra.mxu0 %v5667_v3  ;;  %v1330_v3 = vshrl.u32 %v6467_v56, 16  ;;  %v3214_v16 = vrot.slane %v3212_v45, 1 }
  0xd5   : > { %5448 = vmatmul.mubr.bf16.gmra.mxu0 %v1483_v48  ;;  %v1328_v48 = vsel %vm1244_vm9, %v1323_v8, %v1327_v40  ;;  %v3222_v8 = vor.u32 %v3221_v61, %v3217_v62  ;;  %v3226_v40 = vrot.slane %v3224_v63, 1  ;;  %v1368_v62 = vshll.u32 %v6515_v15, 16 }
  0xd6   : > { %5474 = vmatpush3.bf16.msra.mxu1 %v5675_v34  ;;  %5451 = vmatprep.mubr.bf16.mxu0 %v1486_v5  ;;  %v1334_v34 = vrot.slane %v1332_v38, 1  ;;  %v3416_v5 = vrot.slane %v5672_v46, 1 }
  0xd7   : > { %5475 = vmatprep.subr.bf16.mxu1 %v5680_v39 }
  0xd8   : > { %v1335_v24 = vor.u32 %v1334_v34, %v1330_v3  ;;  %v3227_v3 = vsel %vm1244_vm9, %v3222_v8, %v3226_v40  ;;  %v6666_v8 = vld [vmem:[#allocation2 + $0x50] ss:$0 sps:$4 sm:$0x11]  }
  0xd9   : > { %2746 = vmatmul.mubr.bf16.gmra.mxu1 %v6412_v14  ;;  %v6576_v14 = vld [vmem:[#allocation2 + $0x18] sm:$0xff]  }
  0xda   : > { %2753 = vmatprep.mubr.bf16.mxu1 %v1304_v12  ;;  %5476 = vmatpush3.bf16.msra.mxu1 %v5680_v39  ;;  %v3207_v18 = vshll.u32 %v6576_v14, 16  ;;  %v3205_v42 = vshrl.u32 %v6576_v14, 16  ;;  %v5674_v12 = vld [vmem:[#allocation2 + $0x38] ss:$0 sps:$4 sm:$0x11]   ;;  %v3412_v27 = vrot.slane %v6576_v14, 1 }
  0xdb   : > { %5477 = vmatprep.subr.bf16.mxu1 %v5685_v11  ;;  %v1344_v39 = vshll.u32 %v6473_v57, 16  ;;  %v3419_v13 = vrot.slane %v5674_v12, 1  ;;  %v3236_v53 = vshll.u32 %v5674_v12, 16 }
  0xdc   : > { %v3209_v43 = vrot.slane %v3207_v18, 1  ;;  %v1349_v18 = vshll.u32 %v6484_v7, 16  ;;  %v3229_v7 = vshrl.u32 %v6611_v6, 16 }
  0xdd   : > { %5452 = vmatmul.mubr.bf16.gmra.mxu0 %v1489_v20  ;;  %v6614_v20 = vld [vmem:[#allocation2 + $0x3c] sm:$0xff]   ;;  %v1346_v44 = vrot.slane %v1344_v39, 1  ;;  %v6632_v38 = vsel %vm1453_vm10, %v3418_v32, %v3419_v13  ;;  %v3238_v12 = vrot.slane %v3236_v53, 1 }
  0xde   : > { %5455 = vmatprep.mubr.bf16.mxu0 %v1492_v22  ;;  %5478 = vmatpush3.bf16.msra.mxu1 %v5685_v11  ;;  %v3210_v55 = vor.u32 %v3209_v43, %v3205_v42  ;;  %v6619_v22 = vsel %vm1453_vm10, %v3412_v27, %v3413_v58  ;;  %v6622_v11 = vsel %vm1453_vm10, %v3415_v0, %v3416_v5  ;;  %v3421_v54 = vrot.slane %v6614_v20, 1 }
  0xdf   : > { %v1351_v45 = vrot.slane %v1349_v18, 1  ;;  %v3241_v61 = vshrl.u32 %v6614_v20, 16 }
  0xe0   : > { %v3215_v23 = vsel %vm1244_vm9, %v3210_v55, %v3214_v16 }
  0xe1   : > { %2754 = vmatmul.mubr.bf16.gmra.mxu1 %v6418_v1  ;;  %v1337_v1 = vshll.u32 %v6477_v59, 16 }
  0xe2   : > { %2761 = vmatprep.mubr.bf16.mxu1 %v1316_v28  ;;  %v1342_v28 = vshrl.u32 %v6473_v57, 16 }
  0xe3   : > { %v1339_v59 = vrot.slane %v1337_v1, 1  ;;  %v1356_v1 = vshll.u32 %v6506_v49, 16 }
  0xe4   : > { %v1347_v43 = vor.u32 %v1346_v44, %v1342_v28  ;;  %v1366_v28 = vshrl.u32 %v6515_v15, 16 }
  0xe5   : > { %5456 = vmatmul.mubr.bf16.gmra.mxu0 %v1495_v10  ;;  %v1340_v25 = vsel %vm1244_vm9, %v1335_v24, %v1339_v59  ;;  %v3231_v10 = vshll.u32 %v6611_v6, 16  ;;  %v1358_v16 = vrot.slane %v1356_v1, 1  ;;  %v1361_v59 = vshll.u32 %v6512_v33, 16  ;;  %v6656_v33 = vld [vmem:[#allocation2 + $0x48] sm:$0xff]  }
  0xe6   : > { %5459 = vmatprep.mubr.bf16.mxu0 %v1498_v31  ;;  %v1352_v55 = vsel %vm1244_vm9, %v1347_v43, %v1351_v45  ;;  %v3243_v24 = vshll.u32 %v6614_v20, 16  ;;  %v3255_v40 = vshll.u32 %v6656_v33, 16 }
  0xe7   : > { %v3233_v34 = vrot.slane %v3231_v10, 1  ;;  %v1363_v39 = vrot.slane %v1361_v59, 1 }
  0xe8   : > { %v3245_v63 = vrot.slane %v3243_v24, 1 }
  0xe9   : > { %2762 = vmatmul.mubr.bf16.gmra.mxu1 %v6438_v41  ;;  %v6616_v41 = vld [vmem:[#allocation2 + $0x44] ss:$0 sps:$4 sm:$0x11]   ;;  %v3234_v0 = vor.u32 %v3233_v34, %v3229_v7  ;;  %v3253_v7 = vshrl.u32 %v6656_v33, 16  ;;  %v6678_v34 = vld [vmem:[#allocation2 + $0x54] sm:$0xff]  }
  0xea   : > { %2769 = vmatprep.mubr.bf16.mxu1 %v1328_v48  ;;  %v3422_v36 = vrot.slane %v6616_v41, 1  ;;  %v3248_v32 = vshll.u32 %v6616_v41, 16  ;;  %v3246_v44 = vor.u32 %v3245_v63, %v3241_v61 }
  0xec   : > { %v6636_v31 = vsel %vm1453_vm10, %v3421_v54, %v3422_v36  ;;  %v1370_v36 = vrot.slane %v1368_v62, 1  ;;  %v3250_v18 = vrot.slane %v3248_v32, 1  ;;  %v1392_v62 = vshll.u32 %v6550_v26, 16 }
  0xed   : > { %5460 = vmatmul.mubr.bf16.gmra.mxu0 %v1501_v4 }
  0xee   : > { %3701 = vmatprep.mubr.bf16.mxu0 %v3215_v23  ;;  %v3239_v23 = vsel %vm1244_vm9, %v3234_v0, %v3238_v12  ;;  %v1371_v43 = vor.u32 %v1370_v36, %v1366_v28  ;;  %v3251_v1 = vsel %vm1244_vm9, %v3246_v44, %v3250_v18  ;;  %v6686_v0 = vld [vmem:[#allocation2 + $0x5c] ss:$0 sps:$4 sm:$0x11]   ;;  %v3267_v12 = vshll.u32 %v6678_v34, 16  ;;  %v6698_v28 = vld [vmem:[#allocation2 + $0x60] sm:$0xff]  }
  0xef   : > { %v1390_v44 = vshrl.u32 %v6550_v26, 16  ;;  %v1394_v18 = vrot.slane %v1392_v62, 1  ;;  %v6724_v62 = vld [vmem:[#allocation2 + $0x74] ss:$0 sps:$4 sm:$0x11]  }
  0xf0   : > { %v3269_v32 = vrot.slane %v3267_v12, 1  ;;  %v1409_v12 = vshll.u32 %v6568_v17, 16 }
  0xf1   : > { %2770 = vmatmul.mubr.bf16.gmra.mxu1 %v6445_v37  ;;  %v1354_v37 = vshrl.u32 %v6506_v49, 16 }
  0xf2   : > { %2777 = vmatprep.mubr.bf16.mxu1 %v1340_v25  ;;  %v1373_v25 = vshll.u32 %v6521_v29, 16  ;;  %v1380_v29 = vshll.u32 %v6547_v51, 16 }
  0xf4   : > { %v1375_v45 = vrot.slane %v1373_v25, 1 }
  0xf5   : > { %v4975_v42 = vpop.f32.mrf.mxu0  ;;  %3702 = vmatmul.mubr.bf16.vlgmr.msra.gmra.mxu0 %v6576_v14  ;;  %v1359_v14 = vor.u32 %v1358_v16, %v1354_v37  ;;  %v1378_v37 = vshrl.u32 %v6547_v51, 16 }
  0xf6   : > { %3709 = vmatprep.mubr.bf16.mxu0 %v3227_v3  ;;  %v3260_v3 = vshll.u32 %v6666_v8, 16 }
  0xf7   : > { %v4976_v46 = vpop.f32.mrf.mxu0 }
  0xf8   : > { %v5047_v47 = vpop.f32.mrf.mxu1  ;;  %v6642_v48 = vadd.f32 %v4976_v46, %v4975_v42  ;;  %v3257_v46 = vrot.slane %v3255_v40, 1  ;;  %v1397_v40 = vshll.u32 %v6552_v52, 16 }
  0xf9   : > { %v4978_v50 = vpop.f32.mrf.mxu0  ;;  %2778 = vmatmul.mubr.bf16.gmra.mxu1 %v6467_v56  ;;  %v1364_v56 = vsel %vm1244_vm9, %v1359_v14, %v1363_v39 }
  0xfa   : > { %v5048_v5 = vpop.f32.mrf.mxu1  ;;  %2785 = vmatprep.mubr.bf16.mxu1 %v1352_v55  ;;  %v1385_v55 = vshll.u32 %v6543_v35, 16  ;;  %v3258_v59 = vor.u32 %v3257_v46, %v3253_v7  ;;  %v3265_v35 = vshrl.u32 %v6678_v34, 16  ;;  %v1395_v7 = vor.u32 %v1394_v18, %v1390_v44 }
  0xfb   : > { %v6648_v27 = vadd.f32 %v5048_v5, %v5047_v47  ;;  %v4979_v58 = vpop.f32.mrf.mxu0  ;;  %v1382_v5 = vrot.slane %v1380_v29, 1  ;;  %v3279_v29 = vshll.u32 %v6698_v28, 16  ;;  %v1399_v46 = vrot.slane %v1397_v40, 1 }
  0xfc   : > { %v6651_v4 = vadd.f32 %v4979_v58, %v4978_v50  ;;  %v6660_v13 = vpop.f32.mrf.mxu1  ;;  %v1376_v50 = vsel %vm1244_vm9, %v1371_v43, %v1375_v45  ;;  %v3262_v58 = vrot.slane %v3260_v3, 1  ;;  %v1387_v39 = vrot.slane %v1385_v55, 1  ;;  %v6706_v45 = vld [vmem:[#allocation2 + $0x68] ss:$0 sps:$4 sm:$0x11]  }
  0xfd   : > { %3710 = vmatmul.mubr.bf16.gmra.mxu0 %v6596_v19  ;;  %v1383_v14 = vor.u32 %v1382_v5, %v1378_v37  ;;  %v1404_v3 = vshll.u32 %v6566_v60, 16  ;;  %v3284_v37 = vshll.u32 %v6706_v45, 16  ;;  %v6716_v5 = vld [vmem:[#allocation2 + $0x6c] sm:$0xff]   ;;  %v3296_v18 = vshll.u32 %v6724_v62, 16 }
  0xfe   : > { %3717 = vmatprep.mubr.bf16.mxu0 %v3239_v23  ;;  %v6670_v10 = vpop.f32.mrf.mxu1  ;;  %v3263_v63 = vsel %vm1244_vm9, %v3258_v59, %v3262_v58  ;;  %v1402_v59 = vshrl.u32 %v6566_v60, 16 }
  0xff   : > { %v1388_v25 = vsel %vm1244_vm9, %v1383_v14, %v1387_v39  ;;  %v1406_v58 = vrot.slane %v1404_v3, 1  ;;  %v3286_v39 = vrot.slane %v3284_v37, 1  ;;  %v3298_v3 = vrot.slane %v3296_v18, 1 }
 0x100   : > { %v4981_v54 = vpop.f32.mrf.mxu0 }
 0x101   : > { %2786 = vmatmul.mubr.bf16.gmra.mxu1 %v6473_v57 }
 0x102   : > { %v4982_v41 = vpop.f32.mrf.mxu0  ;;  %2793 = vmatprep.mubr.bf16.mxu1 %v1364_v56 }
 0x103   : > { %v6672_v19 = vadd.f32 %v4982_v41, %v4981_v54  ;;  %v3272_v54 = vshll.u32 %v6686_v0, 16 }
 0x104   : > { %v4984_v42 = vpop.f32.mrf.mxu0 }
 0x105   : > { %3718 = vmatmul.mubr.bf16.gmra.mxu0 %v6611_v6  ;;  %v3274_v43 = vrot.slane %v3272_v54, 1  ;;  %v1411_v54 = vrot.slane %v1409_v12, 1 }
 0x106   : > { %v4985_v57 = vpop.f32.mrf.mxu0  ;;  %3725 = vmatprep.mubr.bf16.mxu0 %v3251_v1 }
 0x107   : > { %v5053_v53 = vpop.f32.mrf.mxu1  ;;  %v6680_v47 = vadd.f32 %v4985_v57, %v4984_v42  ;;  %v3270_v42 = vor.u32 %v3269_v32, %v3265_v35  ;;  %v3291_v35 = vshll.u32 %v6716_v5, 16  ;;  %v1407_v32 = vor.u32 %v1406_v58, %v1402_v59 }
 0x108   : > { %v1428_v59 = vshll.u32 %v6591_v30, 16 }
 0x109   : > { %v5054_v16 = vpop.f32.mrf.mxu1  ;;  %2794 = vmatmul.mubr.bf16.gmra.mxu1 %v6506_v49  ;;  %v3275_v52 = vsel %vm1244_vm9, %v3270_v42, %v3274_v43  ;;  %v3293_v44 = vrot.slane %v3291_v35, 1  ;;  %v1412_v43 = vsel %vm1244_vm9, %v1407_v32, %v1411_v54  ;;  %v1433_v54 = vshll.u32 %v6593_v2, 16 }
 0x10a   : > { %v6689_v24 = vadd.f32 %v5054_v16, %v5053_v53  ;;  %2801 = vmatprep.mubr.bf16.mxu1 %v1376_v50  ;;  %v3277_v53 = vshrl.u32 %v6698_v28, 16  ;;  %v3281_v50 = vrot.slane %v3279_v29, 1  ;;  %v1400_v16 = vsel %vm1244_vm9, %v1395_v7, %v1399_v46 }
 0x10b   : > { %v5056_v6 = vpop.f32.mrf.mxu1  ;;  %v1414_v29 = vshrl.u32 %v6571_v9, 16  ;;  %v1421_v7 = vshll.u32 %v6573_v21, 16  ;;  %v1430_v32 = vrot.slane %v1428_v59, 1 }
 0x10c   : > { %v3282_v14 = vor.u32 %v3281_v50, %v3277_v53 }
 0x10d   : > { %v5057_v61 = vpop.f32.mrf.mxu1  ;;  %3726 = vmatmul.mubr.bf16.gmra.mxu0 %v6614_v20 }
 0x10e   : > { %v4987_v23 = vpop.f32.mrf.mxu0  ;;  %v6696_v56 = vadd.f32 %v5057_v61, %v5056_v6  ;;  %3733 = vmatprep.mubr.bf16.mxu0 %v3263_v63  ;;  %v3287_v17 = vsel %vm1244_vm9, %v3282_v14, %v3286_v39  ;;  %v6752_v39 = vld [vmem:[#allocation2 + $0x84] sm:$0xff]  }
 0x10f   : > { %v3315_v18 = vshll.u32 %v6752_v39, 16 }
 0x110   : > { %v4988_v49 = vpop.f32.mrf.mxu0 }
 0x111   : > { %v6701_v36 = vadd.f32 %v4988_v49, %v4987_v23  ;;  %2802 = vmatmul.mubr.bf16.gmra.mxu1 %v6515_v15  ;;  %v1416_v49 = vshll.u32 %v6571_v9, 16 }
 0x112   : > { %v4990_v41 = vpop.f32.mrf.mxu0  ;;  %2809 = vmatprep.mubr.bf16.mxu1 %v1388_v25  ;;  %v3289_v25 = vshrl.u32 %v6716_v5, 16 }
 0x114   : > { %v4991_v20 = vpop.f32.mrf.mxu0  ;;  %v3294_v46 = vor.u32 %v3293_v44, %v3289_v25  ;;  %v6760_v44 = vld [vmem:[#allocation2 + $0x8c] ss:$0 sps:$4 sm:$0x11]  }
 0x115   : > { %v6710_v1 = vadd.f32 %v4991_v20, %v4990_v41  ;;  %3734 = vmatmul.mubr.bf16.gmra.mxu0 %v6656_v33  ;;  %v6734_v41 = vld [vmem:[#allocation2 + $0x78] sm:$0xff]   ;;  %v1418_v20 = vrot.slane %v1416_v49, 1 }
 0x116   : > { %v5059_v57 = vpop.f32.mrf.mxu1  ;;  %3741 = vmatprep.mubr.bf16.mxu0 %v3275_v52  ;;  %v6742_v52 = vld [vmem:[#allocation2 + $0x80] ss:$0 sps:$4 sm:$0x11]   ;;  %v3303_v53 = vshll.u32 %v6734_v41, 16  ;;  %v3299_v21 = vsel %vm1244_vm9, %v3294_v46, %v3298_v3  ;;  %v3301_v12 = vshrl.u32 %v6734_v41, 16  ;;  %v3313_v3 = vshrl.u32 %v6752_v39, 16 }
 0x117   : > { %v3308_v14 = vshll.u32 %v6742_v52, 16 }
 0x118   : > { %v5060_v55 = vpop.f32.mrf.mxu1 }
 0x119   : > { %v6719_v15 = vadd.f32 %v5060_v55, %v5059_v57  ;;  %2810 = vmatmul.mubr.bf16.gmra.mxu1 %v6547_v51  ;;  %v1419_v55 = vor.u32 %v1418_v20, %v1414_v29  ;;  %v3310_v25 = vrot.slane %v3308_v14, 1  ;;  %v1435_v29 = vrot.slane %v1433_v54, 1 }
 0x11a   : > { %v5062_v6 = vpop.f32.mrf.mxu1  ;;  %2817 = vmatprep.mubr.bf16.mxu1 %v1400_v16  ;;  %v1423_v16 = vrot.slane %v1421_v7, 1 }
 0x11c   : > { %v5063_v61 = vpop.f32.mrf.mxu1 }
 0x11d   : > { %v6728_v23 = vadd.f32 %v5063_v61, %v5062_v6  ;;  %v4993_v63 = vpop.f32.mrf.mxu0  ;;  %3742 = vmatmul.mubr.bf16.gmra.mxu0 %v6678_v34  ;;  %v3305_v6 = vrot.slane %v3303_v53, 1  ;;  %v1424_v61 = vsel %vm1244_vm9, %v1419_v55, %v1423_v16  ;;  %v3320_v53 = vshll.u32 %v6760_v44, 16 }
 0x11e   : > { %3749 = vmatprep.mubr.bf16.mxu0 %v3287_v17 }
 0x11f   : > { %v4994_v40 = vpop.f32.mrf.mxu0  ;;  %v3306_v17 = vor.u32 %v3305_v6, %v3301_v12  ;;  %v3322_v14 = vrot.slane %v3320_v53, 1  ;;  %v6804_v53 = vld [vmem:[#allocation2 + $0xa4] ss:$0 sps:$4 sm:$0x11]  }
 0x120   : > { %v6736_v51 = vadd.f32 %v4994_v40, %v4993_v63  ;;  %v1426_v63 = vshrl.u32 %v6591_v30, 16 }
 0x121   : > { %v4996_v42 = vpop.f32.mrf.mxu0  ;;  %2818 = vmatmul.mubr.bf16.gmra.mxu1 %v6550_v26  ;;  %v3311_v2 = vsel %vm1244_vm9, %v3306_v17, %v3310_v25 }
 0x122   : > { %2825 = vmatprep.mubr.bf16.mxu1 %v1412_v43  ;;  %v1431_v43 = vor.u32 %v1430_v32, %v1426_v63 }
 0x123   : > { %v4997_v57 = vpop.f32.mrf.mxu0 }
 0x124   : > { %v6746_v50 = vadd.f32 %v4997_v57, %v4996_v42  ;;  %v5065_v37 = vpop.f32.mrf.mxu1  ;;  %v3317_v57 = vrot.slane %v3315_v18, 1 }
 0x125   : > { %3750 = vmatmul.mubr.bf16.gmra.mxu0 %v6698_v28 }
 0x126   : > { %v5066_v58 = vpop.f32.mrf.mxu1  ;;  %3757 = vmatprep.mubr.bf16.mxu0 %v3299_v21  ;;  %v3318_v6 = vor.u32 %v3317_v57, %v3313_v3 }
 0x127   : > { %v6754_v35 = vadd.f32 %v5066_v58, %v5065_v37  ;;  %v6772_v37 = vld [vmem:[#allocation2 + $0x90] sm:$0xff]  }
 0x128   : > { %v5068_v26 = vpop.f32.mrf.mxu1  ;;  %v3325_v25 = vshrl.u32 %v6772_v37, 16 }
 0x129   : > { %2826 = vmatmul.mubr.bf16.gmra.mxu1 %v6566_v60 }
 0x12a   : > { %v5069_v49 = vpop.f32.mrf.mxu1  ;;  %2833 = vmatprep.mubr.bf16.mxu1 %v1424_v61  ;;  %v3327_v61 = vshll.u32 %v6772_v37, 16 }
 0x12b   : > { %v6764_v40 = vadd.f32 %v5069_v49, %v5068_v26  ;;  %v6782_v26 = vld [vmem:[#allocation2 + $0x98] ss:$0 sps:$4 sm:$0x11]  }
 0x12c   : > { %v5385_v42 = vpop.f32.mrf.mxu1  ;;  %v3329_v18 = vrot.slane %v3327_v61, 1 }
 0x12d   : > { %v4999_v20 = vpop.f32.mrf.mxu0  ;;  %v6767_v7 = vadd.f32 %v5385_v42, %v6672_v19  ;;  %3758 = vmatmul.mubr.bf16.gmra.mxu0 %v6716_v5  ;;  %v1436_v19 = vsel %vm1244_vm9, %v1431_v43, %v1435_v29  ;;  %v3332_v42 = vshll.u32 %v6782_v26, 16  ;;  %v6795_v43 = vld [vmem:[#allocation2 + $0x9c] sm:$0xff]  }
 0x12e   : > { %v2418_v46 = vpop.f32.mrf.mxu1  ;;  %3765 = vmatprep.mubr.bf16.mxu0 %v3311_v2  ;;  %v3330_v3 = vor.u32 %v3329_v18, %v3325_v25 }
 0x12f   : > { %v5000_v60 = vpop.f32.mrf.mxu0  ;;  %v6775_v55 = vadd.f32 %v6642_v48, %v2418_v46  ;;  %v3334_v57 = vrot.slane %v3332_v42, 1 }
 0x130   : > { %v5001_v16 = vadd.f32 %v5000_v60, %v4999_v20  ;;  %v5386_v59 = vpop.f32.mrf.mxu1  ;;  %v3339_v60 = vshll.u32 %v6795_v43, 16 }
 0x131   : > { %v5002_v21 = vpop.f32.mrf.mxu0  ;;  %v6780_v58 = vadd.f32 %v5386_v59, %v6680_v47  ;;  %2834 = vmatmul.mubr.bf16.gmra.mxu1 %v6571_v9  ;;  %v3323_v47 = vsel %vm1244_vm9, %v3318_v6, %v3322_v14  ;;  %v3335_v14 = vsel %vm1244_vm9, %v3330_v3, %v3334_v57 }
 0x132   : > { %v2421_v12 = vpop.f32.mrf.mxu1  ;;  %2841 = vmatprep.mubr.bf16.mxu1 %v1436_v19 }
 0x133   : > { %v5003_v48 = vpop.f32.mrf.mxu0  ;;  %v6787_v63 = vadd.f32 %v6651_v4, %v2421_v12  ;;  %v3337_v12 = vshrl.u32 %v6795_v43, 16 }
 0x134   : > { %v5004_v32 = vadd.f32 %v5003_v48, %v5002_v21  ;;  %v5389_v54 = vpop.f32.mrf.mxu1  ;;  %v3341_v48 = vrot.slane %v3339_v60, 1 }
 0x135   : > { %v6790_v49 = vadd.f32 %v5389_v54, %v6736_v51  ;;  %3766 = vmatmul.mubr.bf16.gmra.mxu0 %v6734_v41  ;;  %v3344_v54 = vshll.u32 %v6804_v53, 16 }
 0x136   : > { %v2434_v17 = vpop.f32.mrf.mxu1  ;;  %3773 = vmatprep.mubr.bf16.mxu0 %v3323_v47  ;;  %v3342_v18 = vor.u32 %v3341_v48, %v3337_v12 }
 0x137   : > { %v6798_v4 = vadd.f32 %v6701_v36, %v2434_v17  ;;  %v3346_v42 = vrot.slane %v3344_v54, 1 }
 0x138   : > { %v5005_v9 = vpop.f32.mrf.mxu0  ;;  %v5390_v29 = vpop.f32.mrf.mxu1 }
 0x139   : > { %v6802_v20 = vadd.f32 %v5390_v29, %v6746_v50  ;;  %2842 = vmatmul.mubr.bf16.gmra.mxu1 %v6591_v30  ;;  %v6817_v30 = vld [vmem:[#allocation2 + $0xa8] sm:$0xff]   ;;  %v3347_v60 = vsel %vm1244_vm9, %v3342_v18, %v3346_v42  ;;  %v3428_v18 = vrot.slane %v6686_v0, 1 }
 0x13a   : > { %v5006_v51 = vpop.f32.mrf.mxu0  ;;  %v2437_v46 = vpop.f32.mrf.mxu1  ;;  %5479 = vmatprep.mubr.bf16.mxu1 %v6619_v22  ;;  %v3351_v29 = vshll.u32 %v6817_v30, 16 }
 0x13b   : > { %v5007_v2 = vadd.f32 %v5006_v51, %v5005_v9  ;;  %v6809_v59 = vadd.f32 %v6710_v1, %v2437_v46  ;;  %v6824_v9 = vld [vmem:[#allocation2 + $0xb0] ss:$0 sps:$4 sm:$0x11]   ;;  %v3425_v46 = vrot.slane %v6666_v8, 1 }
 0x13c   : > { %v5008_v36 = vpop.f32.mrf.mxu0  ;;  %v5393_v19 = vpop.f32.mrf.mxu1  ;;  %v3356_v12 = vshll.u32 %v6824_v9, 16 }
 0x13d   : > { %v6812_v50 = vadd.f32 %v5393_v19, %v5007_v2  ;;  %3774 = vmatmul.mubr.bf16.gmra.mxu0 %v6752_v39  ;;  %v3424_v2 = vrot.slane %v6656_v33, 1  ;;  %v3349_v19 = vshrl.u32 %v6817_v30, 16 }
 0x13e   : > { %v5009_v21 = vpop.f32.mrf.mxu0  ;;  %v2450_v61 = vpop.f32.mrf.mxu1  ;;  %3781 = vmatprep.mubr.bf16.mxu0 %v3335_v14  ;;  %v3358_v54 = vrot.slane %v3356_v12, 1 }
 0x13f   : > { %v5010_v6 = vadd.f32 %v5009_v21, %v5008_v36  ;;  %v6819_v47 = vadd.f32 %v5001_v16, %v2450_v61  ;;  %v3353_v21 = vrot.slane %v3351_v29, 1  ;;  %v3426_v33 = vsel %vm1453_vm10, %v3424_v2, %v3425_v46 }
 0x140   : > { %v5394_v22 = vpop.f32.mrf.mxu1  ;;  %v3431_v2 = vrot.slane %v6706_v45, 1 }
 0x141   : > { %v6822_v1 = vadd.f32 %v5394_v22, %v5010_v6  ;;  %5480 = vmatmul.mubr.bf16.vlgmr.msra.gmra.mxu1 %v6622_v11  ;;  %v6836_v11 = vld [vmem:[#allocation2 + $0xb4] sm:$0xff]   ;;  %v3354_v48 = vor.u32 %v3353_v21, %v3349_v19  ;;  %v6842_v22 = vld [vmem:[#allocation2 + $0xbc] ss:$0 sps:$4 sm:$0x11]  }
 0x142   : > { %v2453_v25 = vpop.f32.mrf.mxu1  ;;  %5483 = vmatprep.mubr.bf16.mxu1 %v6632_v38  ;;  %v3361_v19 = vshrl.u32 %v6836_v11, 16  ;;  %v3368_v21 = vshll.u32 %v6842_v22, 16 }
 0x143   : > { %v5011_v17 = vpop.f32.mrf.mxu0  ;;  %v6828_v51 = vadd.f32 %v5004_v32, %v2453_v25  ;;  %v3427_v25 = vrot.slane %v6678_v34, 1  ;;  %v6855_v34 = vld [vmem:[#allocation2 + $0xc0] sm:$0xff]  }
 0x145   : > { %v5012_v16 = vpop.f32.mrf.mxu0  ;;  %3782 = vmatmul.mubr.bf16.gmra.mxu0 %v6772_v37  ;;  %v3429_v12 = vsel %vm1453_vm10, %v3427_v25, %v3428_v18  ;;  %v3436_v25 = vrot.slane %v6734_v41, 1  ;;  %v3437_v18 = vrot.slane %v6742_v52, 1 }
 0x146   : > { %v5013_v3 = vadd.f32 %v5012_v16, %v5011_v17  ;;  %3789 = vmatprep.mubr.bf16.mxu0 %v3347_v60  ;;  %v3363_v17 = vshll.u32 %v6836_v11, 16  ;;  %v3430_v16 = vrot.slane %v6698_v28, 1  ;;  %v3359_v60 = vsel %vm1244_vm9, %v3354_v48, %v3358_v54 }
 0x147   : > { %v5014_v57 = vpop.f32.mrf.mxu0  ;;  %v5397_v36 = vpop.f32.mrf.mxu1  ;;  %v3433_v54 = vrot.slane %v6716_v5, 1  ;;  %v3438_v52 = vsel %vm1453_vm10, %v3436_v25, %v3437_v18  ;;  %v3442_v25 = vrot.slane %v6772_v37, 1  ;;  %v3443_v18 = vrot.slane %v6782_v26, 1 }
 0x148   : > { %v3432_v45 = vsel %vm1453_vm10, %v3430_v16, %v3431_v2  ;;  %v3373_v16 = vshrl.u32 %v6855_v34, 16 }
 0x149   : > { %v5015_v38 = vpop.f32.mrf.mxu0  ;;  %v2466_v32 = vpop.f32.mrf.mxu1  ;;  %5484 = vmatmul.mubr.bf16.gmra.mxu1 %v6636_v31  ;;  %v3365_v31 = vrot.slane %v3363_v17, 1  ;;  %v3434_v17 = vrot.slane %v6724_v62, 1  ;;  %v3444_v37 = vsel %vm1453_vm10, %v3442_v25, %v3443_v18 }
 0x14a   : > { %v5016_v6 = vadd.f32 %v5015_v38, %v5014_v57  ;;  %v6840_v8 = vadd.f32 %v5013_v3, %v2466_v32  ;;  %5487 = vmatprep.mubr.bf16.mxu1 %v3426_v33  ;;  %v3370_v33 = vrot.slane %v3368_v21, 1 }
 0x14b   : > { %v5017_v14 = vpop.f32.mrf.mxu0  ;;  %v5398_v61 = vpop.f32.mrf.mxu1  ;;  %v3366_v32 = vor.u32 %v3365_v31, %v3361_v19  ;;  %v3435_v62 = vsel %vm1453_vm10, %v3433_v54, %v3434_v17  ;;  %v3440_v54 = vrot.slane %v6760_v44, 1 }
 0x14d   : > { %v5018_v42 = vpop.f32.mrf.mxu0  ;;  %v2469_v29 = vpop.f32.mrf.mxu1  ;;  %3790 = vmatmul.mubr.bf16.gmra.mxu0 %v6795_v43 }
 0x14e   : > { %v5019_v46 = vadd.f32 %v5018_v42, %v5017_v14  ;;  %v6850_v3 = vadd.f32 %v5016_v6, %v2469_v29  ;;  %3797 = vmatprep.mubr.bf16.mxu0 %v3359_v60  ;;  %v6862_v6 = vld [vmem:[#allocation2 + $0xc8] ss:$0 sps:$4 sm:$0x11]   ;;  %v3375_v14 = vshll.u32 %v6855_v34, 16  ;;  %v6874_v60 = vld [vmem:[#allocation2 + $0xcc] sm:$0xff]  }
 0x14f   : > { %v5020_v57 = vpop.f32.mrf.mxu0 }
 0x150   : > { %v6857_v0 = vadd.f32 %v5397_v36, %v5019_v46  ;;  %v3371_v46 = vsel %vm1244_vm9, %v3366_v32, %v3370_v33  ;;  %v3387_v32 = vshll.u32 %v6874_v60, 16 }
 0x151   : > { %v5021_v28 = vpop.f32.mrf.mxu0  ;;  %5488 = vmatmul.mubr.bf16.gmra.mxu1 %v3429_v12 }
 0x152   : > { %v5022_v38 = vadd.f32 %v5021_v28, %v5020_v57  ;;  %5491 = vmatprep.mubr.bf16.mxu1 %v3432_v45  ;;  %v3377_v57 = vrot.slane %v3375_v14, 1 }
 0x154   : > { %v6865_v48 = vadd.f32 %v5398_v61, %v5022_v38  ;;  %v5023_v36 = vpop.f32.mrf.mxu0  ;;  %v3380_v61 = vshll.u32 %v6862_v6, 16  ;;  %v3378_v28 = vor.u32 %v3377_v57, %v3373_v16  ;;  %v6881_v38 = vld [vmem:[#allocation2 + $0xd4] ss:$0 sps:$4 sm:$0x11]   ;;  %v3385_v16 = vshrl.u32 %v6874_v60, 16 }
 0x155   : > { %3798 = vmatmul.mubr.bf16.gmra.mxu0 %v6817_v30  ;;  %v3389_v57 = vrot.slane %v3387_v32, 1 }
 0x156   : > { %v5401_v42 = vpop.f32.mrf.mxu1  ;;  %v5024_v29 = vpop.f32.mrf.mxu0  ;;  %3805 = vmatprep.mubr.bf16.mxu0 %v3371_v46  ;;  %v3382_v45 = vrot.slane %v3380_v61, 1  ;;  %v3392_v61 = vshll.u32 %v6881_v38, 16 }
 0x157   : > { %v5025_v2 = vadd.f32 %v5024_v29, %v5023_v36  ;;  %v3439_v36 = vrot.slane %v6752_v39, 1 }
 0x158   : > { %v2482_v19 = vpop.f32.mrf.mxu1  ;;  %v5026_v5 = vpop.f32.mrf.mxu0  ;;  %v3383_v46 = vsel %vm1244_vm9, %v3378_v28, %v3382_v45  ;;  %v3448_v45 = vrot.slane %v6817_v30, 1  ;;  %v3451_v30 = vrot.slane %v6836_v11, 1 }
 0x159   : > { %v6878_v41 = vadd.f32 %v5025_v2, %v2482_v19  ;;  %5492 = vmatmul.mubr.bf16.gmra.mxu1 %v3435_v62  ;;  %v3441_v39 = vsel %vm1453_vm10, %v3439_v36, %v3440_v54  ;;  %v3390_v62 = vor.u32 %v3389_v57, %v3385_v16  ;;  %v3454_v16 = vrot.slane %v6855_v34, 1 }
 0x15a   : > { %v5402_v31 = vpop.f32.mrf.mxu1  ;;  %v5027_v21 = vpop.f32.mrf.mxu0  ;;  %5495 = vmatprep.mubr.bf16.mxu1 %v3438_v52  ;;  %v3394_v52 = vrot.slane %v3392_v61, 1 }
 0x15b   : > { %v5028_v12 = vadd.f32 %v5027_v21, %v5026_v5  ;;  %v3445_v21 = vrot.slane %v6795_v43, 1 }
 0x15c   : > { %v2485_v33 = vpop.f32.mrf.mxu1  ;;  %v5029_v14 = vpop.f32.mrf.mxu0 }
 0x15d   : > { %v6886_v17 = vadd.f32 %v5028_v12, %v2485_v33  ;;  %3806 = vmatmul.mubr.bf16.gmra.mxu0 %v6836_v11  ;;  %v3446_v12 = vrot.slane %v6804_v53, 1  ;;  %v3395_v33 = vsel %vm1244_vm9, %v3390_v62, %v3394_v52  ;;  %v3458_v62 = vrot.slane %v6881_v38, 1 }
 0x15e   : > { %v5030_v29 = vpop.f32.mrf.mxu0  ;;  %3813 = vmatprep.mubr.bf16.mxu0 %v3383_v46 }
 0x15f   : > { %v5031_v2 = vadd.f32 %v5030_v29, %v5029_v14  ;;  %v3447_v14 = vsel %vm1453_vm10, %v3445_v21, %v3446_v12 }
 0x160   : > { %v5032_v19 = vpop.f32.mrf.mxu0 }
 0x161   : > { %v6895_v44 = vadd.f32 %v5401_v42, %v5031_v2  ;;  %5496 = vmatmul.mubr.bf16.gmra.mxu1 %v3441_v39  ;;  %v3449_v42 = vrot.slane %v6824_v9, 1  ;;  %v3452_v9 = vrot.slane %v6842_v22, 1  ;;  %v3455_v2 = vrot.slane %v6862_v6, 1 }
 0x162   : > { %v5033_v5 = vpop.f32.mrf.mxu0  ;;  %5499 = vmatprep.mubr.bf16.mxu1 %v3444_v37  ;;  %v3457_v6 = vrot.slane %v6874_v60, 1 }
 0x163   : > { %v5034_v26 = vadd.f32 %v5033_v5, %v5032_v19  ;;  %v3450_v54 = vsel %vm1453_vm10, %v3448_v45, %v3449_v42  ;;  %v3453_v61 = vsel %vm1453_vm10, %v3451_v30, %v3452_v9  ;;  %v3456_v11 = vsel %vm1453_vm10, %v3454_v16, %v3455_v2 }
 0x165   : > { %v6900_v28 = vadd.f32 %v5402_v31, %v5034_v26  ;;  %v5035_v32 = vpop.f32.mrf.mxu0  ;;  %3814 = vmatmul.mubr.bf16.gmra.mxu0 %v6855_v34 }
 0x166   : > { %3821 = vmatprep.mubr.bf16.mxu0 %v3395_v33 }
 0x167   : > { %v5036_v36 = vpop.f32.mrf.mxu0 }
 0x168   : > { %v5037_v25 = vadd.f32 %v5036_v36, %v5035_v32 }
 0x169   : > { %v5038_v43 = vpop.f32.mrf.mxu0  ;;  %v5405_v53 = vpop.f32.mrf.mxu1  ;;  %5500 = vmatmul.mubr.bf16.gmra.mxu1 %v3447_v14  ;;  %v5052_v14 = vadd.f32 %v6670_v10, %v6660_v13 }
 0x16a   : > { %5503 = vmatprep.mubr.bf16.mxu1 %v3450_v54 }
 0x16b   : > { %v5039_v31 = vpop.f32.mrf.mxu0  ;;  %v2498_v18 = vpop.f32.mrf.mxu1 }
 0x16c   : > { %v5040_v29 = vadd.f32 %v5039_v31, %v5038_v43  ;;  %v6912_v46 = vadd.f32 %v5037_v25, %v2498_v18 }
 0x16d   : > { %v5406_v57 = vpop.f32.mrf.mxu1  ;;  %v5041_v19 = vpop.f32.mrf.mxu0  ;;  %3822 = vmatmul.mubr.bf16.gmra.mxu0 %v6874_v60  ;;  %v3459_v60 = vsel %vm1453_vm10, %v3457_v6, %v3458_v62 }
 0x16f   : > { %v2501_v39 = vpop.f32.mrf.mxu1  ;;  %v5042_v22 = vpop.f32.mrf.mxu0 }
 0x170   : > { %v6917_v37 = vadd.f32 %v5040_v29, %v2501_v39  ;;  %v5043_v26 = vadd.f32 %v5042_v22, %v5041_v19 }
 0x171   : > { %v5409_v5 = vpop.f32.mrf.mxu1  ;;  %5504 = vmatmul.mubr.bf16.gmra.mxu1 %v3453_v61  ;;  %v5044_v52 = vpop.f32.mrf.mxu0 }
 0x172   : > { %v6920_v34 = vadd.f32 %v5409_v5, %v6689_v24  ;;  %5507 = vmatprep.mubr.bf16.mxu1 %v3456_v11  ;;  %v6924_v12 = vadd.f32 %v5405_v53, %v5043_v26 }
 0x173   : > { %v2514_v21 = vpop.f32.mrf.mxu1  ;;  %v5045_v42 = vpop.f32.mrf.mxu0 }
 0x174   : > { %v6927_v45 = vadd.f32 %v6648_v27, %v2514_v21  ;;  %v5046_v33 = vadd.f32 %v5045_v42, %v5044_v52 }
 0x175   : > { %v5410_v32 = vpop.f32.mrf.mxu1  ;;  %v5433_v36 = vpop.f32.mrf.mxu0 }
 0x176   : > { %v6932_v24 = vadd.f32 %v5410_v32, %v6696_v56  ;;  %v6935_v54 = vadd.f32 %v5406_v57, %v5046_v33 }
 0x177   : > { %v2517_v38 = vpop.f32.mrf.mxu1  ;;  %v2884_v43 = vpop.f32.mrf.mxu0 }
 0x178   : > { %v6937_v25 = vadd.f32 %v5052_v14, %v2517_v38 }
 0x179   : > { %v5413_v27 = vpop.f32.mrf.mxu1  ;;  %5508 = vmatmul.mubr.bf16.gmra.mxu1 %v3459_v60  ;;  %v5434_v30 = vpop.f32.mrf.mxu0 }
 0x17a   : > { %v6940_v53 = vadd.f32 %v5413_v27, %v6754_v35 }
 0x17b   : > { %v2530_v9 = vpop.f32.mrf.mxu1  ;;  %v2887_v10 = vpop.f32.mrf.mxu0 }
 0x17c   : > { %v6943_v13 = vadd.f32 %v6719_v15, %v2530_v9 }
 0x17d   : > { %v5414_v56 = vpop.f32.mrf.mxu1  ;;  %v5437_v18 = vpop.f32.mrf.mxu0 }
 0x17e   : > { %v6946_v31 = vadd.f32 %v5414_v56, %v6764_v40 }
 0x17f   : > { %v2533_v29 = vpop.f32.mrf.mxu1  ;;  %v2900_v2 = vpop.f32.mrf.mxu0 }
 0x180   : > { %7366 = vst [vmem:[#allocation3_spill] sm:$0xff] %v6946_v31  ;;  %v6949_v16 = vadd.f32 %v6728_v23, %v2533_v29 }
 0x181   : > { %v5111_v57 = vpop.f32.mrf.mxu1  ;;  %v5438_v61 = vpop.f32.mrf.mxu0 }
 0x183   : > { %v5112_v35 = vpop.f32.mrf.mxu1  ;;  %v2903_v39 = vpop.f32.mrf.mxu0 }
 0x184   : > { %v5113_v19 = vadd.f32 %v5112_v35, %v5111_v57 }
 0x185   : > { %v5114_v11 = vpop.f32.mrf.mxu1  ;;  %v6952_v22 = vpop.f32.mrf.mxu0 }
 0x186   : > { %v2724_v15 = vadd.f32 %v5113_v19, %v6775_v55 }
 0x187   : > { %v5115_v5 = vpop.f32.mrf.mxu1  ;;  %v2916_v6 = vpop.f32.mrf.mxu0 }
 0x188   : > { %v6954_v26 = vadd.f32 %v2884_v43, %v2724_v15  ;;  %v5116_v40 = vadd.f32 %v5115_v5, %v5114_v11 }
 0x189   : > { %v5117_v62 = vpop.f32.mrf.mxu1  ;;  %v6957_v52 = vpop.f32.mrf.mxu0 }
 0x18a   : > { %v2727_v23 = vadd.f32 %v5116_v40, %v6787_v63 }
 0x18b   : > { %v5118_v21 = vpop.f32.mrf.mxu1  ;;  %v2919_v33 = vpop.f32.mrf.mxu0 }
 0x18c   : > { %v6959_v42 = vadd.f32 %v2887_v10, %v2727_v23  ;;  %v5119_v32 = vadd.f32 %v5118_v21, %v5117_v62 }
 0x18d   : > { %v5120_v14 = vpop.f32.mrf.mxu1  ;;  %v6962_v60 = vpop.f32.mrf.mxu0 }
 0x18e   : > { %v2732_v55 = vadd.f32 %v5119_v32, %v6767_v7 }
 0x18f   : > { %v5121_v38 = vpop.f32.mrf.mxu1  ;;  %v6964_v27 = vpop.f32.mrf.mxu0 }
 0x190   : > { %v5122_v43 = vadd.f32 %v5121_v38, %v5120_v14  ;;  %v6966_v9 = vadd.f32 %v5433_v36, %v2732_v55 }
 0x191   : > { %v5123_v56 = vpop.f32.mrf.mxu1  ;;  %v6969_v29 = vpop.f32.mrf.mxu0 }
 0x192   : > { %v2735_v63 = vadd.f32 %v5122_v43, %v6780_v58 }
 0x193   : > { %v5124_v10 = vpop.f32.mrf.mxu1  ;;  %v6971_v35 = vpop.f32.mrf.mxu0 }
 0x194   : > { %v5125_v57 = vadd.f32 %v5124_v10, %v5123_v56  ;;  %v6973_v19 = vadd.f32 %v5434_v30, %v2735_v63 }
 0x195   : > { %v5126_v7 = vpop.f32.mrf.mxu1  ;;  %v6976_v15 = vpop.f32.mrf.mxu0 }
 0x196   : > { %v2740_v11 = vadd.f32 %v5125_v57, %v6798_v4 }
 0x197   : > { %v5127_v5 = vpop.f32.mrf.mxu1  ;;  %v6978_v36 = vpop.f32.mrf.mxu0 }
 0x198   : > { %v5128_v40 = vadd.f32 %v5127_v5, %v5126_v7  ;;  %v6980_v62 = vadd.f32 %v2900_v2, %v2740_v11 }
 0x199   : > { %v5129_v58 = vpop.f32.mrf.mxu1  ;;  %v6983_v21 = vpop.f32.mrf.mxu0 }
 0x19a   : > { %v2743_v23 = vadd.f32 %v5128_v40, %v6809_v59 }
 0x19b   : > { %v5130_v32 = vpop.f32.mrf.mxu1  ;;  %v6985_v30 = vpop.f32.mrf.mxu0 }
 0x19c   : > { %v5131_v14 = vadd.f32 %v5130_v32, %v5129_v58  ;;  %v6987_v55 = vadd.f32 %v2903_v39, %v2743_v23 }
 0x19d   : > { %v5132_v4 = vpop.f32.mrf.mxu1  ;;  %v6990_v43 = vpop.f32.mrf.mxu0 }
 0x19e   : > { %v2748_v38 = vadd.f32 %v5131_v14, %v6790_v49 }
 0x19f   : > { %v5133_v56 = vpop.f32.mrf.mxu1  ;;  %v6992_v2 = vpop.f32.mrf.mxu0 }
 0x1a0   : > { %v5134_v63 = vadd.f32 %v5133_v56, %v5132_v4  ;;  %v6994_v10 = vadd.f32 %v5437_v18, %v2748_v38 }
 0x1a1   : > { %v5135_v59 = vpop.f32.mrf.mxu1  ;;  %v6997_v7 = vpop.f32.mrf.mxu0 }
 0x1a2   : > { %v2751_v57 = vadd.f32 %v5134_v63, %v6802_v20 }
 0x1a3   : > { %v5136_v11 = vpop.f32.mrf.mxu1  ;;  %v6999_v39 = vpop.f32.mrf.mxu0 }
 0x1a4   : > { %v5137_v5 = vadd.f32 %v5136_v11, %v5135_v59  ;;  %v7001_v40 = vadd.f32 %v5438_v61, %v2751_v57 }
 0x1a5   : > { %v5138_v49 = vpop.f32.mrf.mxu1  ;;  %v7004_v23 = vpop.f32.mrf.mxu0 }
 0x1a6   : > { %v2756_v58 = vadd.f32 %v5137_v5, %v6819_v47  ;;  %7367 = vst [vmem:[#allocation4_spill] sm:$0xff] %v7004_v23 }
 0x1a7   : > { %v5139_v32 = vpop.f32.mrf.mxu1  ;;  %v7006_v18 = vpop.f32.mrf.mxu0 }
 0x1a8   : > { %v5140_v14 = vadd.f32 %v5139_v32, %v5138_v49  ;;  %v7008_v4 = vadd.f32 %v2916_v6, %v2756_v58 }
 0x1a9   : > { %v5141_v20 = vpop.f32.mrf.mxu1  ;;  %v7011_v56 = vpop.f32.mrf.mxu0 }
 0x1aa   : > { %v2759_v38 = vadd.f32 %v5140_v14, %v6828_v51  ;;  %7368 = vst [vmem:[#allocation5_spill] sm:$0xff] %v7011_v56 }
 0x1ab   : > { %v5142_v63 = vpop.f32.mrf.mxu1  ;;  %v7013_v61 = vpop.f32.mrf.mxu0 }
 0x1ac   : > { %v5143_v59 = vadd.f32 %v5142_v63, %v5141_v20  ;;  %v7015_v57 = vadd.f32 %v2919_v33, %v2759_v38 }
 0x1ad   : > { %v5144_v47 = vpop.f32.mrf.mxu1  ;;  %v7018_v5 = vpop.f32.mrf.mxu0 }
 0x1ae   : > { %v2764_v11 = vadd.f32 %v5143_v59, %v6812_v50  ;;  %7369 = vst [vmem:[#allocation6_spill] sm:$0xff] %v7018_v5 }
 0x1af   : > { %v5145_v49 = vpop.f32.mrf.mxu1  ;;  %v7020_v6 = vpop.f32.mrf.mxu0 }
 0x1b0   : > { %v5146_v32 = vadd.f32 %v5145_v49, %v5144_v47  ;;  %7370 = vst [vmem:[#allocation7_spill] sm:$0xff] %v7020_v6  ;;  %v7023_v58 = vadd.f32 %v6952_v22, %v2764_v11 }
 0x1b1   : > { %v5147_v51 = vpop.f32.mrf.mxu1  ;;  %v7026_v20 = vpop.f32.mrf.mxu0 }
 0x1b2   : > { %v2767_v14 = vadd.f32 %v5146_v32, %v6822_v1  ;;  %7371 = vst [vmem:[#allocation8_spill] sm:$0xff] %v7026_v20 }
 0x1b3   : > { %v5148_v63 = vpop.f32.mrf.mxu1  ;;  %v7028_v38 = vpop.f32.mrf.mxu0 }
 0x1b4   : > { %v5149_v33 = vadd.f32 %v5148_v63, %v5147_v51  ;;  %7372 = vst [vmem:[#allocation9_spill] sm:$0xff] %v7028_v38  ;;  %v7031_v50 = vadd.f32 %v6957_v52, %v2767_v14 }
 0x1b5   : > { %v5150_v59 = vpop.f32.mrf.mxu1  ;;  %v5247_v49 = vpop.f32.mrf.mxu0 }
 0x1b6   : > { %v2772_v47 = vadd.f32 %v5149_v33, %v6840_v8 }
 0x1b7   : > { %v5151_v5 = vpop.f32.mrf.mxu1  ;;  %v5248_v22 = vpop.f32.mrf.mxu0 }
 0x1b8   : > { %v5152_v6 = vadd.f32 %v5151_v5, %v5150_v59  ;;  %v7035_v11 = vadd.f32 %v6964_v27, %v2772_v47  ;;  %v7037_v32 = vadd.f32 %v5248_v22, %v5247_v49 }
 0x1b9   : > { %v5153_v1 = vpop.f32.mrf.mxu1  ;;  %v5250_v63 = vpop.f32.mrf.mxu0 }
 0x1ba   : > { %v2775_v51 = vadd.f32 %v5152_v6, %v6850_v3 }
 0x1bb   : > { %v5154_v38 = vpop.f32.mrf.mxu1  ;;  %v5251_v52 = vpop.f32.mrf.mxu0 }
 0x1bc   : > { %v5155_v20 = vadd.f32 %v5154_v38, %v5153_v1  ;;  %v7041_v14 = vadd.f32 %v6971_v35, %v2775_v51  ;;  %v7043_v33 = vadd.f32 %v5251_v52, %v5250_v63 }
 0x1bd   : > { %v5156_v8 = vpop.f32.mrf.mxu1  ;;  %v7046_v59 = vpop.f32.mrf.mxu0 }
 0x1be   : > { %v2780_v5 = vadd.f32 %v5155_v20, %v6857_v0 }
 0x1bf   : > { %v5157_v27 = vpop.f32.mrf.mxu1  ;;  %v7048_v49 = vpop.f32.mrf.mxu0 }
 0x1c0   : > { %v5158_v47 = vadd.f32 %v5157_v27, %v5156_v8  ;;  %v7051_v3 = vadd.f32 %v6962_v60, %v2780_v5 }
 0x1c1   : > { %v5159_v6 = vpop.f32.mrf.mxu1  ;;  %v7054_v22 = vpop.f32.mrf.mxu0 }
 0x1c2   : > { %v2783_v38 = vadd.f32 %v5158_v47, %v6865_v48 }
 0x1c3   : > { %v5160_v35 = vpop.f32.mrf.mxu1  ;;  %v7056_v51 = vpop.f32.mrf.mxu0 }
 0x1c4   : > { %v5161_v1 = vadd.f32 %v5160_v35, %v5159_v6  ;;  %v7059_v0 = vadd.f32 %v6969_v29, %v2783_v38 }
 0x1c5   : > { %v5162_v20 = vpop.f32.mrf.mxu1  ;;  %v7062_v52 = vpop.f32.mrf.mxu0 }
 0x1c6   : > { %v2788_v63 = vadd.f32 %v5161_v1, %v6878_v41 }
 0x1c7   : > { %v5163_v8 = vpop.f32.mrf.mxu1  ;;  %v7064_v5 = vpop.f32.mrf.mxu0 }
 0x1c8   : > { %v5164_v60 = vadd.f32 %v5163_v8, %v5162_v20  ;;  %v7067_v48 = vadd.f32 %v6978_v36, %v2788_v63 }
 0x1c9   : > { %v5165_v27 = vpop.f32.mrf.mxu1  ;;  %v7070_v6 = vpop.f32.mrf.mxu0 }
 0x1ca   : > { %7373 = vst [vmem:[#allocation10_spill] sm:$0xff] %v7067_v48  ;;  %v2791_v47 = vadd.f32 %v5164_v60, %v6886_v17 }
 0x1cb   : > { %v5166_v35 = vpop.f32.mrf.mxu1  ;;  %v7072_v38 = vpop.f32.mrf.mxu0 }
 0x1cc   : > { %v5167_v29 = vadd.f32 %v5166_v35, %v5165_v27  ;;  %v7075_v41 = vadd.f32 %v6985_v30, %v2791_v47 }
 0x1cd   : > { %v5168_v1 = vpop.f32.mrf.mxu1  ;;  %v7078_v8 = vpop.f32.mrf.mxu0 }
 0x1ce   : > { %7374 = vst [vmem:[#allocation11_spill] sm:$0xff] %v7075_v41  ;;  %v2796_v20 = vadd.f32 %v5167_v29, %v6895_v44 }
 0x1cf   : > { %v5169_v31 = vpop.f32.mrf.mxu1  ;;  %v7080_v63 = vpop.f32.mrf.mxu0 }
 0x1d0   : > { %v5170_v36 = vadd.f32 %v5169_v31, %v5168_v1  ;;  %v7083_v17 = vadd.f32 %v6976_v15, %v2796_v20 }
 0x1d1   : > { %v5171_v60 = vpop.f32.mrf.mxu1  ;;  %v7086_v35 = vpop.f32.mrf.mxu0 }
 0x1d2   : > { %7375 = vst [vmem:[#allocation12_spill] sm:$0xff] %v7083_v17  ;;  %v2799_v27 = vadd.f32 %v5170_v36, %v6900_v28 }
 0x1d3   : > { %v5172_v56 = vpop.f32.mrf.mxu1  ;;  %v7088_v47 = vpop.f32.mrf.mxu0 }
 0x1d4   : > { %v5173_v30 = vadd.f32 %v5172_v56, %v5171_v60  ;;  %v7091_v44 = vadd.f32 %v6983_v21, %v2799_v27 }
 0x1d5   : > { %v5174_v29 = vpop.f32.mrf.mxu1  ;;  %v7094_v1 = vpop.f32.mrf.mxu0 }
 0x1d6   : > { %7376 = vst [vmem:[#allocation13_spill] sm:$0xff] %v7091_v44  ;;  %v2804_v31 = vadd.f32 %v5173_v30, %v6912_v46 }
 0x1d7   : > { %v5175_v23 = vpop.f32.mrf.mxu1  ;;  %v7096_v20 = vpop.f32.mrf.mxu0 }
 0x1d8   : > { %v5176_v15 = vadd.f32 %v5175_v23, %v5174_v29  ;;  %v7099_v28 = vadd.f32 %v6992_v2, %v2804_v31 }
 0x1d9   : > { %v5177_v36 = vpop.f32.mrf.mxu1  ;;  %v7102_v60 = vpop.f32.mrf.mxu0 }
 0x1da   : > { %7377 = vst [vmem:[#allocation14_spill] sm:$0xff] %v7099_v28  ;;  %v2807_v56 = vadd.f32 %v5176_v15, %v6917_v37 }
 0x1db   : > { %v5178_v41 = vpop.f32.mrf.mxu1  ;;  %v7104_v27 = vpop.f32.mrf.mxu0 }
 0x1dc   : > { %v5179_v21 = vadd.f32 %v5178_v41, %v5177_v36  ;;  %v7107_v46 = vadd.f32 %v6999_v39, %v2807_v56 }
 0x1dd   : > { %v5180_v30 = vpop.f32.mrf.mxu1  ;;  %v7110_v29 = vpop.f32.mrf.mxu0 }
 0x1de   : > { %7378 = vst [vmem:[#allocation15_spill] sm:$0xff] %v7107_v46  ;;  %v2812_v23 = vadd.f32 %v5179_v21, %v6924_v12 }
 0x1df   : > { %v5181_v44 = vpop.f32.mrf.mxu1  ;;  %v7112_v31 = vpop.f32.mrf.mxu0 }
 0x1e0   : > { %v5182_v2 = vadd.f32 %v5181_v44, %v5180_v30  ;;  %v7115_v37 = vadd.f32 %v6990_v43, %v2812_v23 }
 0x1e1   : > { %v5183_v15 = vpop.f32.mrf.mxu1  ;;  %v7118_v36 = vpop.f32.mrf.mxu0 }
 0x1e2   : > { %7379 = vst [vmem:[#allocation16_spill] sm:$0xff] %v7115_v37  ;;  %v2815_v41 = vadd.f32 %v5182_v2, %v6935_v54 }
 0x1e3   : > { %v5184_v28 = vpop.f32.mrf.mxu1  ;;  %v7120_v56 = vpop.f32.mrf.mxu0 }
 0x1e4   : > { %v5185_v39 = vadd.f32 %v5184_v28, %v5183_v15  ;;  %v7123_v12 = vadd.f32 %v6997_v7, %v2815_v41 }
 0x1e5   : > { %v5186_v21 = vpop.f32.mrf.mxu1  ;;  %v7126_v30 = vpop.f32.mrf.mxu0 }
 0x1e6   : > { %7380 = vst [vmem:[#allocation17_spill] sm:$0xff] %v7123_v12  ;;  %v2820_v44 = vadd.f32 %v5185_v39, %v6927_v45 }
 0x1e7   : > { %v5187_v46 = vpop.f32.mrf.mxu1  ;;  %v7128_v23 = vpop.f32.mrf.mxu0 }
 0x1e8   : > { %v5188_v43 = vadd.f32 %v5187_v46, %v5186_v21  ;;  %v7131_v54 = vadd.f32 %v7006_v18, %v2820_v44 }
 0x1e9   : > { %v5189_v2 = vpop.f32.mrf.mxu1  ;;  %v7134_v15 = vpop.f32.mrf.mxu0 }
 0x1ea   : > { %7381 = vst [vmem:[#allocation18_spill] sm:$0xff] %v7131_v54  ;;  %v2823_v28 = vadd.f32 %v5188_v43, %v6937_v25 }
 0x1eb   : > { %v5190_v37 = vpop.f32.mrf.mxu1  ;;  %v7136_v41 = vpop.f32.mrf.mxu0 }
 0x1ec   : > { %v5191_v7 = vadd.f32 %v5190_v37, %v5189_v2  ;;  %v7139_v45 = vadd.f32 %v7013_v61, %v2823_v28 }
 0x1ed   : > { %v5192_v39 = vpop.f32.mrf.mxu1  ;;  %v7144_v21 = vpop.f32.mrf.mxu0 }
 0x1ee   : > { %7382 = vst [vmem:[#allocation19_spill] sm:$0xff] %v7139_v45  ;;  %v7142_v46 = vadd.f32 %v5191_v7, %v6920_v34 }
 0x1ef   : > { %v5193_v18 = vpop.f32.mrf.mxu1  ;;  %v7146_v54 = vpop.f32.mrf.mxu0 }
 0x1f0   : > { %7383 = vst [vmem:[#allocation20_spill] sm:$0xff] %v7142_v46  ;;  %v5194_v44 = vadd.f32 %v5193_v18, %v5192_v39 }
 0x1f1   : > { %v5195_v25 = vpop.f32.mrf.mxu1  ;;  %v7151_v37 = vpop.f32.mrf.mxu0 }
 0x1f2   : > { %v7149_v43 = vadd.f32 %v5194_v44, %v6932_v24 }
 0x1f3   : > { %v5196_v2 = vpop.f32.mrf.mxu1  ;;  %v7153_v61 = vpop.f32.mrf.mxu0 }
 0x1f4   : > { %7384 = vst [vmem:[#allocation21_spill] sm:$0xff] %v7149_v43  ;;  %v5197_v12 = vadd.f32 %v5196_v2, %v5195_v25 }
 0x1f5   : > { %v5198_v28 = vpop.f32.mrf.mxu1  ;;  %v7158_v7 = vpop.f32.mrf.mxu0 }
 0x1f6   : > { %v7156_v34 = vadd.f32 %v5197_v12, %v6943_v13 }
 0x1f7   : > { %v5199_v45 = vpop.f32.mrf.mxu1  ;;  %v7160_v18 = vpop.f32.mrf.mxu0 }
 0x1f8   : > { %7385 = vst [vmem:[#allocation22_spill] sm:$0xff] %v7156_v34  ;;  %v5200_v39 = vadd.f32 %v5199_v45, %v5198_v28 }
 0x1f9   : > { %v5201_v46 = vpop.f32.mrf.mxu1  ;;  %v7165_v44 = vpop.f32.mrf.mxu0 }
 0x1fa   : > { %v7163_v24 = vadd.f32 %v5200_v39, %v6949_v16  ;;  %7387 = vst [vmem:[#allocation24_spill] sm:$0xff] %v7165_v44  ;;  %v5255_v16 = vadd.f32 %v7048_v49, %v7046_v59 }
 0x1fb   : > { %v5202_v43 = vpop.f32.mrf.mxu1  ;;  %v7167_v2 = vpop.f32.mrf.mxu0 }
 0x1fc   : > { %7386 = vst [vmem:[#allocation23_spill] sm:$0xff] %v7163_v24  ;;  %v5203_v25 = vadd.f32 %v5202_v43, %v5201_v46  ;;  %7388 = vst [vmem:[#allocation25_spill] sm:$0xff] %v7167_v2  ;;  %v5258_v43 = vadd.f32 %v7056_v51, %v7054_v22  ;;  %v5270_v51 = vadd.f32 %v7088_v47, %v7086_v35 }
 0x1fd   : > { %v7169_v17 = vpop.f32.mrf.mxu1  ;;  %v7174_v12 = vpop.f32.mrf.mxu0 }
 0x1fe   : > { %7389 = vst [vmem:[#allocation26_spill] sm:$0xff] %v7169_v17  ;;  %v7172_v13 = vadd.f32 %v5203_v25, %v6940_v53 }
 0x1ff   : > { %v7176_v45 = vpop.f32.mrf.mxu1  ;;  %v7178_v28 = vpop.f32.mrf.mxu0 }
 0x200   : > { %7390 = vst [vmem:[#allocation27_spill] sm:$0xff] %v7172_v13  ;;  %7391 = vst [vmem:[#allocation28_spill] sm:$0xff] %v7176_v45 }
 0x201   : > { %v5481_v34 = vpop.f32.mrf.mxu1  ;;  %v7182_v39 = vpop.f32.mrf.mxu0 }
 0x202   : > { %7392 = vst [vmem:[#allocation29_spill] sm:$0xff] %v7182_v39  ;;  %v3873_v24 = vadd.f32 %v5481_v34, %v5255_v16 }
 0x203   : > { %v3864_v46 = vpop.f32.mrf.mxu1  ;;  %v7187_v25 = vpop.f32.mrf.mxu0 }
 0x204   : > { %v3865_v53 = vadd.f32 %v7037_v32, %v3864_v46  ;;  %v3993_v59 = vadd.f32 %v3873_v24, %v6966_v9  ;;  %v5267_v32 = vadd.f32 %v7080_v63, %v7078_v8 }
 0x205   : > { %v5482_v13 = vpop.f32.mrf.mxu1  ;;  %v7190_v48 = vpop.f32.mrf.mxu0 }
 0x206   : > { %v3991_v45 = vadd.f32 %v3865_v53, %v6954_v26  ;;  %v3876_v17 = vadd.f32 %v5482_v13, %v5258_v43  ;;  %v4223_v46 = vmul.f32 %v3993_v59, %v3993_v59 }
 0x207   : > { %v3867_v2 = vpop.f32.mrf.mxu1  ;;  %v7195_v39 = vpop.f32.mrf.mxu0 }
 0x208   : > { %v3994_v49 = vadd.f32 %v3876_v17, %v6973_v19  ;;  %v3868_v44 = vadd.f32 %v7043_v33, %v3867_v2  ;;  %v5261_v33 = vadd.f32 %v7064_v5, %v7062_v52  ;;  %v4221_v17 = vmul.f32 %v3991_v45, %v3991_v45 }
 0x209   : > { %v5485_v26 = vpop.f32.mrf.mxu1  ;;  %v7207_v19 = vpop.f32.mrf.mxu0 }
 0x20a   : > { %v4857_v22 = vpack.c.bf16 %v3994_v49, %v3993_v59  ;;  %v3992_v9 = vadd.f32 %v3868_v44, %v6959_v42  ;;  %v3889_v8 = vadd.f32 %v5485_v26, %v5267_v32  ;;  %v5264_v42 = vadd.f32 %v7072_v38, %v7070_v6 }
 0x20b   : > { %v3880_v63 = vpop.f32.mrf.mxu1  ;;  %v7214_v13 = vpop.f32.mrf.mxu0  ;;  %v4224_v47 = vmul.f32 %v3994_v49, %v3994_v49 }
 0x20c   : > { %4944 = vst [vmem:[%s7204_s26 + $0x8] sm:$0xff] %v4857_v22   ;;  %v4852_v34 = vpack.c.bf16 %v3992_v9, %v3991_v45  ;;  %v4183_v24 = vadd.f32 %v3992_v9, %v3991_v45  ;;  %v4222_v2 = vmul.f32 %v3992_v9, %v3992_v9  ;;  %v3881_v44 = vadd.f32 %v5261_v33, %v3880_v63 }
 0x20d   : > { %v5486_v16 = vpop.f32.mrf.mxu1  ;;  %v7219_v35 = vpop.f32.mrf.mxu0  ;;  %v3997_v53 = vadd.f32 %v3889_v8, %v6994_v10  ;;  %v5279_v33 = vadd.f32 %v7112_v31, %v7110_v29 }
 0x20e   : > { %4853 = vst [vmem:[%s7204_s26] sm:$0xff] %v4852_v34   ;;  %v4184_v52 = vadd.f32 %v4183_v24, %v3993_v59  ;;  %v4253_v5 = vadd.f32 %v4222_v2, %v4221_v17  ;;  %v3892_v43 = vadd.f32 %v5486_v16, %v5270_v51  ;;  %v3995_v45 = vadd.f32 %v3881_v44, %v6980_v62 }
 0x20f   : > { %v3883_v32 = vpop.f32.mrf.mxu1  ;;  %v7224_v9 = vpop.f32.mrf.mxu0  ;;  %v5273_v59 = vadd.f32 %v7096_v20, %v7094_v1  ;;  %v5282_v34 = vadd.f32 %v7120_v56, %v7118_v36  ;;  %v5276_v16 = vadd.f32 %v7104_v27, %v7102_v60 }
 0x210   : > { %v4254_v26 = vadd.f32 %v4253_v5, %v4223_v46  ;;  %v4185_v22 = vadd.f32 %v4184_v52, %v3994_v49  ;;  %v3998_v6 = vadd.f32 %v3892_v43, %v7001_v40  ;;  %v3884_v38 = vadd.f32 %v5264_v42, %v3883_v32 }
 0x211   : > { %v5489_v51 = vpop.f32.mrf.mxu1  ;;  %v4225_v10 = vmul.f32 %v3995_v45, %v3995_v45  ;;  %v7230_v17 = vpop.f32.mrf.mxu0  ;;  %v4227_v52 = vmul.f32 %v3997_v53, %v3997_v53 }
 0x212   : > { %v4186_v63 = vadd.f32 %v4185_v22, %v3995_v45  ;;  %v4255_v8 = vadd.f32 %v4254_v26, %v4224_v47  ;;  %v4867_v62 = vpack.c.bf16 %v3998_v6, %v3997_v53  ;;  %v3996_v49 = vadd.f32 %v3884_v38, %v6987_v55 }
 0x213   : > { %v3896_v40 = vpop.f32.mrf.mxu1  ;;  %v3905_v1 = vadd.f32 %v5489_v51, %v5279_v33  ;;  %v7236_v2 = vpop.f32.mrf.mxu0  ;;  %v4228_v22 = vmul.f32 %v3998_v6, %v3998_v6 }
 0x214   : > { %v4256_v24 = vadd.f32 %v4255_v8, %v4225_v10  ;;  %4946 = vst [vmem:[%s7204_s26 + $0x18] sm:$0xff] %v4867_v62   ;;  %v3897_v20 = vadd.f32 %v5273_v59, %v3896_v40  ;;  %v4862_v29 = vpack.c.bf16 %v3996_v49, %v3995_v45  ;;  %v4187_v31 = vadd.f32 %v4186_v63, %v3996_v49 }
 0x215   : > { %v4226_v42 = vmul.f32 %v3996_v49, %v3996_v49  ;;  %v5490_v44 = vpop.f32.mrf.mxu1  ;;  %v7240_v55 = vpop.f32.mrf.mxu0  ;;  %v4001_v47 = vadd.f32 %v3905_v1, %v7023_v58  ;;  %v5285_v59 = vadd.f32 %v7128_v23, %v7126_v30  ;;  %v5288_v40 = vadd.f32 %v7136_v41, %v7134_v15 }
 0x216   : > { %v3908_v46 = vadd.f32 %v5490_v44, %v5282_v34  ;;  %4945 = vst [vmem:[%s7204_s26 + $0x10] sm:$0xff] %v4862_v29   ;;  %v4188_v5 = vadd.f32 %v4187_v31, %v3997_v53  ;;  %v3999_v56 = vadd.f32 %v3897_v20, %v7008_v4  ;;  %v5291_v53 = vadd.f32 %v7146_v54, %v7144_v21 }
 0x217   : > { %v4257_v36 = vadd.f32 %v4256_v24, %v4226_v42  ;;  %v3899_v43 = vpop.f32.mrf.mxu1  ;;  %v7246_v26 = vpop.f32.mrf.mxu0 }
 0x218   : > { %v4002_v45 = vadd.f32 %v3908_v46, %v7031_v50  ;;  %v3900_v32 = vadd.f32 %v5276_v16, %v3899_v43  ;;  %v4189_v27 = vadd.f32 %v4188_v5, %v3998_v6  ;;  %v5294_v50 = vadd.f32 %v7153_v61, %v7151_v37 }
 0x219   : > { %v4258_v60 = vadd.f32 %v4257_v36, %v4227_v52  ;;  %v5493_v38 = vpop.f32.mrf.mxu1  ;;  %v7253_v58 = vpop.f32.mrf.mxu0  ;;  %v4229_v63 = vmul.f32 %v3999_v56, %v3999_v56  ;;  %v4231_v61 = vmul.f32 %v4001_v47, %v4001_v47  ;;  %v5297_v5 = vadd.f32 %v7160_v18, %v7158_v7 }
 0x21a   : > { %v4877_v4 = vpack.c.bf16 %v4002_v45, %v4001_v47  ;;  %v4000_v33 = vadd.f32 %v3900_v32, %v7015_v57  ;;  %v4190_v51 = vadd.f32 %v4189_v27, %v3999_v56  ;;  %v3921_v30 = vadd.f32 %v5493_v38, %v5291_v53  ;;  %v7395_v53 = vld [vmem:[#allocation25_spill] sm:$0xff] }
 0x21b   : > { %v4259_v10 = vadd.f32 %v4258_v60, %v4228_v22  ;;  %v3912_v6 = vpop.f32.mrf.mxu1  ;;  %v7258_v49 = vpop.f32.mrf.mxu0  ;;  %v4232_v46 = vmul.f32 %v4002_v45, %v4002_v45  ;;  %v5303_v36 = vadd.f32 %v7178_v28, %v7174_v12 }
 0x21c   : > { %4948 = vst [vmem:[%s7204_s26 + $0x28] sm:$0xff] %v4877_v4   ;;  %v4872_v8 = vpack.c.bf16 %v4000_v33, %v3999_v56  ;;  %v4230_v62 = vmul.f32 %v4000_v33, %v4000_v33  ;;  %v3913_v23 = vadd.f32 %v5285_v59, %v3912_v6  ;;  %v4191_v21 = vadd.f32 %v4190_v51, %v4000_v33  ;;  %v7394_v59 = vld [vmem:[#allocation24_spill] sm:$0xff] }
 0x21d   : > { %v4260_v54 = vadd.f32 %v4259_v10, %v4229_v63  ;;  %v5494_v57 = vpop.f32.mrf.mxu1  ;;  %v7263_v37 = vpop.f32.mrf.mxu0  ;;  %v4005_v31 = vadd.f32 %v3921_v30, %v7051_v3  ;;  %v5300_v4 = vadd.f32 %v7395_v53, %v7394_v59  ;;  %v7396_v10 = vld [vmem:[#allocation10_spill] sm:$0xff] }
 0x21e   : > { %4947 = vst [vmem:[%s7204_s26 + $0x20] sm:$0xff] %v4872_v8   ;;  %v3924_v34 = vadd.f32 %v5494_v57, %v5294_v50  ;;  %v4192_v24 = vadd.f32 %v4191_v21, %v4001_v47  ;;  %v4003_v20 = vadd.f32 %v3913_v23, %v7035_v11  ;;  %v7398_v23 = vld [vmem:[#allocation13_spill] sm:$0xff] }
 0x21f   : > { %v4261_v1 = vadd.f32 %v4260_v54, %v4230_v62  ;;  %v3915_v29 = vpop.f32.mrf.mxu1  ;;  %v7268_v16 = vpop.f32.mrf.mxu0  ;;  %v4235_v50 = vmul.f32 %v4005_v31, %v4005_v31  ;;  %v7397_v62 = vld [vmem:[#allocation12_spill] sm:$0xff] }
 0x220   : > { %v4006_v42 = vadd.f32 %v3924_v34, %v7059_v0  ;;  %v3916_v44 = vadd.f32 %v5288_v40, %v3915_v29  ;;  %v4193_v41 = vadd.f32 %v4192_v24, %v4002_v45  ;;  %v7393_v0 = vld [vmem:[#allocation29_spill] sm:$0xff]  ;;  %v4233_v32 = vmul.f32 %v4003_v20, %v4003_v20 }
 0x221   : > { %v4262_v15 = vadd.f32 %v4261_v1, %v4231_v61  ;;  %v5497_v52 = vpop.f32.mrf.mxu1  ;;  %v7275_v3 = vpop.f32.mrf.mxu0  ;;  %v5306_v43 = vadd.f32 %v7187_v25, %v7393_v0  ;;  %v5309_v1 = vadd.f32 %v7195_v39, %v7190_v48 }
 0x222   : > { %v4887_v11 = vpack.c.bf16 %v4006_v42, %v4005_v31  ;;  %v4004_v56 = vadd.f32 %v3916_v44, %v7041_v14  ;;  %v4194_v47 = vadd.f32 %v4193_v41, %v4003_v20  ;;  %v3937_v7 = vadd.f32 %v5497_v52, %v5303_v36 }
 0x223   : > { %v4263_v22 = vadd.f32 %v4262_v15, %v4232_v46  ;;  %v3928_v45 = vpop.f32.mrf.mxu1  ;;  %v7280_v38 = vpop.f32.mrf.mxu0  ;;  %v4236_v40 = vmul.f32 %v4006_v42, %v4006_v42  ;;  %v5318_v15 = vadd.f32 %v7236_v2, %v7230_v17 }
 0x224   : > { %4950 = vst [vmem:[%s7204_s26 + $0x38] sm:$0xff] %v4887_v11   ;;  %v4882_v60 = vpack.c.bf16 %v4004_v56, %v4003_v20  ;;  %v4234_v27 = vmul.f32 %v4004_v56, %v4004_v56  ;;  %v3929_v18 = vadd.f32 %v5297_v5, %v3928_v45  ;;  %v4195_v28 = vadd.f32 %v4194_v47, %v4004_v56  ;;  %v7400_v45 = vld [vmem:[#allocation14_spill] sm:$0xff] }
 0x225   : > { %v4264_v12 = vadd.f32 %v4263_v22, %v4233_v32  ;;  %v5498_v14 = vpop.f32.mrf.mxu1  ;;  %v7285_v25 = vpop.f32.mrf.mxu0  ;;  %v4009_v30 = vadd.f32 %v3937_v7, %v7397_v62  ;;  %v5315_v20 = vadd.f32 %v7224_v9, %v7219_v35  ;;  %v7401_v7 = vld [vmem:[#allocation16_spill] sm:$0xff] }
 0x226   : > { %4949 = vst [vmem:[%s7204_s26 + $0x30] sm:$0xff] %v4882_v60   ;;  %v3940_v33 = vadd.f32 %v5498_v14, %v5306_v43  ;;  %v4196_v51 = vadd.f32 %v4195_v28, %v4005_v31  ;;  %v4007_v6 = vadd.f32 %v3929_v18, %v7396_v10  ;;  %v7399_v31 = vld [vmem:[#allocation11_spill] sm:$0xff]  ;;  %v5312_v43 = vadd.f32 %v7214_v13, %v7207_v19 }
 0x227   : > { %v4265_v63 = vadd.f32 %v4264_v12, %v4234_v27  ;;  %v3931_v8 = vpop.f32.mrf.mxu1  ;;  %v7290_v57 = vpop.f32.mrf.mxu0  ;;  %v4239_v2 = vmul.f32 %v4009_v30, %v4009_v30  ;;  %v7402_v12 = vld [vmem:[#allocation17_spill] sm:$0xff]  ;;  %v5321_v13 = vadd.f32 %v7246_v26, %v7240_v55  ;;  %v7404_v26 = vld [vmem:[#allocation26_spill] sm:$0xff] }
 0x228   : > { %v4010_v54 = vadd.f32 %v3940_v33, %v7398_v23  ;;  %v3932_v21 = vadd.f32 %v5300_v4, %v3931_v8  ;;  %v4197_v61 = vadd.f32 %v4196_v51, %v4006_v42  ;;  %v4237_v52 = vmul.f32 %v4007_v6, %v4007_v6 }
 0x229   : > { %v4266_v34 = vadd.f32 %v4265_v63, %v4235_v50  ;;  %v5501_v24 = vpop.f32.mrf.mxu1  ;;  %v7297_v46 = vpop.f32.mrf.mxu0  ;;  %v5327_v50 = vadd.f32 %v7268_v16, %v7263_v37  ;;  %v7403_v63 = vld [vmem:[#allocation15_spill] sm:$0xff] }
 0x22a   : > { %v4897_v29 = vpack.c.bf16 %v4010_v54, %v4009_v30  ;;  %v4008_v44 = vadd.f32 %v3932_v21, %v7399_v31  ;;  %v4198_v41 = vadd.f32 %v4197_v61, %v4007_v6  ;;  %v3953_v48 = vadd.f32 %v5501_v24, %v5315_v20  ;;  %v7405_v61 = vld [vmem:[#allocation28_spill] sm:$0xff] }
 0x22b   : > { %v4267_v5 = vadd.f32 %v4266_v34, %v4236_v40  ;;  %v3944_v42 = vpop.f32.mrf.mxu1  ;;  %v7302_v56 = vpop.f32.mrf.mxu0  ;;  %v4240_v53 = vmul.f32 %v4010_v54, %v4010_v54  ;;  %v5206_v37 = vadd.f32 %v7405_v61, %v7404_v26  ;;  %v5324_v20 = vadd.f32 %v7258_v49, %v7253_v58  ;;  %v7407_v31 = vld [vmem:[#allocation4_spill] sm:$0xff]  ;;  %v7411_v49 = vld [vmem:[#allocation3_spill] sm:$0xff] }
 0x22c   : > { %4952 = vst [vmem:[%s7204_s26 + $0x48] sm:$0xff] %v4897_v29   ;;  %v4892_v36 = vpack.c.bf16 %v4008_v44, %v4007_v6  ;;  %v4238_v11 = vmul.f32 %v4008_v44, %v4008_v44  ;;  %v3945_v39 = vadd.f32 %v5309_v1, %v3944_v42  ;;  %v4199_v9 = vadd.f32 %v4198_v41, %v4008_v44  ;;  %v7406_v29 = vld [vmem:[#allocation20_spill] sm:$0xff]  ;;  %v7409_v44 = vld [vmem:[#allocation5_spill] sm:$0xff] }
 0x22d   : > { %v4268_v35 = vadd.f32 %v4267_v5, %v4237_v52  ;;  %v5502_v0 = vpop.f32.mrf.mxu1  ;;  %v5337_v17 = vpop.f32.mrf.mxu0  ;;  %v4013_v18 = vadd.f32 %v3953_v48, %v7401_v7 }
 0x22e   : > { %4951 = vst [vmem:[%s7204_s26 + $0x40] sm:$0xff] %v4892_v36   ;;  %v3956_v47 = vadd.f32 %v5502_v0, %v5318_v15  ;;  %v4200_v32 = vadd.f32 %v4199_v9, %v4009_v30  ;;  %v4011_v60 = vadd.f32 %v3945_v39, %v7400_v45  ;;  %v5330_v30 = vadd.f32 %v7280_v38, %v7275_v3  ;;  %v7408_v38 = vld [vmem:[#allocation21_spill] sm:$0xff]  ;;  %v7410_v36 = vld [vmem:[#allocation18_spill] sm:$0xff] }
 0x22f   : > { %v4269_v22 = vadd.f32 %v4268_v35, %v4238_v11  ;;  %v3947_v27 = vpop.f32.mrf.mxu1  ;;  %v5338_v59 = vpop.f32.mrf.mxu0  ;;  %v2989_v3 = vadd.f32 %v7407_v31, %v7406_v29  ;;  %v2992_v15 = vadd.f32 %v7409_v44, %v7408_v38  ;;  %v4243_v52 = vmul.f32 %v4013_v18, %v4013_v18 }
 0x230   : > { %v4014_v28 = vadd.f32 %v3956_v47, %v7402_v12  ;;  %v3948_v14 = vadd.f32 %v5312_v43, %v3947_v27  ;;  %v4201_v33 = vadd.f32 %v4200_v32, %v4010_v54  ;;  %v4241_v8 = vmul.f32 %v4011_v60, %v4011_v60  ;;  %v7412_v27 = vld [vmem:[#allocation19_spill] sm:$0xff] }
 0x231   : > { %v4270_v4 = vadd.f32 %v4269_v22, %v4239_v2  ;;  %v5505_v19 = vpop.f32.mrf.mxu1  ;;  %v5340_v21 = vpop.f32.mrf.mxu0  ;;  %v5339_v58 = vadd.f32 %v5338_v59, %v5337_v17  ;;  %v2847_v43 = vadd.f32 %v5206_v37, %v7411_v49  ;;  %v5333_v45 = vadd.f32 %v7290_v57, %v7285_v25  ;;  %v7415_v57 = vld [vmem:[#allocation27_spill] sm:$0xff] }
 0x232   : > { %v4907_v51 = vpack.c.bf16 %v4014_v28, %v4013_v18  ;;  %v4012_v10 = vadd.f32 %v3948_v14, %v7403_v63  ;;  %v4202_v6 = vadd.f32 %v4201_v33, %v4011_v60  ;;  %v3969_v34 = vadd.f32 %v5505_v19, %v5327_v50  ;;  %v7413_v50 = vld [vmem:[#allocation22_spill] sm:$0xff]  ;;  %v7418_v37 = vld [vmem:[#allocation23_spill] sm:$0xff] }
 0x233   : > { %v4271_v62 = vadd.f32 %v4270_v4, %v4240_v53  ;;  %v3960_v23 = vpop.f32.mrf.mxu1  ;;  %v5341_v39 = vpop.f32.mrf.mxu0  ;;  %v4244_v47 = vmul.f32 %v4014_v28, %v4014_v28 }
 0x234   : > { %4954 = vst [vmem:[%s7204_s26 + $0x58] sm:$0xff] %v4907_v51   ;;  %v4902_v54 = vpack.c.bf16 %v4012_v10, %v4011_v60  ;;  %v4242_v40 = vmul.f32 %v4012_v10, %v4012_v10  ;;  %v3961_v55 = vadd.f32 %v5321_v13, %v3960_v23  ;;  %v4203_v24 = vadd.f32 %v4202_v6, %v4012_v10  ;;  %v7414_v51 = vld [vmem:[#allocation7_spill] sm:$0xff]  ;;  %v7416_v10 = vld [vmem:[#allocation6_spill] sm:$0xff] }
 0x235   : > { %v4272_v16 = vadd.f32 %v4271_v62, %v4241_v8  ;;  %v5506_v1 = vpop.f32.mrf.mxu1  ;;  %v4017_v35 = vadd.f32 %v3969_v34, %v2989_v3  ;;  %v2997_v63 = vadd.f32 %v7414_v51, %v7413_v50  ;;  %v3005_v6 = vadd.f32 %v7416_v10, %v7415_v57  ;;  %v7417_v8 = vld [vmem:[#allocation8_spill] sm:$0xff] }
 0x236   : > { %4953 = vst [vmem:[%s7204_s26 + $0x50] sm:$0xff] %v4902_v54   ;;  %v3972_v41 = vadd.f32 %v5506_v1, %v5330_v30  ;;  %v4204_v5 = vadd.f32 %v4203_v24, %v4013_v18  ;;  %v4015_v11 = vadd.f32 %v3961_v55, %v7410_v36  ;;  %v5342_v18 = vadd.f32 %v5341_v39, %v5340_v21 }
 0x237   : > { %v4273_v42 = vadd.f32 %v4272_v16, %v4242_v40  ;;  %v3963_v48 = vpop.f32.mrf.mxu1  ;;  %v3008_v62 = vadd.f32 %v7417_v8, %v2847_v43  ;;  %v5336_v30 = vadd.f32 %v7302_v56, %v7297_v46  ;;  %v4247_v21 = vmul.f32 %v4017_v35, %v4017_v35  ;;  %v7419_v16 = vld [vmem:[#allocation9_spill] sm:$0xff] }
 0x238   : > { %v4018_v9 = vadd.f32 %v3972_v41, %v2992_v15  ;;  %v3964_v0 = vadd.f32 %v5324_v20, %v3963_v48  ;;  %v4205_v32 = vadd.f32 %v4204_v5, %v4014_v28  ;;  %v4245_v14 = vmul.f32 %v4015_v11, %v4015_v11 }
 0x239   : > { %v4274_v2 = vadd.f32 %v4273_v42, %v4243_v52  ;;  %v5509_v22 = vpop.f32.mrf.mxu1  ;;  %v3000_v24 = vadd.f32 %v7419_v16, %v7418_v37 }
 0x23a   : > { %v4917_v60 = vpack.c.bf16 %v4018_v9, %v4017_v35  ;;  %v4016_v7 = vadd.f32 %v3964_v0, %v7412_v27  ;;  %v4206_v12 = vadd.f32 %v4205_v32, %v4015_v11  ;;  %v3985_v33 = vadd.f32 %v5509_v22, %v5339_v58 }
 0x23b   : > { %v4275_v53 = vadd.f32 %v4274_v2, %v4244_v47  ;;  %v3976_v4 = vpop.f32.mrf.mxu1  ;;  %v4248_v20 = vmul.f32 %v4018_v9, %v4018_v9 }
 0x23c   : > { %4956 = vst [vmem:[%s7204_s26 + $0x68] sm:$0xff] %v4917_v60   ;;  %v4912_v17 = vpack.c.bf16 %v4016_v7, %v4015_v11  ;;  %v4246_v59 = vmul.f32 %v4016_v7, %v4016_v7  ;;  %v3977_v19 = vadd.f32 %v5333_v45, %v3976_v4  ;;  %v4207_v28 = vadd.f32 %v4206_v12, %v4016_v7 }
 0x23d   : > { %v4276_v13 = vadd.f32 %v4275_v53, %v4245_v14  ;;  %v5510_v25 = vpop.f32.mrf.mxu1  ;;  %v4021_v26 = vadd.f32 %v3985_v33, %v3005_v6 }
 0x23e   : > { %4955 = vst [vmem:[%s7204_s26 + $0x60] sm:$0xff] %v4912_v17   ;;  %v3988_v23 = vadd.f32 %v5510_v25, %v5342_v18  ;;  %v4208_v54 = vadd.f32 %v4207_v28, %v4017_v35  ;;  %v4019_v34 = vadd.f32 %v3977_v19, %v2997_v63 }
 0x23f   : > { %v4277_v40 = vadd.f32 %v4276_v13, %v4246_v59  ;;  %v3979_v55 = vpop.f32.mrf.mxu1  ;;  %v4251_v42 = vmul.f32 %v4021_v26, %v4021_v26 }
 0x240   : > { %v4022_v61 = vadd.f32 %v3988_v23, %v3008_v62  ;;  %v3980_v1 = vadd.f32 %v5336_v30, %v3979_v55  ;;  %v4209_v31 = vadd.f32 %v4208_v54, %v4018_v9  ;;  %v4249_v38 = vmul.f32 %v4019_v34, %v4019_v34 }
 0x241   : > { %v4278_v29 = vadd.f32 %v4277_v40, %v4247_v21 }
 0x242   : > { %v4927_v3 = vpack.c.bf16 %v4022_v61, %v4021_v26  ;;  %v4020_v46 = vadd.f32 %v3980_v1, %v3000_v24  ;;  %v4210_v56 = vadd.f32 %v4209_v31, %v4019_v34  ;;  %v4252_v48 = vmul.f32 %v4022_v61, %v4022_v61 }
 0x243   : > { %v4279_v44 = vadd.f32 %v4278_v29, %v4248_v20 }
 0x244   : > { %4958 = vst [vmem:[%s7204_s26 + $0x78] sm:$0xff] %v4927_v3   ;;  %v4922_v15 = vpack.c.bf16 %v4020_v46, %v4019_v34  ;;  %v4250_v41 = vmul.f32 %v4020_v46, %v4020_v46  ;;  %v4211_v5 = vadd.f32 %v4210_v56, %v4020_v46 }
 0x245   : > { %v4280_v52 = vadd.f32 %v4279_v44, %v4249_v38 }
 0x246   : > { %4957 = vst [vmem:[%s7204_s26 + $0x70] sm:$0xff] %v4922_v15   ;;  %v4212_v36 = vadd.f32 %v4211_v5, %v4021_v26 }
 0x247   : > { %v4281_v11 = vadd.f32 %v4280_v52, %v4250_v41 }
 0x248   : > { %v4213_v39 = vadd.f32 %v4212_v36, %v4022_v61 }
 0x249   : > { %v4282_v35 = vadd.f32 %v4281_v11, %v4251_v42 }
 0x24a   : > { %v4214_v0 = vrot.slane %v4213_v39, 4 }
 0x24b   : > { %v4283_v9 = vadd.f32 %v4282_v35, %v4252_v48 }
 0x24c   : > { %v4215_v58 = vadd.f32 %v4214_v0, %v4213_v39 }
 0x24d   : > { %v4284_v49 = vrot.slane %v4283_v9, 4 }
 0x24e   : > { %v4216_v43 = vrot.slane %v4215_v58, 2 }
 0x24f   : > { %v4285_v47 = vadd.f32 %v4284_v49, %v4283_v9 }
 0x250   : > { %v4217_v2 = vadd.f32 %v4216_v43, %v4215_v58 }
 0x251   : > { %v4286_v32 = vrot.slane %v4285_v47, 2 }
 0x252   : > { %v4218_v22 = vrot.slane %v4217_v2, 1 }
 0x253   : > { %v4287_v45 = vadd.f32 %v4286_v32, %v4285_v47 }
 0x254   : > { %v4219_v60 = vadd.f32 %v4218_v22, %v4217_v2 }
 0x255   : > { %v4288_v27 = vrot.slane %v4287_v45, 1 }
 0x256   : > { %4220 = vst [vmem:[%s235_s29] sm:$0x1] %v4219_v60 }
 0x257   : > { %v4289_v7 = vadd.f32 %v4288_v27, %v4287_v45 }
 0x259   : > { %4290 = vst [vmem:[%s235_s29 + $0x1] sm:$0x1] %v4289_v7 }
 0x25a PF: > { %s16_s18 = sadd.s32 1, %s5718_s18  }
 0x25b   : > { %p13_p4 = scmp.ge.s32.totalorder %s16_s18, 4  }
 0x25d   :  { %15 = sbr.rel (!%p13_p4) target bundleno = 1 (0x1), region = 83 }

</bundles_post_ra>
